<compile_context>
chip_gen: v6e
topology: v6e:2x2x1
jax: 0.10.0
libtpu: 0.0.40
codegen_flags: <defaults>
</compile_context>

<pallas_src>
import functools

import jax
import jax.numpy as jnp
import numpy as np
from jax.experimental import pallas as pl
from jax.experimental.pallas import tpu as pltpu


def _lstm_recurrence_kernel(x_ref, wih_ref, whh_ref, bias_ref,
                            out_ref, h_ref, c_ref, gx_ref):
    """One (batch block, time chunk) of the LSTM.

    x_ref    : (Bt, Tc, D)   streamed input chunk
    wih_ref  : (D, 4H)       fused input->gate weights (g cols pre-scaled by 2)
    whh_ref  : (H, 4H)       fused hidden->gate weights (g cols pre-scaled by 2)
    bias_ref : (1, 4H)       b_ih + b_hh (g slice pre-scaled by 2)
    out_ref  : (Bt, Tc, H)   per-step hidden states for this chunk
    h_ref    : (Bt, H)       recurrent h carry / final hidden state (accumulator)
    c_ref    : (Bt, H)       recurrent c carry / final cell state   (accumulator)
    gx_ref   : (Bt, Tc, 4H)  VMEM scratch for the chunk's input projection
    """
    t_chunk = pl.program_id(1)

    @pl.when(t_chunk == 0)
    def _():
        h_ref[...] = jnp.zeros_like(h_ref)
        c_ref[...] = jnp.zeros_like(c_ref)

    Bt, Tc, D = x_ref.shape
    G = whh_ref.shape[1]
    H = G // 4

    # Fused input projection for the whole chunk: one MXU GEMM, off the serial
    # critical path.  Stored to VMEM scratch and re-loaded one step at a time
    # so the unrolled recurrence doesn't keep the whole block live in vregs.
    x_chunk = x_ref[...].reshape(Bt * Tc, D)
    gx = jnp.dot(x_chunk, wih_ref[...], preferred_element_type=jnp.float32)
    gx_ref[...] = (gx + bias_ref[...]).reshape(Bt, Tc, G)

    whh = whh_ref[...]               # (H, 4H), VMEM-resident across the chunk
    h = h_ref[...]
    c = c_ref[...]

    # Tc is a small compile-time constant; a static unrolled loop keeps every
    # slice static and gives the scheduler full visibility.
    for t in range(Tc):
        # One fused MXU push per step: (Bt, H) x (H, 4H) -> (Bt, 4H).
        gates = gx_ref[:, t, :] + jnp.dot(h, whh,
                                          preferred_element_type=jnp.float32)
        # Single full-lane EUP sigmoid over all four gate blocks; tanh for the
        # g gate is recovered on the VPU (its columns were pre-scaled by 2):
        # tanh(x) = 2*sigmoid(2x) - 1.
        a = jax.nn.sigmoid(gates)
        i_g = a[:, 0:H]
        f_g = a[:, H:2 * H]
        g_g = 2.0 * a[:, 2 * H:3 * H] - 1.0
        o_g = a[:, 3 * H:4 * H]
        c = f_g * c + i_g * g_g
        h = o_g * jnp.tanh(c)
        out_ref[:, t, :] = h.astype(out_ref.dtype)

    h_ref[...] = h
    c_ref[...] = c


def _pick_time_chunk(T, target, bt, d, h, vmem_budget_bytes=6 << 20):
    """Largest Tc <= target that divides T and keeps the streamed blocks
    sublane-aligned (Tc % 8 == 0) or full-extent, capped so the per-chunk VMEM
    footprint (double-buffered x/out blocks + the gate scratch) stays well
    under the scoped-VMEM limit on every generation (v7x total VMEM: 64 MiB)."""
    bytes_per_t = bt * (d + h + 4 * h) * 4 * 2
    cap = max(8, vmem_budget_bytes // max(bytes_per_t, 1))
    target = int(min(target, cap))
    if T <= target:
        return T
    for tc in range(min(target, T - 1), 0, -1):
        if T % tc == 0 and tc % 8 == 0:
            return tc
    return T


def _pick_batch_blocks(Bp, requested):
    """Split the (padded) batch across grid blocks only when explicitly
    requested (worthwhile only on v7x, which has 2 TensorCores); each block
    must keep a full f32 sublane group.  On v5e/v6e the grid's 'parallel'
    batch axis still executes sequentially, so splitting only adds per-step
    pipeline overhead -- keep a single block there."""
    if requested and requested > 1 and Bp % requested == 0 \
            and (Bp // requested) % 8 == 0:
        return int(requested)
    return 1


def text_encoder_forward(x, params, *, time_chunk=64, batch_blocks=1):
    """Pallas implementation of TextEncoder.forward (padded-tensor path).

    x: (B, T, in_size), batch-first like PyTorch.
    Returns (output (B, T, H), (final_h (1, B, H), final_c (1, B, H))).
    """
    in_dtype = x.dtype
    B, T, D = x.shape
    w_ih = params["weight_ih"]                       # (4H, D)  gate order i,f,g,o
    w_hh = params["weight_hh"]                       # (4H, H)
    bias = params["bias_ih"] + params["bias_hh"]     # (4H,)
    H = w_hh.shape[1]
    G = 4 * H

    # tanh(g) == 2*sigmoid(2g) - 1: pre-scale the g-gate columns by 2 so the
    # kernel runs ONE full-lane sigmoid over all four gate blocks per step.
    gate_scale = jnp.concatenate([
        jnp.ones((2 * H,), jnp.float32),
        jnp.full((H,), 2.0, jnp.float32),
        jnp.ones((H,), jnp.float32)])
    wih_fused = w_ih.T.astype(jnp.float32) * gate_scale            # (D, 4H)
    whh_fused = w_hh.T.astype(jnp.float32) * gate_scale            # (H, 4H)
    bias_fused = (bias.astype(jnp.float32) * gate_scale).reshape(1, G)

    # Pad the batch to a full f32 sublane group (8 rows): same per-step latency,
    # up to 4x more useful work per vreg for tiny batches.
    Bp = max(8, ((B + 7) // 8) * 8)
    x_f32 = x.astype(jnp.float32)
    if Bp != B:
        x_f32 = jnp.pad(x_f32, ((0, Bp - B), (0, 0), (0, 0)))

    n_b = _pick_batch_blocks(Bp, batch_blocks)
    Bt = Bp // n_b
    Tc = _pick_time_chunk(T, time_chunk, Bt, D, H)
    n_tc = T // Tc

    grid_spec = pltpu.PrefetchScalarGridSpec(
        num_scalar_prefetch=0,
        grid=(n_b, n_tc),
        in_specs=[
            pl.BlockSpec((Bt, Tc, D), lambda b, t: (b, t, 0)),   # streamed x chunk
            pl.BlockSpec((D, G), lambda b, t: (0, 0)),           # W_ih fused (resident)
            pl.BlockSpec((H, G), lambda b, t: (0, 0)),           # W_hh fused (resident)
            pl.BlockSpec((1, G), lambda b, t: (0, 0)),           # fused bias
        ],
        out_specs=[
            pl.BlockSpec((Bt, Tc, H), lambda b, t: (b, t, 0)),   # per-step hidden states
            pl.BlockSpec((Bt, H), lambda b, t: (b, 0)),          # final h (carry)
            pl.BlockSpec((Bt, H), lambda b, t: (b, 0)),          # final c (carry)
        ],
        scratch_shapes=[pltpu.VMEM((Bt, Tc, G), jnp.float32)],   # chunk gate_x scratch
    )

    out, h_n, c_n = pl.pallas_call(
        _lstm_recurrence_kernel,
        out_shape=(
            jax.ShapeDtypeStruct((Bp, T, H), in_dtype),
            jax.ShapeDtypeStruct((Bp, H), jnp.float32),
            jax.ShapeDtypeStruct((Bp, H), jnp.float32),
        ),
        grid_spec=grid_spec,
        compiler_params=pltpu.CompilerParams(
            # Batch blocks (if any) are independent; the time axis is the
            # recurrence and must stay sequential (and last in the grid).
            dimension_semantics=("parallel", "arbitrary")),
    )(x_f32, wih_fused, whh_fused, bias_fused)

    output = out[:B]
    final_h = h_n[:B][None, :, :].astype(in_dtype)   # (num_layers*num_dirs=1, B, H)
    final_c = c_n[:B][None, :, :].astype(in_dtype)
    return output, (final_h, final_c)


def _reference_lstm(x, params):
    """Pure-JAX reference (lax.scan) matching PyTorch nn.LSTM semantics."""
    w_ih, w_hh = params["weight_ih"], params["weight_hh"]
    b = params["bias_ih"] + params["bias_hh"]
    H = w_hh.shape[1]
    B = x.shape[0]

    def step(carry, x_t):
        h, c = carry
        gates = x_t @ w_ih.T + h @ w_hh.T + b
        i, f, g, o = jnp.split(gates, 4, axis=-1)
        i, f, o = jax.nn.sigmoid(i), jax.nn.sigmoid(f), jax.nn.sigmoid(o)
        g = jnp.tanh(g)
        c_new = f * c + i * g
        h_new = o * jnp.tanh(c_new)
        return (h_new, c_new), h_new

    h0 = jnp.zeros((B, H), x.dtype)
    c0 = jnp.zeros((B, H), x.dtype)
    (h_n, c_n), outs = jax.lax.scan(step, (h0, c0), jnp.transpose(x, (1, 0, 2)))
    return jnp.transpose(outs, (1, 0, 2)), (h_n[None], c_n[None])


def init_params(key, in_size, hid_size):
    """Deterministic init mirroring PyTorch LSTM param shapes (uniform(-k, k), k=1/sqrt(H))."""
    k = 1.0 / np.sqrt(hid_size)
    k0, k1, k2, k3 = jax.random.split(key, 4)
    return {
        "weight_ih": jax.random.uniform(k0, (4 * hid_size, in_size), jnp.float32, -k, k),
        "weight_hh": jax.random.uniform(k1, (4 * hid_size, hid_size), jnp.float32, -k, k),
        "bias_ih": jax.random.uniform(k2, (4 * hid_size,), jnp.float32, -k, k),
        "bias_hh": jax.random.uniform(k3, (4 * hid_size,), jnp.float32, -k, k),
    }


if __name__ == "__main__":
    # Small shapes consistent with TextEncoder.forward: x (batch, max_seq_len, in_size).
    # T=16 with time_chunk=8 exercises the cross-chunk h/c carry (grid = (1, 2)).
    B, T, IN, HID = 2, 16, 16, 32
    key = jax.random.PRNGKey(0)
    kx, kp = jax.random.split(key)
    x = jax.random.normal(kx, (B, T, IN), jnp.float32)
    params = init_params(kp, IN, HID)

    # TODO(synk): PackedSequence / seq_lens branch (pack_padded_sequence) is not
    # implemented; only the plain padded-tensor path of forward() is reproduced,
    # so padded steps of ragged batches would contaminate final_h/final_c.

    fwd = jax.jit(functools.partial(text_encoder_forward, params=params, time_chunk=8))
    output, (final_h, final_c) = fwd(x)
    jax.block_until_ready((output, final_h, final_c))

    ref_out, (ref_h, ref_c) = _reference_lstm(x, params)
    np.testing.assert_allclose(np.asarray(output), np.asarray(ref_out), rtol=1e-4, atol=1e-4)
    np.testing.assert_allclose(np.asarray(final_h), np.asarray(ref_h), rtol=1e-4, atol=1e-4)
    np.testing.assert_allclose(np.asarray(final_c), np.asarray(ref_c), rtol=1e-4, atol=1e-4)

    assert output.shape == (B, T, HID)
    assert final_h.shape == (1, B, HID) and final_c.shape == (1, B, HID)
    print("KERNEL_OK")
</pallas_src>

<mosaic_0001>
module attributes {stable_mosaic.version = 11 : i64} {
  func.func @_lstm_recurrence_kernel(%arg0: i32, %arg1: i32, %arg2: memref<8x8x16xf32, #tpu.memory_space<vmem>>, %arg3: memref<16x128xf32, #tpu.memory_space<vmem>>, %arg4: memref<32x128xf32, #tpu.memory_space<vmem>>, %arg5: memref<1x128xf32, #tpu.memory_space<vmem>>, %arg6: memref<8x8x32xf32, #tpu.memory_space<vmem>>, %arg7: memref<8x32xf32, #tpu.memory_space<vmem>>, %arg8: memref<8x32xf32, #tpu.memory_space<vmem>>, %arg9: memref<8x8x128xf32, #tpu.memory_space<vmem>>) attributes {dimension_semantics = [#tpu.dimension_semantics<parallel>, #tpu.dimension_semantics<arbitrary>], iteration_bounds = array<i64: 1, 2>, scalar_prefetch = 0 : i64, scratch_operands = 1 : i64, tpu.core_type = #tpu.core_type<tc>, window_params = [{transform_indices = @transform_0, window_bounds = array<i64: 8, 8, 16>}, {pipeline_mode = #tpu.pipeline_mode<synchronous>, transform_indices = @transform_1, window_bounds = array<i64: 16, 128>}, {pipeline_mode = #tpu.pipeline_mode<synchronous>, transform_indices = @transform_2, window_bounds = array<i64: 32, 128>}, {pipeline_mode = #tpu.pipeline_mode<synchronous>, transform_indices = @transform_3, window_bounds = array<i64: 1, 128>}, {transform_indices = @transform_4, window_bounds = array<i64: 8, 8, 32>}, {transform_indices = @transform_5, window_bounds = array<i64: 8, 32>}, {transform_indices = @transform_6, window_bounds = array<i64: 8, 32>}]} {
    %c0_i32 = arith.constant 0 : i32
    %0 = arith.cmpi eq, %arg1, %c0_i32 : i32
    %1 = arith.extui %0 : i1 to i32
    %c0_i32_0 = arith.constant 0 : i32
    %2 = arith.cmpi ne, %1, %c0_i32_0 : i32
    scf.if %2 {
      %cst_93 = arith.constant 0.000000e+00 : f32
      %217 = vector.broadcast %cst_93 : f32 to vector<8x32xf32>
      %c0_94 = arith.constant 0 : index
      %c0_95 = arith.constant 0 : index
      %218 = vector.load %arg7[%c0_94, %c0_95] : memref<8x32xf32, #tpu.memory_space<vmem>>, vector<8x32xf32>
      tpu.vector_store %arg7[%c0_94, %c0_95], %217 {strides = array<i32>} : memref<8x32xf32, #tpu.memory_space<vmem>>, vector<8x32xf32>,
      %cst_96 = arith.constant 0.000000e+00 : f32
      %219 = vector.broadcast %cst_96 : f32 to vector<8x32xf32>
      %c0_97 = arith.constant 0 : index
      %c0_98 = arith.constant 0 : index
      %220 = vector.load %arg8[%c0_97, %c0_98] : memref<8x32xf32, #tpu.memory_space<vmem>>, vector<8x32xf32>
      tpu.vector_store %arg8[%c0_97, %c0_98], %219 {strides = array<i32>} : memref<8x32xf32, #tpu.memory_space<vmem>>, vector<8x32xf32>,
    } else {
    }
    %c0 = arith.constant 0 : index
    %c0_1 = arith.constant 0 : index
    %c0_2 = arith.constant 0 : index
    %3 = vector.load %arg2[%c0, %c0_1, %c0_2] : memref<8x8x16xf32, #tpu.memory_space<vmem>>, vector<8x8x16xf32>
    %4 = vector.shape_cast %3 : vector<8x8x16xf32> to vector<64x16xf32>
    %c0_3 = arith.constant 0 : index
    %c0_4 = arith.constant 0 : index
    %5 = vector.load %arg3[%c0_3, %c0_4] : memref<16x128xf32, #tpu.memory_space<vmem>>, vector<16x128xf32>
    %cst = arith.constant dense<0.000000e+00> : vector<64x128xf32>
    %6 = tpu.matmul %4, %5, %cst {dimension_numbers = #tpu.dot_dimension_numbers<[1], [0], [0], [1], [0, 0, 1, 1], [], []>} : vector<64x16xf32>, vector<16x128xf32>, vector<64x128xf32> -> vector<64x128xf32>
    %c0_5 = arith.constant 0 : index
    %c0_6 = arith.constant 0 : index
    %7 = vector.load %arg5[%c0_5, %c0_6] : memref<1x128xf32, #tpu.memory_space<vmem>>, vector<1x128xf32>
    %8 = vector.broadcast %7 : vector<1x128xf32> to vector<64x128xf32>
    %9 = arith.addf %6, %8 : vector<64x128xf32>
    %10 = vector.shape_cast %9 : vector<64x128xf32> to vector<8x8x128xf32>
    %c0_7 = arith.constant 0 : index
    %c0_8 = arith.constant 0 : index
    %c0_9 = arith.constant 0 : index
    %11 = vector.load %arg9[%c0_7, %c0_8, %c0_9] : memref<8x8x128xf32, #tpu.memory_space<vmem>>, vector<8x8x128xf32>
    tpu.vector_store %arg9[%c0_7, %c0_8, %c0_9], %10 {strides = array<i32>} : memref<8x8x128xf32, #tpu.memory_space<vmem>>, vector<8x8x128xf32>,
    %c0_10 = arith.constant 0 : index
    %c0_11 = arith.constant 0 : index
    %12 = vector.load %arg4[%c0_10, %c0_11] : memref<32x128xf32, #tpu.memory_space<vmem>>, vector<32x128xf32>
    %c0_12 = arith.constant 0 : index
    %c0_13 = arith.constant 0 : index
    %13 = vector.load %arg7[%c0_12, %c0_13] : memref<8x32xf32, #tpu.memory_space<vmem>>, vector<8x32xf32>
    %c0_14 = arith.constant 0 : index
    %c0_15 = arith.constant 0 : index
    %14 = vector.load %arg8[%c0_14, %c0_15] : memref<8x32xf32, #tpu.memory_space<vmem>>, vector<8x32xf32>
    %c0_16 = arith.constant 0 : index
    %c0_17 = arith.constant 0 : index
    %c0_18 = arith.constant 0 : index
    %15 = vector.load %arg9[%c0_16, %c0_17, %c0_18] : memref<8x8x128xf32, #tpu.memory_space<vmem>>, vector<8x1x128xf32>
    %16 = vector.shape_cast %15 : vector<8x1x128xf32> to vector<8x128xf32>
    %cst_19 = arith.constant dense<0.000000e+00> : vector<8x128xf32>
    %17 = tpu.matmul %13, %12, %cst_19 {dimension_numbers = #tpu.dot_dimension_numbers<[1], [0], [0], [1], [0, 0, 1, 1], [], []>} : vector<8x32xf32>, vector<32x128xf32>, vector<8x128xf32> -> vector<8x128xf32>
    %18 = arith.addf %16, %17 : vector<8x128xf32>
    %19 = arith.negf %18 : vector<8x128xf32>
    %20 = math.exp %19 : vector<8x128xf32>
    %cst_20 = arith.constant 1.000000e+00 : f32
    %21 = vector.broadcast %cst_20 : f32 to vector<8x128xf32>
    %22 = arith.addf %21, %20 : vector<8x128xf32>
    %23 = arith.divf %21, %22 : vector<8x128xf32>
    %24 = vector.extract_strided_slice %23 {offsets = [0, 0], sizes = [8, 32], strides = [1, 1]} : vector<8x128xf32> to vector<8x32xf32>
    %25 = vector.extract_strided_slice %23 {offsets = [0, 32], sizes = [8, 32], strides = [1, 1]} : vector<8x128xf32> to vector<8x32xf32>
    %26 = vector.extract_strided_slice %23 {offsets = [0, 64], sizes = [8, 32], strides = [1, 1]} : vector<8x128xf32> to vector<8x32xf32>
    %cst_21 = arith.constant 2.000000e+00 : f32
    %27 = vector.broadcast %cst_21 : f32 to vector<8x32xf32>
    %28 = arith.mulf %27, %26 : vector<8x32xf32>
    %cst_22 = arith.constant 1.000000e+00 : f32
    %29 = vector.broadcast %cst_22 : f32 to vector<8x32xf32>
    %30 = arith.subf %28, %29 : vector<8x32xf32>
    %31 = vector.extract_strided_slice %23 {offsets = [0, 96], sizes = [8, 32], strides = [1, 1]} : vector<8x128xf32> to vector<8x32xf32>
    %32 = arith.mulf %25, %14 : vector<8x32xf32>
    %33 = arith.mulf %24, %30 : vector<8x32xf32>
    %34 = arith.addf %32, %33 : vector<8x32xf32>
    %35 = math.tanh %34 : vector<8x32xf32>
    %36 = arith.mulf %31, %35 : vector<8x32xf32>
    %c0_23 = arith.constant 0 : index
    %c0_24 = arith.constant 0 : index
    %c0_25 = arith.constant 0 : index
    %37 = vector.load %arg6[%c0_23, %c0_24, %c0_25] : memref<8x8x32xf32, #tpu.memory_space<vmem>>, vector<8x1x32xf32>
    %38 = vector.shape_cast %37 : vector<8x1x32xf32> to vector<8x32xf32>
    %39 = vector.shape_cast %36 : vector<8x32xf32> to vector<8x1x32xf32>
    tpu.vector_store %arg6[%c0_23, %c0_24, %c0_25], %39 {strides = array<i32>} : memref<8x8x32xf32, #tpu.memory_space<vmem>>, vector<8x1x32xf32>,
    %c0_26 = arith.constant 0 : index
    %c1 = arith.constant 1 : index
    %c0_27 = arith.constant 0 : index
    %40 = vector.load %arg9[%c0_26, %c1, %c0_27] : memref<8x8x128xf32, #tpu.memory_space<vmem>>, vector<8x1x128xf32>
    %41 = vector.shape_cast %40 : vector<8x1x128xf32> to vector<8x128xf32>
    %cst_28 = arith.constant dense<0.000000e+00> : vector<8x128xf32>
    %42 = tpu.matmul %36, %12, %cst_28 {dimension_numbers = #tpu.dot_dimension_numbers<[1], [0], [0], [1], [0, 0, 1, 1], [], []>} : vector<8x32xf32>, vector<32x128xf32>, vector<8x128xf32> -> vector<8x128xf32>
    %43 = arith.addf %41, %42 : vector<8x128xf32>
    %44 = arith.negf %43 : vector<8x128xf32>
    %45 = math.exp %44 : vector<8x128xf32>
    %cst_29 = arith.constant 1.000000e+00 : f32
    %46 = vector.broadcast %cst_29 : f32 to vector<8x128xf32>
    %47 = arith.addf %46, %45 : vector<8x128xf32>
    %48 = arith.divf %46, %47 : vector<8x128xf32>
    %49 = vector.extract_strided_slice %48 {offsets = [0, 0], sizes = [8, 32], strides = [1, 1]} : vector<8x128xf32> to vector<8x32xf32>
    %50 = vector.extract_strided_slice %48 {offsets = [0, 32], sizes = [8, 32], strides = [1, 1]} : vector<8x128xf32> to vector<8x32xf32>
    %51 = vector.extract_strided_slice %48 {offsets = [0, 64], sizes = [8, 32], strides = [1, 1]} : vector<8x128xf32> to vector<8x32xf32>
    %cst_30 = arith.constant 2.000000e+00 : f32
    %52 = vector.broadcast %cst_30 : f32 to vector<8x32xf32>
    %53 = arith.mulf %52, %51 : vector<8x32xf32>
    %cst_31 = arith.constant 1.000000e+00 : f32
    %54 = vector.broadcast %cst_31 : f32 to vector<8x32xf32>
    %55 = arith.subf %53, %54 : vector<8x32xf32>
    %56 = vector.extract_strided_slice %48 {offsets = [0, 96], sizes = [8, 32], strides = [1, 1]} : vector<8x128xf32> to vector<8x32xf32>
    %57 = arith.mulf %50, %34 : vector<8x32xf32>
    %58 = arith.mulf %49, %55 : vector<8x32xf32>
    %59 = arith.addf %57, %58 : vector<8x32xf32>
    %60 = math.tanh %59 : vector<8x32xf32>
    %61 = arith.mulf %56, %60 : vector<8x32xf32>
    %c0_32 = arith.constant 0 : index
    %c1_33 = arith.constant 1 : index
    %c0_34 = arith.constant 0 : index
    %62 = vector.load %arg6[%c0_32, %c1_33, %c0_34] : memref<8x8x32xf32, #tpu.memory_space<vmem>>, vector<8x1x32xf32>
    %63 = vector.shape_cast %62 : vector<8x1x32xf32> to vector<8x32xf32>
    %64 = vector.shape_cast %61 : vector<8x32xf32> to vector<8x1x32xf32>
    tpu.vector_store %arg6[%c0_32, %c1_33, %c0_34], %64 {strides = array<i32>} : memref<8x8x32xf32, #tpu.memory_space<vmem>>, vector<8x1x32xf32>,
    %c0_35 = arith.constant 0 : index
    %c2 = arith.constant 2 : index
    %c0_36 = arith.constant 0 : index
    %65 = vector.load %arg9[%c0_35, %c2, %c0_36] : memref<8x8x128xf32, #tpu.memory_space<vmem>>, vector<8x1x128xf32>
    %66 = vector.shape_cast %65 : vector<8x1x128xf32> to vector<8x128xf32>
    %cst_37 = arith.constant dense<0.000000e+00> : vector<8x128xf32>
    %67 = tpu.matmul %61, %12, %cst_37 {dimension_numbers = #tpu.dot_dimension_numbers<[1], [0], [0], [1], [0, 0, 1, 1], [], []>} : vector<8x32xf32>, vector<32x128xf32>, vector<8x128xf32> -> vector<8x128xf32>
    %68 = arith.addf %66, %67 : vector<8x128xf32>
    %69 = arith.negf %68 : vector<8x128xf32>
    %70 = math.exp %69 : vector<8x128xf32>
    %cst_38 = arith.constant 1.000000e+00 : f32
    %71 = vector.broadcast %cst_38 : f32 to vector<8x128xf32>
    %72 = arith.addf %71, %70 : vector<8x128xf32>
    %73 = arith.divf %71, %72 : vector<8x128xf32>
    %74 = vector.extract_strided_slice %73 {offsets = [0, 0], sizes = [8, 32], strides = [1, 1]} : vector<8x128xf32> to vector<8x32xf32>
    %75 = vector.extract_strided_slice %73 {offsets = [0, 32], sizes = [8, 32], strides = [1, 1]} : vector<8x128xf32> to vector<8x32xf32>
    %76 = vector.extract_strided_slice %73 {offsets = [0, 64], sizes = [8, 32], strides = [1, 1]} : vector<8x128xf32> to vector<8x32xf32>
    %cst_39 = arith.constant 2.000000e+00 : f32
    %77 = vector.broadcast %cst_39 : f32 to vector<8x32xf32>
    %78 = arith.mulf %77, %76 : vector<8x32xf32>
    %cst_40 = arith.constant 1.000000e+00 : f32
    %79 = vector.broadcast %cst_40 : f32 to vector<8x32xf32>
    %80 = arith.subf %78, %79 : vector<8x32xf32>
    %81 = vector.extract_strided_slice %73 {offsets = [0, 96], sizes = [8, 32], strides = [1, 1]} : vector<8x128xf32> to vector<8x32xf32>
    %82 = arith.mulf %75, %59 : vector<8x32xf32>
    %83 = arith.mulf %74, %80 : vector<8x32xf32>
    %84 = arith.addf %82, %83 : vector<8x32xf32>
    %85 = math.tanh %84 : vector<8x32xf32>
    %86 = arith.mulf %81, %85 : vector<8x32xf32>
    %c0_41 = arith.constant 0 : index
    %c2_42 = arith.constant 2 : index
    %c0_43 = arith.constant 0 : index
    %87 = vector.load %arg6[%c0_41, %c2_42, %c0_43] : memref<8x8x32xf32, #tpu.memory_space<vmem>>, vector<8x1x32xf32>
    %88 = vector.shape_cast %87 : vector<8x1x32xf32> to vector<8x32xf32>
    %89 = vector.shape_cast %86 : vector<8x32xf32> to vector<8x1x32xf32>
    tpu.vector_store %arg6[%c0_41, %c2_42, %c0_43], %89 {strides = array<i32>} : memref<8x8x32xf32, #tpu.memory_space<vmem>>, vector<8x1x32xf32>,
    %c0_44 = arith.constant 0 : index
    %c3 = arith.constant 3 : index
    %c0_45 = arith.constant 0 : index
    %90 = vector.load %arg9[%c0_44, %c3, %c0_45] : memref<8x8x128xf32, #tpu.memory_space<vmem>>, vector<8x1x128xf32>
    %91 = vector.shape_cast %90 : vector<8x1x128xf32> to vector<8x128xf32>
    %cst_46 = arith.constant dense<0.000000e+00> : vector<8x128xf32>
    %92 = tpu.matmul %86, %12, %cst_46 {dimension_numbers = #tpu.dot_dimension_numbers<[1], [0], [0], [1], [0, 0, 1, 1], [], []>} : vector<8x32xf32>, vector<32x128xf32>, vector<8x128xf32> -> vector<8x128xf32>
    %93 = arith.addf %91, %92 : vector<8x128xf32>
    %94 = arith.negf %93 : vector<8x128xf32>
    %95 = math.exp %94 : vector<8x128xf32>
    %cst_47 = arith.constant 1.000000e+00 : f32
    %96 = vector.broadcast %cst_47 : f32 to vector<8x128xf32>
    %97 = arith.addf %96, %95 : vector<8x128xf32>
    %98 = arith.divf %96, %97 : vector<8x128xf32>
    %99 = vector.extract_strided_slice %98 {offsets = [0, 0], sizes = [8, 32], strides = [1, 1]} : vector<8x128xf32> to vector<8x32xf32>
    %100 = vector.extract_strided_slice %98 {offsets = [0, 32], sizes = [8, 32], strides = [1, 1]} : vector<8x128xf32> to vector<8x32xf32>
    %101 = vector.extract_strided_slice %98 {offsets = [0, 64], sizes = [8, 32], strides = [1, 1]} : vector<8x128xf32> to vector<8x32xf32>
    %cst_48 = arith.constant 2.000000e+00 : f32
    %102 = vector.broadcast %cst_48 : f32 to vector<8x32xf32>
    %103 = arith.mulf %102, %101 : vector<8x32xf32>
    %cst_49 = arith.constant 1.000000e+00 : f32
    %104 = vector.broadcast %cst_49 : f32 to vector<8x32xf32>
    %105 = arith.subf %103, %104 : vector<8x32xf32>
    %106 = vector.extract_strided_slice %98 {offsets = [0, 96], sizes = [8, 32], strides = [1, 1]} : vector<8x128xf32> to vector<8x32xf32>
    %107 = arith.mulf %100, %84 : vector<8x32xf32>
    %108 = arith.mulf %99, %105 : vector<8x32xf32>
    %109 = arith.addf %107, %108 : vector<8x32xf32>
    %110 = math.tanh %109 : vector<8x32xf32>
    %111 = arith.mulf %106, %110 : vector<8x32xf32>
    %c0_50 = arith.constant 0 : index
    %c3_51 = arith.constant 3 : index
    %c0_52 = arith.constant 0 : index
    %112 = vector.load %arg6[%c0_50, %c3_51, %c0_52] : memref<8x8x32xf32, #tpu.memory_space<vmem>>, vector<8x1x32xf32>
    %113 = vector.shape_cast %112 : vector<8x1x32xf32> to vector<8x32xf32>
    %114 = vector.shape_cast %111 : vector<8x32xf32> to vector<8x1x32xf32>
    tpu.vector_store %arg6[%c0_50, %c3_51, %c0_52], %114 {strides = array<i32>} : memref<8x8x32xf32, #tpu.memory_space<vmem>>, vector<8x1x32xf32>,
    %c0_53 = arith.constant 0 : index
    %c4 = arith.constant 4 : index
    %c0_54 = arith.constant 0 : index
    %115 = vector.load %arg9[%c0_53, %c4, %c0_54] : memref<8x8x128xf32, #tpu.memory_space<vmem>>, vector<8x1x128xf32>
    %116 = vector.shape_cast %115 : vector<8x1x128xf32> to vector<8x128xf32>
    %cst_55 = arith.constant dense<0.000000e+00> : vector<8x128xf32>
    %117 = tpu.matmul %111, %12, %cst_55 {dimension_numbers = #tpu.dot_dimension_numbers<[1], [0], [0], [1], [0, 0, 1, 1], [], []>} : vector<8x32xf32>, vector<32x128xf32>, vector<8x128xf32> -> vector<8x128xf32>
    %118 = arith.addf %116, %117 : vector<8x128xf32>
    %119 = arith.negf %118 : vector<8x128xf32>
    %120 = math.exp %119 : vector<8x128xf32>
    %cst_56 = arith.constant 1.000000e+00 : f32
    %121 = vector.broadcast %cst_56 : f32 to vector<8x128xf32>
    %122 = arith.addf %121, %120 : vector<8x128xf32>
    %123 = arith.divf %121, %122 : vector<8x128xf32>
    %124 = vector.extract_strided_slice %123 {offsets = [0, 0], sizes = [8, 32], strides = [1, 1]} : vector<8x128xf32> to vector<8x32xf32>
    %125 = vector.extract_strided_slice %123 {offsets = [0, 32], sizes = [8, 32], strides = [1, 1]} : vector<8x128xf32> to vector<8x32xf32>
    %126 = vector.extract_strided_slice %123 {offsets = [0, 64], sizes = [8, 32], strides = [1, 1]} : vector<8x128xf32> to vector<8x32xf32>
    %cst_57 = arith.constant 2.000000e+00 : f32
    %127 = vector.broadcast %cst_57 : f32 to vector<8x32xf32>
    %128 = arith.mulf %127, %126 : vector<8x32xf32>
    %cst_58 = arith.constant 1.000000e+00 : f32
    %129 = vector.broadcast %cst_58 : f32 to vector<8x32xf32>
    %130 = arith.subf %128, %129 : vector<8x32xf32>
    %131 = vector.extract_strided_slice %123 {offsets = [0, 96], sizes = [8, 32], strides = [1, 1]} : vector<8x128xf32> to vector<8x32xf32>
    %132 = arith.mulf %125, %109 : vector<8x32xf32>
    %133 = arith.mulf %124, %130 : vector<8x32xf32>
    %134 = arith.addf %132, %133 : vector<8x32xf32>
    %135 = math.tanh %134 : vector<8x32xf32>
    %136 = arith.mulf %131, %135 : vector<8x32xf32>
    %c0_59 = arith.constant 0 : index
    %c4_60 = arith.constant 4 : index
    %c0_61 = arith.constant 0 : index
    %137 = vector.load %arg6[%c0_59, %c4_60, %c0_61] : memref<8x8x32xf32, #tpu.memory_space<vmem>>, vector<8x1x32xf32>
    %138 = vector.shape_cast %137 : vector<8x1x32xf32> to vector<8x32xf32>
    %139 = vector.shape_cast %136 : vector<8x32xf32> to vector<8x1x32xf32>
    tpu.vector_store %arg6[%c0_59, %c4_60, %c0_61], %139 {strides = array<i32>} : memref<8x8x32xf32, #tpu.memory_space<vmem>>, vector<8x1x32xf32>,
    %c0_62 = arith.constant 0 : index
    %c5 = arith.constant 5 : index
    %c0_63 = arith.constant 0 : index
    %140 = vector.load %arg9[%c0_62, %c5, %c0_63] : memref<8x8x128xf32, #tpu.memory_space<vmem>>, vector<8x1x128xf32>
    %141 = vector.shape_cast %140 : vector<8x1x128xf32> to vector<8x128xf32>
    %cst_64 = arith.constant dense<0.000000e+00> : vector<8x128xf32>
    %142 = tpu.matmul %136, %12, %cst_64 {dimension_numbers = #tpu.dot_dimension_numbers<[1], [0], [0], [1], [0, 0, 1, 1], [], []>} : vector<8x32xf32>, vector<32x128xf32>, vector<8x128xf32> -> vector<8x128xf32>
    %143 = arith.addf %141, %142 : vector<8x128xf32>
    %144 = arith.negf %143 : vector<8x128xf32>
    %145 = math.exp %144 : vector<8x128xf32>
    %cst_65 = arith.constant 1.000000e+00 : f32
    %146 = vector.broadcast %cst_65 : f32 to vector<8x128xf32>
    %147 = arith.addf %146, %145 : vector<8x128xf32>
    %148 = arith.divf %146, %147 : vector<8x128xf32>
    %149 = vector.extract_strided_slice %148 {offsets = [0, 0], sizes = [8, 32], strides = [1, 1]} : vector<8x128xf32> to vector<8x32xf32>
    %150 = vector.extract_strided_slice %148 {offsets = [0, 32], sizes = [8, 32], strides = [1, 1]} : vector<8x128xf32> to vector<8x32xf32>
    %151 = vector.extract_strided_slice %148 {offsets = [0, 64], sizes = [8, 32], strides = [1, 1]} : vector<8x128xf32> to vector<8x32xf32>
    %cst_66 = arith.constant 2.000000e+00 : f32
    %152 = vector.broadcast %cst_66 : f32 to vector<8x32xf32>
    %153 = arith.mulf %152, %151 : vector<8x32xf32>
    %cst_67 = arith.constant 1.000000e+00 : f32
    %154 = vector.broadcast %cst_67 : f32 to vector<8x32xf32>
    %155 = arith.subf %153, %154 : vector<8x32xf32>
    %156 = vector.extract_strided_slice %148 {offsets = [0, 96], sizes = [8, 32], strides = [1, 1]} : vector<8x128xf32> to vector<8x32xf32>
    %157 = arith.mulf %150, %134 : vector<8x32xf32>
    %158 = arith.mulf %149, %155 : vector<8x32xf32>
    %159 = arith.addf %157, %158 : vector<8x32xf32>
    %160 = math.tanh %159 : vector<8x32xf32>
    %161 = arith.mulf %156, %160 : vector<8x32xf32>
    %c0_68 = arith.constant 0 : index
    %c5_69 = arith.constant 5 : index
    %c0_70 = arith.constant 0 : index
    %162 = vector.load %arg6[%c0_68, %c5_69, %c0_70] : memref<8x8x32xf32, #tpu.memory_space<vmem>>, vector<8x1x32xf32>
    %163 = vector.shape_cast %162 : vector<8x1x32xf32> to vector<8x32xf32>
    %164 = vector.shape_cast %161 : vector<8x32xf32> to vector<8x1x32xf32>
    tpu.vector_store %arg6[%c0_68, %c5_69, %c0_70], %164 {strides = array<i32>} : memref<8x8x32xf32, #tpu.memory_space<vmem>>, vector<8x1x32xf32>,
    %c0_71 = arith.constant 0 : index
    %c6 = arith.constant 6 : index
    %c0_72 = arith.constant 0 : index
    %165 = vector.load %arg9[%c0_71, %c6, %c0_72] : memref<8x8x128xf32, #tpu.memory_space<vmem>>, vector<8x1x128xf32>
    %166 = vector.shape_cast %165 : vector<8x1x128xf32> to vector<8x128xf32>
    %cst_73 = arith.constant dense<0.000000e+00> : vector<8x128xf32>
    %167 = tpu.matmul %161, %12, %cst_73 {dimension_numbers = #tpu.dot_dimension_numbers<[1], [0], [0], [1], [0, 0, 1, 1], [], []>} : vector<8x32xf32>, vector<32x128xf32>, vector<8x128xf32> -> vector<8x128xf32>
    %168 = arith.addf %166, %167 : vector<8x128xf32>
    %169 = arith.negf %168 : vector<8x128xf32>
    %170 = math.exp %169 : vector<8x128xf32>
    %cst_74 = arith.constant 1.000000e+00 : f32
    %171 = vector.broadcast %cst_74 : f32 to vector<8x128xf32>
    %172 = arith.addf %171, %170 : vector<8x128xf32>
    %173 = arith.divf %171, %172 : vector<8x128xf32>
    %174 = vector.extract_strided_slice %173 {offsets = [0, 0], sizes = [8, 32], strides = [1, 1]} : vector<8x128xf32> to vector<8x32xf32>
    %175 = vector.extract_strided_slice %173 {offsets = [0, 32], sizes = [8, 32], strides = [1, 1]} : vector<8x128xf32> to vector<8x32xf32>
    %176 = vector.extract_strided_slice %173 {offsets = [0, 64], sizes = [8, 32], strides = [1, 1]} : vector<8x128xf32> to vector<8x32xf32>
    %cst_75 = arith.constant 2.000000e+00 : f32
    %177 = vector.broadcast %cst_75 : f32 to vector<8x32xf32>
    %178 = arith.mulf %177, %176 : vector<8x32xf32>
    %cst_76 = arith.constant 1.000000e+00 : f32
    %179 = vector.broadcast %cst_76 : f32 to vector<8x32xf32>
    %180 = arith.subf %178, %179 : vector<8x32xf32>
    %181 = vector.extract_strided_slice %173 {offsets = [0, 96], sizes = [8, 32], strides = [1, 1]} : vector<8x128xf32> to vector<8x32xf32>
    %182 = arith.mulf %175, %159 : vector<8x32xf32>
    %183 = arith.mulf %174, %180 : vector<8x32xf32>
    %184 = arith.addf %182, %183 : vector<8x32xf32>
    %185 = math.tanh %184 : vector<8x32xf32>
    %186 = arith.mulf %181, %185 : vector<8x32xf32>
    %c0_77 = arith.constant 0 : index
    %c6_78 = arith.constant 6 : index
    %c0_79 = arith.constant 0 : index
    %187 = vector.load %arg6[%c0_77, %c6_78, %c0_79] : memref<8x8x32xf32, #tpu.memory_space<vmem>>, vector<8x1x32xf32>
    %188 = vector.shape_cast %187 : vector<8x1x32xf32> to vector<8x32xf32>
    %189 = vector.shape_cast %186 : vector<8x32xf32> to vector<8x1x32xf32>
    tpu.vector_store %arg6[%c0_77, %c6_78, %c0_79], %189 {strides = array<i32>} : memref<8x8x32xf32, #tpu.memory_space<vmem>>, vector<8x1x32xf32>,
    %c0_80 = arith.constant 0 : index
    %c7 = arith.constant 7 : index
    %c0_81 = arith.constant 0 : index
    %190 = vector.load %arg9[%c0_80, %c7, %c0_81] : memref<8x8x128xf32, #tpu.memory_space<vmem>>, vector<8x1x128xf32>
    %191 = vector.shape_cast %190 : vector<8x1x128xf32> to vector<8x128xf32>
    %cst_82 = arith.constant dense<0.000000e+00> : vector<8x128xf32>
    %192 = tpu.matmul %186, %12, %cst_82 {dimension_numbers = #tpu.dot_dimension_numbers<[1], [0], [0], [1], [0, 0, 1, 1], [], []>} : vector<8x32xf32>, vector<32x128xf32>, vector<8x128xf32> -> vector<8x128xf32>
    %193 = arith.addf %191, %192 : vector<8x128xf32>
    %194 = arith.negf %193 : vector<8x128xf32>
    %195 = math.exp %194 : vector<8x128xf32>
    %cst_83 = arith.constant 1.000000e+00 : f32
    %196 = vector.broadcast %cst_83 : f32 to vector<8x128xf32>
    %197 = arith.addf %196, %195 : vector<8x128xf32>
    %198 = arith.divf %196, %197 : vector<8x128xf32>
    %199 = vector.extract_strided_slice %198 {offsets = [0, 0], sizes = [8, 32], strides = [1, 1]} : vector<8x128xf32> to vector<8x32xf32>
    %200 = vector.extract_strided_slice %198 {offsets = [0, 32], sizes = [8, 32], strides = [1, 1]} : vector<8x128xf32> to vector<8x32xf32>
    %201 = vector.extract_strided_slice %198 {offsets = [0, 64], sizes = [8, 32], strides = [1, 1]} : vector<8x128xf32> to vector<8x32xf32>
    %cst_84 = arith.constant 2.000000e+00 : f32
    %202 = vector.broadcast %cst_84 : f32 to vector<8x32xf32>
    %203 = arith.mulf %202, %201 : vector<8x32xf32>
    %cst_85 = arith.constant 1.000000e+00 : f32
    %204 = vector.broadcast %cst_85 : f32 to vector<8x32xf32>
    %205 = arith.subf %203, %204 : vector<8x32xf32>
    %206 = vector.extract_strided_slice %198 {offsets = [0, 96], sizes = [8, 32], strides = [1, 1]} : vector<8x128xf32> to vector<8x32xf32>
    %207 = arith.mulf %200, %184 : vector<8x32xf32>
    %208 = arith.mulf %199, %205 : vector<8x32xf32>
    %209 = arith.addf %207, %208 : vector<8x32xf32>
    %210 = math.tanh %209 : vector<8x32xf32>
    %211 = arith.mulf %206, %210 : vector<8x32xf32>
    %c0_86 = arith.constant 0 : index
    %c7_87 = arith.constant 7 : index
    %c0_88 = arith.constant 0 : index
    %212 = vector.load %arg6[%c0_86, %c7_87, %c0_88] : memref<8x8x32xf32, #tpu.memory_space<vmem>>, vector<8x1x32xf32>
    %213 = vector.shape_cast %212 : vector<8x1x32xf32> to vector<8x32xf32>
    %214 = vector.shape_cast %211 : vector<8x32xf32> to vector<8x1x32xf32>
    tpu.vector_store %arg6[%c0_86, %c7_87, %c0_88], %214 {strides = array<i32>} : memref<8x8x32xf32, #tpu.memory_space<vmem>>, vector<8x1x32xf32>,
    %c0_89 = arith.constant 0 : index
    %c0_90 = arith.constant 0 : index
    %215 = vector.load %arg7[%c0_89, %c0_90] : memref<8x32xf32, #tpu.memory_space<vmem>>, vector<8x32xf32>
    tpu.vector_store %arg7[%c0_89, %c0_90], %211 {strides = array<i32>} : memref<8x32xf32, #tpu.memory_space<vmem>>, vector<8x32xf32>,
    %c0_91 = arith.constant 0 : index
    %c0_92 = arith.constant 0 : index
    %216 = vector.load %arg8[%c0_91, %c0_92] : memref<8x32xf32, #tpu.memory_space<vmem>>, vector<8x32xf32>
    tpu.vector_store %arg8[%c0_91, %c0_92], %209 {strides = array<i32>} : memref<8x32xf32, #tpu.memory_space<vmem>>, vector<8x32xf32>,
    return
  }
  func.func @transform_0(%arg0: i32, %arg1: i32) -> (i32, i32, i32) {
    %c0_i32 = arith.constant 0 : i32
    %c0_i32_0 = arith.constant 0 : i32
    return %arg0, %arg1, %c0_i32 : i32, i32, i32
  }
  func.func @transform_1(%arg0: i32, %arg1: i32) -> (i32, i32) {
    %c0_i32 = arith.constant 0 : i32
    %c0_i32_0 = arith.constant 0 : i32
    %c0_i32_1 = arith.constant 0 : i32
    return %c0_i32, %c0_i32_0 : i32, i32
  }
  func.func @transform_2(%arg0: i32, %arg1: i32) -> (i32, i32) {
    %c0_i32 = arith.constant 0 : i32
    %c0_i32_0 = arith.constant 0 : i32
    %c0_i32_1 = arith.constant 0 : i32
    return %c0_i32, %c0_i32_0 : i32, i32
  }
  func.func @transform_3(%arg0: i32, %arg1: i32) -> (i32, i32) {
    %c0_i32 = arith.constant 0 : i32
    %c0_i32_0 = arith.constant 0 : i32
    %c0_i32_1 = arith.constant 0 : i32
    return %c0_i32, %c0_i32_0 : i32, i32
  }
  func.func @transform_4(%arg0: i32, %arg1: i32) -> (i32, i32, i32) {
    %c0_i32 = arith.constant 0 : i32
    %c0_i32_0 = arith.constant 0 : i32
    return %arg0, %arg1, %c0_i32 : i32, i32, i32
  }
  func.func @transform_5(%arg0: i32, %arg1: i32) -> (i32, i32) {
    %c0_i32 = arith.constant 0 : i32
    %c0_i32_0 = arith.constant 0 : i32
    return %arg0, %c0_i32 : i32, i32
  }
  func.func @transform_6(%arg0: i32, %arg1: i32) -> (i32, i32) {
    %c0_i32 = arith.constant 0 : i32
    %c0_i32_0 = arith.constant 0 : i32
    return %arg0, %c0_i32 : i32, i32
  }
}

</mosaic_0001>

<bundles_post_ra>
// kernel: text_encoder_forward.1
= control target key start
LH: loop header
LB: loop body
LE: loop exit
PB: predicated region body
PF: predicated region fallthrough
CT: control target
= control target key end

     0   :  { %s4501_s21 = smov 0   ;;  %s4503_s22 = smov 0   ;;  %s6065_s0 = inlined_call_operand.vmem [shape: f32[8,16,16], index: 0, kind: input, shape index: {}]   ;;  %s6066_s1 = inlined_call_operand.vmem [shape: f32[16,128], index: 1, kind: input, shape index: {}]   ;;  %s6067_s2 = inlined_call_operand.vmem [shape: f32[32,128], index: 2, kind: input, shape index: {}]   ;;  %s6068_s3 = inlined_call_operand.vmem [shape: f32[1,128], index: 3, kind: input, shape index: {}]   ;;  %s6069_s4 = inlined_call_operand.vmem [shape: f32[8,16,32], index: 4, kind: output, shape index: {0}]   ;;  %s6070_s5 = inlined_call_operand.vmem [shape: f32[8,32], index: 5, kind: output, shape index: {1}]   ;;  %s6071_s6 = inlined_call_operand.vmem [shape: f32[8,32], index: 6, kind: output, shape index: {2}]  }
   0x1   :  { %s4505_s23 = smov 0   ;;  %s4507_s24 = smov 0  }
   0x2   :  { %s4509_s25 = smov 0  }
   0x3 LB: > { %s26_s26 = sadd.s32 1, %s4454_s24  ;;  %s3667_s27 = sadd.s32 4294967295, %s4458_s25   ;;  %s4458_s25 = sphi %s4509_s25, %s17_s25   ;;  %s4454_s24 = sphi %s4507_s24, %s6172_s24   ;;  %s4450_s23 = sphi %s4505_s23, %s6171_s23   ;;  %s4446_s22 = sphi %s4503_s22, %s6170_s22   ;;  %s4442_s21 = sphi %s4501_s21, %s6169_s21  }
   0x4   : > { %p27_p0 = scmp.ge.s32.totalorder %s26_s26, 2  ;;  %p45_p1 = scmp.ne.s32.totalorder %s4446_s22, %s4442_s21 }
   0x5   : > { %p46_p2 = scmp.eq.s32.totalorder %s4458_s25, 0  ;;  %p140_p4 = scmp.eq.s32.totalorder %s3667_s27, 1 }
   0x6   : > { %s6174_s26 = smov (%p27_p0, %s26_s26), 0  ;;  %s38_s29 = sadd.s32 1, %s4446_s22 }
   0x7   : > { %p47_p3 = por %p46_p2, %p45_p1  ;;  %s34_s28 = ssub.s32 %s4454_s24, %s6174_s26 }
   0x8   : > { %p36_p5 = scmp.eq.s32.totalorder %s34_s28, 0  ;;  %p4536_p6 = por %p140_p4, %p45_p1 }
   0x9   : > { %p3670_p7 = scmp.ge.s32.totalorder %s4458_s25, 2 }
   0xa   : > { %s4541_s7 = scalar_select %p36_p5, %s4446_s22, %s38_s29  }
   0xb   : > { %223 = sbr.rel (%p3670_p7) target bundleno = 24 (0x18), region = 28 }
  0x10   : > { %226 = sbr.rel (!%p47_p3) target bundleno = 24 (0x18), region = 32  ;;  %s228_s8 = sand.u32 (%p47_p3), 1, %s4446_s22  }
  0x11   : > { %s3672_s9 = sshll.u32 (%p47_p3), %s4454_s24, 3  ;;  %s3671_s10 = sshll.u32 (%p47_p3), %s228_s8, 6 }
  0x12   : > { %s235_s13 = scalar_lea.vmem (%p47_p3), %s6065_s0, %s3672_s9  ;;  %s230_s14 = scalar_lea.vmem (%p47_p3), [#allocation3], %s3671_s10 }
  0x13   : > { %v278_v0 = vld [vmem:[%s235_s13] sm:$0xff] (%p47_p3)  ;;  %v280_v1 = vld [vmem:[%s235_s13 + $0x10] sm:$0xff] (%p47_p3) }
  0x14   : > { %v282_v2 = vld [vmem:[%s235_s13 + $0x20] sm:$0xff] (%p47_p3)  ;;  %279 = vst [vmem:[%s230_s14] sm:$0xff] (%p47_p3), %v278_v0  ;;  %281 = vst [vmem:[%s230_s14 + $0x8] sm:$0xff] (%p47_p3), %v280_v1  ;;  %v284_v3 = vld [vmem:[%s235_s13 + $0x30] sm:$0xff] (%p47_p3) }
  0x15   : > { %283 = vst [vmem:[%s230_s14 + $0x10] sm:$0xff] %v282_v2  ;;  %v286_v4 = vld [vmem:[%s235_s13 + $0x40] sm:$0xff]  ;;  %v288_v5 = vld [vmem:[%s235_s13 + $0x50] sm:$0xff]  ;;  %285 = vst [vmem:[%s230_s14 + $0x18] sm:$0xff] %v284_v3 }
  0x16   : > { %287 = vst [vmem:[%s230_s14 + $0x20] sm:$0xff] %v286_v4  ;;  %289 = vst [vmem:[%s230_s14 + $0x28] sm:$0xff] %v288_v5  ;;  %v290_v6 = vld [vmem:[%s235_s13 + $0x60] sm:$0xff]  ;;  %v292_v7 = vld [vmem:[%s235_s13 + $0x70] sm:$0xff] }
  0x17   : > { %291 = vst [vmem:[%s230_s14 + $0x30] sm:$0xff] %v290_v6  ;;  %293 = vst [vmem:[%s230_s14 + $0x38] sm:$0xff] %v292_v7 }
  0x18 PF: > { %p3673_p8 = scmp.ge.s32.totalorder %s4458_s25, 1  ;;  %p298_p9 = scmp.lt.s32.totalorder %s4458_s25, 3 }
  0x1a   : > { %p299_p10 = pnand %p3673_p8, %p298_p9 }
  0x1c   : > { %302 = sbr.rel (%p299_p10) target bundleno = 5903 (0x170f), region = 70 }
  0x21   : > { %s305_s15 = sand.u32 1, %s4442_s21   ;;  %p3676_p11 = scmp.ne.s32.totalorder %s4450_s23, 0 }
  0x22   : > { %s3674_s16 = sshll.u32 %s305_s15, 6 }
  0x23   : > { %s4552_s17 = scalar_lea.vmem [#allocation3], %s3674_s16  ;;  %s4554_s18 = scalar_lea.vmem [#allocation4], %s3674_s16 }
  0x24   : > { %354 = sbr.rel (%p3676_p11) target bundleno = 43 (0x2b), region = 78 }
  0x29   : > { %vm355_vm0 = vcmask 261120   ;;  %v4460_v8 = vmov 0.0  }
  0x2a   : > { %356 = vst.msk [vmem:[%s6070_s5] sm:$0xff] %vm355_vm0, %v4460_v8  ;;  %357 = vst.msk [vmem:[%s6071_s6] sm:$0xff] %vm355_vm0, %v4460_v8 }
  0x2b PF: > { %v367_v9 = vld [vmem:[%s6066_s1 + $0x8] sm:$0xff]  ;;  %v366_v10 = vld [vmem:[%s6066_s1] sm:$0xff]  ;;  %vm375_vm1 = vcmask 130048   ;;  %v4574_v12 = vld [vmem:[%s6067_s2 + $0x18] sm:$0xff]  ;;  %v6072_v14 = vmov 0.0   ;;  %vm4462_vm2 = vmmov 0  }
  0x2c   : > { %v358_v11 = vld [vmem:[%s4552_s17] sm:$0xff]  ;;  %3878 = vmatprep.subr.mxu0 %v367_v9  ;;  %v359_v13 = vld [vmem:[%s4552_s17 + $0x8] sm:$0xff]  ;;  %3894 = vmatprep.subr.mxu1 %v6072_v14  ;;  %v4581_v15 = vld [vmem:[%s6067_s2 + $0x10] sm:$0xff]  ;;  %vm527_vm3 = vcmask 261120   ;;  %s4463_s21 = smov 64   ;;  %s4464_s9 = smov 32  }
  0x2d   : > { %3882 = vmatprep.mubr.msk.f32.mxu0 %vm375_vm1, %v358_v11  ;;  %3879 = vmatpush3.msra.mxu0 %v367_v9  ;;  %v360_v16 = vld [vmem:[%s4552_s17 + $0x10] sm:$0xff]  ;;  %v4589_v17 = vld [vmem:[%s6067_s2 + $0x8] sm:$0xff]  ;;  %v361_v18 = vld [vmem:[%s4552_s17 + $0x18] sm:$0xff]  ;;  %vm907_vm4 = vcmask 1041409   ;;  %vm910_vm5 = vcmask 1042434   ;;  %vm913_vm6 = vcmask 1043459  }
  0x2e   : > { %3880 = vmatprep.subr.mxu0 %v366_v10  ;;  %3895 = vmatpush3.msra.mxu1 %v4574_v12  ;;  %v4599_v19 = vld [vmem:[%s6067_s2] sm:$0xff]  ;;  %v363_v22 = vld [vmem:[%s4552_s17 + $0x28] sm:$0xff]  ;;  %v364_v23 = vld [vmem:[%s4552_s17 + $0x30] sm:$0xff]  ;;  %vm916_vm7 = vcmask 1044484   ;;  %vm919_vm8 = vcmask 1045509   ;;  %vm922_vm9 = vcmask 1046534  }
  0x2f   : > { %3881 = vmatpush3.msra.mxu0 %v366_v10  ;;  %3896 = vmatprep.subr.mxu1 %v6072_v14  ;;  %v362_v20 = vld [vmem:[%s4552_s17 + $0x20] sm:$0xff]  ;;  %v365_v24 = vld [vmem:[%s4552_s17 + $0x38] sm:$0xff]  ;;  %vm925_vm10 = vcmask 1047559   ;;  %vm889_vm11 = vcmask 253952   ;;  %s3823_s15 = sshll.u32 (%p4536_p6), %s4450_s23, 3 }
  0x30   : > { %3883 = vmatmul.mubr.msk.f32.vlgmr.msra.gmra.mxu0 %vm375_vm1, %v359_v13  ;;  %3897 = vmatpush3.msra.mxu1 %v4581_v15  ;;  %v3677_v25 = vld [vmem:[%s6068_s3] ss:$0 sm:$0xff]  ;;  %s3488_s20 = scalar_lea.vmem (%p4536_p6), %s6069_s4, %s3823_s15 }
  0x31   : > { %3885 = vmatprep.mubr.msk.f32.mxu0 %vm375_vm1, %v360_v16  ;;  %3898 = vmatprep.subr.mxu1 %v6072_v14  ;;  %v517_v21 = vld [vmem:[%s6070_s5] sm:$0xff] }
  0x32   : > { %3899 = vmatpush3.msra.mxu1 %v4589_v17  ;;  %3902 = vmatprep.mubr.msk.f32.mxu1 %vm4462_vm2, %v6072_v14 }
  0x33   : > { %3900 = vmatprep.subr.mxu1 %v6072_v14  ;;  %3916 = vmatprep.subr.mxu0 %v6072_v14 }
  0x34   : > { %3886 = vmatmul.mubr.msk.f32.gmra.mxu0 %vm375_vm1, %v361_v18  ;;  %3901 = vmatpush3.msra.mxu1 %v4599_v19 }
  0x35   : > { %3888 = vmatprep.mubr.msk.f32.mxu0 %vm375_vm1, %v362_v20  ;;  %3903 = vmatmul.mubr.msk.f32.vlgmr.msra.gmra.mxu1 %vm527_vm3, %v517_v21 }
  0x36   : > { %3905 = vmatprep.subr.mxu1 %v6072_v14  ;;  %3913 = vmatprep.mubr.msk.f32.mxu1 %vm4462_vm2, %v6072_v14 }
  0x37   : > { %3906 = vmatpush3.msra.mxu1 %v4574_v12  ;;  %3917 = vmatpush3.msra.mxu0 %v4574_v12 }
  0x38   : > { %3889 = vmatmul.mubr.msk.f32.gmra.mxu0 %vm375_vm1, %v363_v22  ;;  %3907 = vmatprep.subr.mxu1 %v6072_v14 }
  0x39   : > { %3891 = vmatprep.mubr.msk.f32.mxu0 %vm375_vm1, %v364_v23  ;;  %3908 = vmatpush3.msra.mxu1 %v4581_v15 }
  0x3a   : > { %3909 = vmatprep.subr.mxu1 %v6072_v14  ;;  %3918 = vmatprep.subr.mxu0 %v6072_v14 }
  0x3b   : > { %3910 = vmatpush3.msra.mxu1 %v4589_v17  ;;  %3919 = vmatpush3.msra.mxu0 %v4581_v15 }
  0x3c   : > { %3892 = vmatmul.mubr.msk.f32.gmra.mxu0 %vm375_vm1, %v365_v24  ;;  %3911 = vmatprep.subr.mxu1 %v6072_v14 }
  0x3d   : > { %3912 = vmatpush3.msra.mxu1 %v4599_v19  ;;  %3920 = vmatprep.subr.mxu0 %v6072_v14 }
  0x3e   : > { %3921 = vmatpush3.msra.mxu0 %v4589_v17  ;;  %3924 = vmatprep.mubr.msk.f32.mxu0 %vm4462_vm2, %v6072_v14 }
  0x3f   : > { %3922 = vmatprep.subr.mxu0 %v6072_v14  ;;  %3927 = vmatprep.subr.mxu1 %v6072_v14 }
  0x40   : > { %3923 = vmatpush3.msra.mxu0 %v4599_v19 }
  0x41   : > { %3938 = vmatprep.subr.mxu0 %v6072_v14 }
  0xf0   : > { %v3884_v26 = vpop.f32.mrf.mxu0 }
  0xf1   : > { %v472_v27 = vadd.f32 %v3884_v26, %v3677_v25 }
  0xf2   : > { %v466_v28 = vpop.f32.mrf.mxu0 }
  0xf3   : > { %506 = vst [vmem:[#allocation2 + $0x8] sm:$0xff] %v472_v27  ;;  %v467_v29 = vadd.f32 %v3677_v25, %v466_v28 }
  0xf4   : > { %v3887_v30 = vpop.f32.mrf.mxu0 }
  0xf5   : > { %505 = vst [vmem:[#allocation2] sm:$0xff] %v467_v29  ;;  %v482_v31 = vadd.f32 %v3887_v30, %v3677_v25  ;;  %v597_v32 = vpop.f32.mrf.mxu1 }
  0xf6   : > { %v476_v33 = vpop.f32.mrf.mxu0  ;;  %v602_v35 = vrot.slane %v597_v32, 1  ;;  %v604_v41 = vrot.slane %v597_v32, 3  ;;  %v603_v50 = vrot.slane %v597_v32, 2  ;;  %v606_v56 = vrot.slane %v597_v32, 5 }
  0xf7   : > { %508 = vst [vmem:[#allocation2 + $0x18] sm:$0xff] %v482_v31  ;;  %v477_v34 = vadd.f32 %v3677_v25, %v476_v33  ;;  %v3904_v36 = vpop.f32.mrf.mxu1  ;;  %v605_v60 = vrot.slane %v597_v32, 4  ;;  %v608_v0 = vrot.slane %v597_v32, 7  ;;  %v607_v4 = vrot.slane %v597_v32, 6 }
  0xf8   : > { %v3890_v37 = vpop.f32.mrf.mxu0 }
  0xf9   : > { %507 = vst [vmem:[#allocation2 + $0x10] sm:$0xff] %v477_v34  ;;  %v492_v38 = vadd.f32 %v3890_v37, %v3677_v25 }
  0xfa   : > { %v520_v39 = vld [vmem:[#allocation2 + $0x8] sm:$0x1]  ;;  %v486_v40 = vpop.f32.mrf.mxu0 }
  0xfb   : > { %510 = vst [vmem:[#allocation2 + $0x28] sm:$0xff] %v492_v38  ;;  %v618_v42 = vadd.f32 %v602_v35, %v520_v39  ;;  %v487_v43 = vadd.f32 %v3677_v25, %v486_v40 }
  0xfc   : > { %v519_v44 = vld [vmem:[#allocation2] sm:$0x1]  ;;  %v3893_v45 = vpop.f32.mrf.mxu0 }
  0xfd   : > { %v617_v46 = vadd.f32 %v597_v32, %v519_v44  ;;  %v3688_v47 = vmul.f32 -1.442695, %v618_v42  ;;  %509 = vst [vmem:[#allocation2 + $0x20] sm:$0xff] %v487_v43  ;;  %v502_v48 = vadd.f32 %v3893_v45, %v3677_v25 }
  0xfe   : > { %v522_v49 = vld [vmem:[#allocation2 + $0x18] sm:$0x1]  ;;  %v496_v51 = vpop.f32.mrf.mxu0 }
  0xff   : > { %v620_v52 = vadd.f32 %v604_v41, %v522_v49  ;;  %v3687_v53 = vmul.f32 -1.442695, %v617_v46  ;;  %4028 = vpow2.f32 %v3688_v47  ;;  %512 = vst [vmem:[#allocation2 + $0x38] sm:$0xff] %v502_v48  ;;  %v497_v54 = vadd.f32 %v3677_v25, %v496_v51 }
 0x100   : > { %v521_v55 = vld [vmem:[#allocation2 + $0x10] sm:$0x1] }
 0x101   : > { %v619_v57 = vadd.f32 %v603_v50, %v521_v55  ;;  %4030 = vpow2.f32 %v3687_v53  ;;  %v3690_v58 = vmul.f32 -1.442695, %v620_v52  ;;  %511 = vst [vmem:[#allocation2 + $0x30] sm:$0xff] %v497_v54  ;;  %v518_v54 = vld [vmem:[%s6071_s6] sm:$0xff] }
 0x102   : > { %v524_v59 = vld [vmem:[#allocation2 + $0x28] sm:$0x1] }
 0x103   : > { %v622_v61 = vadd.f32 %v606_v56, %v524_v59  ;;  %v3689_v62 = vmul.f32 -1.442695, %v619_v57  ;;  %4032 = vpow2.f32 %v3690_v58  ;;  %v690_v57 = vrot.slane %v518_v54, 1 }
 0x104   : > { %v523_v63 = vld [vmem:[#allocation2 + $0x20] sm:$0x1]  ;;  %v691_v58 = vrot.slane %v518_v54, 2  ;;  %v692_v59 = vrot.slane %v518_v54, 3 }
 0x105   : > { %4034 = vpow2.f32 %v3689_v62  ;;  %v3692_v1 = vmul.f32 -1.442695, %v622_v61  ;;  %v621_v2 = vadd.f32 %v605_v60, %v523_v63  ;;  %v695_v60 = vrot.slane %v518_v54, 6 }
 0x106   : > { %v526_v3 = vld [vmem:[#allocation2 + $0x38] sm:$0x1]  ;;  %v693_v61 = vrot.slane %v518_v54, 4  ;;  %v696_v62 = vrot.slane %v518_v54, 7  ;;  %v694_v63 = vrot.slane %v518_v54, 5 }
 0x107   : > { %4036 = vpow2.f32 %v3692_v1  ;;  %v3691_v5 = vmul.f32 -1.442695, %v621_v2  ;;  %v624_v6 = vadd.f32 %v608_v0, %v526_v3 }
 0x108   : > { %v525_v7 = vld [vmem:[#allocation2 + $0x30] sm:$0x1] }
 0x109   : > { %4038 = vpow2.f32 %v3691_v5  ;;  %v3694_v8 = vmul.f32 -1.442695, %v624_v6  ;;  %v623_v9 = vadd.f32 %v607_v4, %v525_v7 }
 0x10b   : > { %4040 = vpow2.f32 %v3694_v8  ;;  %v3693_v10 = vmul.f32 -1.442695, %v623_v9 }
 0x10c   : > { %v4029_v11 = vpop.eup %4028 }
 0x10d   : > { %v650_v13 = vadd.f32 1.0, %v4029_v11  ;;  %4042 = vpow2.f32 %v3693_v10 }
 0x10e   : > { %v4031_v16 = vpop.eup %4030 }
 0x10f   : > { %v649_v18 = vadd.f32 1.0, %v4031_v16  ;;  %4044 = vrcp.f32 %v650_v13 }
 0x110   : > { %v4033_v20 = vpop.eup %4032 }
 0x111   : > { %v652_v21 = vadd.f32 1.0, %v4033_v20  ;;  %4046 = vrcp.f32 %v649_v18 }
 0x112   : > { %v4035_v22 = vpop.eup %4034 }
 0x113   : > { %v651_v23 = vadd.f32 1.0, %v4035_v22  ;;  %4048 = vrcp.f32 %v652_v21 }
 0x114   : > { %v4037_v24 = vpop.eup %4036 }
 0x115   : > { %v654_v25 = vadd.f32 1.0, %v4037_v24  ;;  %4050 = vrcp.f32 %v651_v23 }
 0x116   : > { %v4039_v26 = vpop.eup %4038 }
 0x117   : > { %4052 = vrcp.f32 %v654_v25  ;;  %v653_v27 = vadd.f32 1.0, %v4039_v26 }
 0x118   : > { %v4041_v28 = vpop.eup %4040 }
 0x119   : > { %4054 = vrcp.f32 %v653_v27  ;;  %v656_v29 = vadd.f32 1.0, %v4041_v28 }
 0x11a   : > { %v4043_v30 = vpop.eup %4042 }
 0x11b   : > { %4056 = vrcp.f32 %v656_v29  ;;  %v655_v31 = vadd.f32 1.0, %v4043_v30 }
 0x11c   : > { %v4644_v32 = vpop.eup %4044 }
 0x11d   : > { %4058 = vrcp.f32 %v655_v31  ;;  %v674_v33 = vmul.f32 2.0, %v4644_v32 }
 0x11e   : > { %v4647_v34 = vpop.eup %4046 }
 0x11f   : > { %v3696_v35 = vadd.f32 -1.0, %v674_v33  ;;  %v673_v36 = vmul.f32 2.0, %v4647_v34 }
 0x120   : > { %v4650_v37 = vpop.eup %4048 }
 0x121   : > { %739 = vrot.lane.b32.xlu0 %v3696_v35, %s4463_s21  ;;  %v3695_v38 = vadd.f32 -1.0, %v673_v36  ;;  %v676_v39 = vmul.f32 2.0, %v4650_v37 }
 0x122   : > { %v4654_v40 = vpop.eup %4050 }
 0x123   : > { %737 = vrot.lane.b32.xlu1 %v3695_v38, %s4463_s21  ;;  %v675_v41 = vmul.f32 2.0, %v4654_v40  ;;  %v3698_v44 = vadd.f32 -1.0, %v676_v39 }
 0x124   : > { %v4658_v42 = vpop.eup %4052 }
 0x125   : > { %v3697_v43 = vadd.f32 -1.0, %v675_v41  ;;  %v678_v45 = vmul.f32 2.0, %v4658_v42 }
 0x126   : > { %v4661_v46 = vpop.eup %4054 }
 0x127   : > { %741 = vrot.lane.b32.xlu0 %v3697_v43, %s4463_s21  ;;  %743 = vrot.lane.b32.xlu1 %v3698_v44, %s4463_s21  ;;  %v677_v47 = vmul.f32 2.0, %v4661_v46  ;;  %v3700_v50 = vadd.f32 -1.0, %v678_v45 }
 0x128   : > { %v4666_v48 = vpop.eup %4056 }
 0x129   : > { %v3699_v49 = vadd.f32 -1.0, %v677_v47  ;;  %v680_v51 = vmul.f32 2.0, %v4666_v48 }
 0x12a   : > { %v4669_v52 = vpop.eup %4058 }
 0x12b   : > { %745 = vrot.lane.b32.xlu0 %v3699_v49, %s4463_s21  ;;  %747 = vrot.lane.b32.xlu1 %v3700_v50, %s4463_s21  ;;  %v679_v53 = vmul.f32 2.0, %v4669_v52  ;;  %v3702_v56 = vadd.f32 -1.0, %v680_v51 }
 0x12d   : > { %v3701_v55 = vadd.f32 -1.0, %v679_v53 }
 0x12f   : > { %749 = vrot.lane.b32.xlu0 %v3701_v55, %s4463_s21  ;;  %751 = vrot.lane.b32.xlu1 %v3702_v56, %s4463_s21 }
 0x133   : > { %699 = vrot.lane.b32.xlu0 %v690_v57, %s4464_s9  ;;  %701 = vrot.lane.b32.xlu1 %v691_v58, %s4464_s9 }
 0x137   : > { %697 = vrot.lane.b32.xlu0 %v518_v54, %s4464_s9  ;;  %703 = vrot.lane.b32.xlu1 %v692_v59, %s4464_s9 }
 0x13b   : > { %709 = vrot.lane.b32.xlu0 %v695_v60, %s4464_s9  ;;  %705 = vrot.lane.b32.xlu1 %v693_v61, %s4464_s9 }
 0x13f   : > { %711 = vrot.lane.b32.xlu0 %v696_v62, %s4464_s9  ;;  %707 = vrot.lane.b32.xlu1 %v694_v63, %s4464_s9 }
 0x193   : > { %v740_v0 = vpop.permute.xlu0 %739 }
 0x194   : > { %v762_v1 = vmul.f32 %v4644_v32, %v740_v0 }
 0x195   : > { %v738_v2 = vpop.permute.xlu1 %737 }
 0x196   : > { %779 = vrot.lane.b32.xlu0 %v762_v1, %s4464_s9  ;;  %v761_v3 = vmul.f32 %v4647_v34, %v738_v2 }
 0x199   : > { %v742_v4 = vpop.permute.xlu0 %741  ;;  %v744_v5 = vpop.permute.xlu1 %743 }
 0x19a   : > { %v764_v6 = vmul.f32 %v4650_v37, %v744_v5  ;;  %777 = vrot.lane.b32.xlu0 %v761_v3, %s4464_s9  ;;  %v763_v7 = vmul.f32 %v4654_v40, %v742_v4 }
 0x19c   : > { %783 = vrot.lane.b32.xlu1 %v764_v6, %s4464_s9 }
 0x19d   : > { %v746_v8 = vpop.permute.xlu0 %745  ;;  %v748_v9 = vpop.permute.xlu1 %747 }
 0x19e   : > { %v766_v10 = vmul.f32 %v4658_v42, %v748_v9  ;;  %781 = vrot.lane.b32.xlu0 %v763_v7, %s4464_s9  ;;  %v765_v13 = vmul.f32 %v4661_v46, %v746_v8 }
 0x1a0   : > { %787 = vrot.lane.b32.xlu1 %v766_v10, %s4464_s9 }
 0x1a1   : > { %v750_v11 = vpop.permute.xlu0 %749  ;;  %v752_v18 = vpop.permute.xlu1 %751 }
 0x1a2   : > { %v767_v16 = vmul.f32 %v4669_v52, %v750_v11  ;;  %v768_v20 = vmul.f32 %v4666_v48, %v752_v18 }
 0x1a4   : > { %789 = vrot.lane.b32.xlu0 %v767_v16, %s4464_s9  ;;  %785 = vrot.lane.b32.xlu1 %v765_v13, %s4464_s9 }
 0x1a5   : > { %v700_v21 = vpop.permute.xlu0 %699  ;;  %v702_v22 = vpop.permute.xlu1 %701 }
 0x1a6   : > { %v722_v28 = vmul.f32 %v4644_v32, %v700_v21  ;;  %v723_v41 = vmul.f32 %v4654_v40, %v702_v22 }
 0x1a8   : > { %791 = vrot.lane.b32.xlu1 %v768_v20, %s4464_s9 }
 0x1a9   : > { %v698_v23 = vpop.permute.xlu0 %697  ;;  %v704_v24 = vpop.permute.xlu1 %703 }
 0x1aa   : > { %v721_v33 = vmul.f32 %v4647_v34, %v698_v23  ;;  %v724_v36 = vmul.f32 %v4650_v37, %v704_v24 }
 0x1ad   : > { %v710_v25 = vpop.permute.xlu0 %709  ;;  %v706_v26 = vpop.permute.xlu1 %705 }
 0x1ae   : > { %v725_v50 = vmul.f32 %v4661_v46, %v706_v26  ;;  %v727_v57 = vmul.f32 %v4669_v52, %v710_v25 }
 0x1b1   : > { %v712_v27 = vpop.permute.xlu0 %711  ;;  %v708_v31 = vpop.permute.xlu1 %707 }
 0x1b2   : > { %v726_v49 = vmul.f32 %v4658_v42, %v708_v31  ;;  %v728_v58 = vmul.f32 %v4666_v48, %v712_v27 }
 0x208   : > { %v780_v29 = vpop.permute.xlu0 %779 }
 0x209   : > { %v4704_v30 = vadd.f32 %v780_v29, %v722_v28 }
 0x20b   : > { %4060 = vtanh.f32 %v4704_v30 }
 0x20c   : > { %v778_v35 = vpop.permute.xlu0 %777 }
 0x20d   : > { %v4709_v38 = vadd.f32 %v778_v35, %v721_v33 }
 0x20e   : > { %v784_v39 = vpop.permute.xlu1 %783 }
 0x20f   : > { %4062 = vtanh.f32 %v4709_v38  ;;  %v4713_v43 = vadd.f32 %v784_v39, %v724_v36  ;;  %v899_v39 = vld [vmem:[#allocation2 + $0x9] sm:$0x1] }
 0x210   : > { %v782_v44 = vpop.permute.xlu0 %781 }
 0x211   : > { %4064 = vtanh.f32 %v4713_v43  ;;  %v4716_v45 = vadd.f32 %v782_v44, %v723_v41  ;;  %v900_v44 = vld [vmem:[#allocation2 + $0x11] sm:$0x1] }
 0x212   : > { %v788_v47 = vpop.permute.xlu1 %787 }
 0x213   : > { %4066 = vtanh.f32 %v4716_v45  ;;  %v4721_v51 = vadd.f32 %v788_v47, %v726_v49 }
 0x215   : > { %4068 = vtanh.f32 %v4721_v51 }
 0x216   : > { %v786_v53 = vpop.permute.xlu1 %785  ;;  %v790_v54 = vpop.permute.xlu0 %789 }
 0x217   : > { %v4723_v55 = vadd.f32 %v786_v53, %v725_v50  ;;  %v4729_v59 = vadd.f32 %v790_v54, %v727_v57 }
 0x218   : > { %v4061_v56 = vpop.eup %4060 }
 0x219   : > { %827 = vrot.lane.b32.xlu0 %v4061_v56, %s4463_s21  ;;  %4070 = vtanh.f32 %v4723_v55 }
 0x21a   : > { %v792_v60 = vpop.permute.xlu1 %791 }
 0x21b   : > { %v4732_v61 = vadd.f32 %v792_v60, %v728_v58  ;;  %v903_v60 = vld [vmem:[#allocation2 + $0x29] sm:$0x1] }
 0x21c   : > { %v4063_v62 = vpop.eup %4062 }
 0x21d   : > { %4072 = vtanh.f32 %v4732_v61  ;;  %825 = vrot.lane.b32.xlu0 %v4063_v62, %s4463_s21  ;;  %v904_v62 = vld [vmem:[#allocation2 + $0x31] sm:$0x1] }
 0x21e   : > { %v4065_v63 = vpop.eup %4064  ;;  %4074 = vtanh.f32 %v4729_v59 }
 0x21f   : > { %831 = vrot.lane.b32.xlu1 %v4065_v63, %s4463_s21 }
 0x220   : > { %v4067_v0 = vpop.eup %4066 }
 0x222   : > { %v4069_v1 = vpop.eup %4068 }
 0x223   : > { %829 = vrot.lane.b32.xlu1 %v4067_v0, %s4463_s21 }
 0x226   : > { %v4071_v2 = vpop.eup %4070 }
 0x227   : > { %835 = vrot.lane.b32.xlu1 %v4069_v1, %s4463_s21  ;;  %833 = vrot.lane.b32.xlu0 %v4071_v2, %s4463_s21  ;;  %v905_v2 = vld [vmem:[#allocation2 + $0x39] sm:$0x1] }
 0x22a   : > { %v4073_v3 = vpop.eup %4072 }
 0x22b   : > { %v4075_v4 = vpop.eup %4074  ;;  %839 = vrot.lane.b32.xlu1 %v4073_v3, %s4463_s21 }
 0x22c   : > { %837 = vrot.lane.b32.xlu0 %v4075_v4, %s4463_s21 }
 0x28b   : > { %v828_v5 = vpop.permute.xlu0 %827 }
 0x28c   : > { %v4744_v8 = vmul.f32 %v4644_v32, %v828_v5 }
 0x28e   : > { %v906_v13 = vrot.slane %v4744_v8, 7 }
 0x28f   : > { %v826_v7 = vpop.permute.xlu0 %825 }
 0x290   : > { %v4747_v10 = vmul.f32 %v4647_v34, %v826_v7 }
 0x291   : > { %v832_v6 = vpop.permute.xlu1 %831 }
 0x292   : > { %v4754_v16 = vmul.f32 %v4650_v37, %v832_v6  ;;  %v908_v32 = vsel %vm907_vm4, %v906_v13, %v4747_v10 }
 0x294   : > { %v912_v37 = vrot.slane %v4754_v16, 5 }
 0x295   : > { %v830_v9 = vpop.permute.xlu1 %829 }
 0x296   : > { %v4750_v11 = vmul.f32 %v4654_v40, %v830_v9 }
 0x298   : > { %v909_v18 = vrot.slane %v4750_v11, 6 }
 0x299   : > { %v836_v20 = vpop.permute.xlu1 %835  ;;  %v834_v21 = vpop.permute.xlu0 %833 }
 0x29a   : > { %v4760_v34 = vmul.f32 %v4658_v42, %v836_v20  ;;  %v911_v40 = vsel %vm910_vm5, %v909_v18, %v908_v32  ;;  %v4764_v22 = vmul.f32 %v4661_v46, %v834_v21 }
 0x29b   : > { %v914_v25 = vsel %vm913_vm6, %v912_v37, %v911_v40 }
 0x29c   : > { %v915_v23 = vrot.slane %v4764_v22, 4  ;;  %v918_v26 = vrot.slane %v4760_v34, 3 }
 0x29d   : > { %v840_v24 = vpop.permute.xlu1 %839 }
 0x29e   : > { %v838_v27 = vpop.permute.xlu0 %837  ;;  %v4771_v42 = vmul.f32 %v4666_v48, %v840_v24  ;;  %v917_v28 = vsel %vm916_vm7, %v915_v23, %v914_v25 }
 0x29f   : > { %v4775_v29 = vmul.f32 %v4669_v52, %v838_v27  ;;  %v920_v33 = vsel %vm919_vm8, %v918_v26, %v917_v28  ;;  %v898_v52 = vld [vmem:[#allocation2 + $0x1] sm:$0x1] }
 0x2a0   : > { %v924_v46 = vrot.slane %v4771_v42, 1 }
 0x2a1   : > { %v921_v31 = vrot.slane %v4775_v29, 2 }
 0x2a3   : > { %v923_v35 = vsel %vm922_vm9, %v921_v31, %v920_v33 }
 0x2a4   : > { %v926_v36 = vsel %vm925_vm10, %v924_v46, %v923_v35 }
 0x2a5   : > { %927 = vrot.lane.b32.xlu0 %v926_v36, %s4464_s9 }
 0x317   : > { %v928_v48 = vpop.permute.xlu0 %927 }
 0x318   : > { %3914 = vmatmul.mubr.msk.f32.vlgmr.msra.gmra.mxu1 %vm527_vm3, %v928_v48 }
 0x319   : > { %3928 = vmatpush3.msra.mxu1 %v4574_v12  ;;  %3935 = vmatprep.mubr.msk.f32.mxu1 %vm4462_vm2, %v6072_v14  ;;  %v901_v12 = vld [vmem:[#allocation2 + $0x19] sm:$0x1] }
 0x31a   : > { %3929 = vmatprep.subr.mxu1 %v6072_v14 }
 0x31b   : > { %3930 = vmatpush3.msra.mxu1 %v4581_v15  ;;  %v902_v15 = vld [vmem:[#allocation2 + $0x21] sm:$0x1] }
 0x31c   : > { %3931 = vmatprep.subr.mxu1 %v6072_v14 }
 0x31d   : > { %3932 = vmatpush3.msra.mxu1 %v4589_v17 }
 0x31e   : > { %3933 = vmatprep.subr.mxu1 %v6072_v14 }
 0x31f   : > { %3934 = vmatpush3.msra.mxu1 %v4599_v19 }
 0x320   : > { %3949 = vmatprep.subr.mxu1 %v6072_v14 }
 0x3d8   : > { %v997_v41 = vpop.f32.mrf.mxu1 }
 0x3d9   : > { %v1002_v47 = vrot.slane %v997_v41, 1  ;;  %v1003_v49 = vrot.slane %v997_v41, 2  ;;  %v1004_v50 = vrot.slane %v997_v41, 3  ;;  %v1005_v53 = vrot.slane %v997_v41, 4 }
 0x3da   : > { %v1006_v54 = vrot.slane %v997_v41, 5  ;;  %v1007_v56 = vrot.slane %v997_v41, 6  ;;  %v1008_v57 = vrot.slane %v997_v41, 7  ;;  %v1017_v17 = vadd.f32 %v997_v41, %v898_v52  ;;  %v3915_v58 = vpop.f32.mrf.mxu1 }
 0x3db   : > { %v1018_v19 = vadd.f32 %v1002_v47, %v899_v39  ;;  %v1019_v63 = vadd.f32 %v1003_v49, %v900_v44  ;;  %v1020_v0 = vadd.f32 %v1004_v50, %v901_v12  ;;  %v1021_v1 = vadd.f32 %v1005_v53, %v902_v15 }
 0x3dc   : > { %v1022_v3 = vadd.f32 %v1006_v54, %v903_v60  ;;  %v1023_v4 = vadd.f32 %v1007_v56, %v904_v62  ;;  %v3704_v5 = vmul.f32 -1.442695, %v1017_v17  ;;  %v1024_v6 = vadd.f32 %v1008_v57, %v905_v2 }
 0x3dd   : > { %v3705_v7 = vmul.f32 -1.442695, %v1018_v19  ;;  %v3706_v9 = vmul.f32 -1.442695, %v1019_v63  ;;  %v3707_v13 = vmul.f32 -1.442695, %v1020_v0 }
 0x3de   : > { %4076 = vpow2.f32 %v3704_v5  ;;  %v3708_v18 = vmul.f32 -1.442695, %v1021_v1  ;;  %v3709_v20 = vmul.f32 -1.442695, %v1022_v3  ;;  %v3710_v32 = vmul.f32 -1.442695, %v1023_v4 }
 0x3df   : > { %4078 = vpow2.f32 %v3705_v7  ;;  %v3711_v21 = vmul.f32 -1.442695, %v1024_v6 }
 0x3e0   : > { %4080 = vpow2.f32 %v3706_v9 }
 0x3e1   : > { %4082 = vpow2.f32 %v3707_v13 }
 0x3e2   : > { %4084 = vpow2.f32 %v3708_v18 }
 0x3e3   : > { %4086 = vpow2.f32 %v3709_v20 }
 0x3e4   : > { %4088 = vpow2.f32 %v3710_v32 }
 0x3e5   : > { %4090 = vpow2.f32 %v3711_v21 }
 0x3eb   : > { %v4077_v40 = vpop.eup %4076 }
 0x3ec   : > { %v4079_v37 = vpop.eup %4078  ;;  %v1049_v23 = vadd.f32 1.0, %v4077_v40 }
 0x3ed   : > { %v4081_v24 = vpop.eup %4080  ;;  %v1050_v25 = vadd.f32 1.0, %v4079_v37 }
 0x3ee   : > { %v4083_v26 = vpop.eup %4082  ;;  %v1051_v27 = vadd.f32 1.0, %v4081_v24  ;;  %4092 = vrcp.f32 %v1049_v23 }
 0x3ef   : > { %v4085_v28 = vpop.eup %4084  ;;  %v1052_v46 = vadd.f32 1.0, %v4083_v26  ;;  %4094 = vrcp.f32 %v1050_v25 }
 0x3f0   : > { %v4087_v31 = vpop.eup %4086  ;;  %v1053_v33 = vadd.f32 1.0, %v4085_v28  ;;  %4096 = vrcp.f32 %v1051_v27 }
 0x3f1   : > { %v4089_v35 = vpop.eup %4088  ;;  %v1054_v36 = vadd.f32 1.0, %v4087_v31  ;;  %4098 = vrcp.f32 %v1052_v46 }
 0x3f2   : > { %v4091_v48 = vpop.eup %4090  ;;  %v1055_v52 = vadd.f32 1.0, %v4089_v35  ;;  %4100 = vrcp.f32 %v1053_v33 }
 0x3f3   : > { %v1056_v39 = vadd.f32 1.0, %v4091_v48  ;;  %4102 = vrcp.f32 %v1054_v36 }
 0x3f4   : > { %4104 = vrcp.f32 %v1055_v52 }
 0x3f5   : > { %4106 = vrcp.f32 %v1056_v39 }
 0x3fb   : > { %v4794_v12 = vpop.eup %4092 }
 0x3fc   : > { %v4796_v41 = vpop.eup %4094  ;;  %v1073_v44 = vmul.f32 2.0, %v4794_v12  ;;  %v1089_v31 = vmul.f32 %v4794_v12, %v4709_v38 }
 0x3fd   : > { %v4799_v47 = vpop.eup %4096  ;;  %v1074_v15 = vmul.f32 2.0, %v4796_v41  ;;  %v1090_v39 = vmul.f32 %v4796_v41, %v4704_v30 }
 0x3fe   : > { %v4801_v49 = vpop.eup %4098  ;;  %v3712_v50 = vadd.f32 -1.0, %v1073_v44  ;;  %v1075_v53 = vmul.f32 2.0, %v4799_v47  ;;  %v1091_v36 = vmul.f32 %v4799_v47, %v4716_v45 }
 0x3ff   : > { %v4805_v54 = vpop.eup %4100  ;;  %v1076_v57 = vmul.f32 2.0, %v4801_v49  ;;  %v3713_v58 = vadd.f32 -1.0, %v1074_v15  ;;  %v1092_v38 = vmul.f32 %v4801_v49, %v4713_v43 }
 0x400   : > { %1105 = vrot.lane.b32.xlu1 %v3712_v50, %s4463_s21  ;;  %v3714_v56 = vadd.f32 -1.0, %v1075_v53  ;;  %v4809_v17 = vpop.eup %4102  ;;  %v1077_v60 = vmul.f32 2.0, %v4805_v54  ;;  %v1093_v15 = vmul.f32 %v4805_v54, %v4723_v55 }
 0x401   : > { %v4813_v62 = vpop.eup %4104  ;;  %v3715_v19 = vadd.f32 -1.0, %v1076_v57  ;;  %v1078_v63 = vmul.f32 2.0, %v4809_v17  ;;  %v1094_v57 = vmul.f32 %v4809_v17, %v4721_v51 }
 0x402   : > { %1109 = vrot.lane.b32.xlu0 %v3714_v56, %s4463_s21  ;;  %v4817_v0 = vpop.eup %4106  ;;  %v3716_v1 = vadd.f32 -1.0, %v1077_v60  ;;  %v1079_v2 = vmul.f32 2.0, %v4813_v62  ;;  %v1095_v60 = vmul.f32 %v4813_v62, %v4729_v59 }
 0x403   : > { %v3717_v3 = vadd.f32 -1.0, %v1078_v63  ;;  %v1080_v4 = vmul.f32 2.0, %v4817_v0  ;;  %v1096_v63 = vmul.f32 %v4817_v0, %v4732_v61 }
 0x404   : > { %1107 = vrot.lane.b32.xlu1 %v3713_v58, %s4463_s21  ;;  %v3718_v5 = vadd.f32 -1.0, %v1079_v2 }
 0x405   : > { %v3719_v6 = vadd.f32 -1.0, %v1080_v4 }
 0x406   : > { %1111 = vrot.lane.b32.xlu0 %v3715_v19, %s4463_s21 }
 0x408   : > { %1113 = vrot.lane.b32.xlu1 %v3716_v1, %s4463_s21 }
 0x40a   : > { %1115 = vrot.lane.b32.xlu0 %v3717_v3, %s4463_s21 }
 0x40c   : > { %1117 = vrot.lane.b32.xlu1 %v3718_v5, %s4463_s21 }
 0x40e   : > { %1119 = vrot.lane.b32.xlu0 %v3719_v6, %s4463_s21 }
 0x472   : > { %v1106_v7 = vpop.permute.xlu1 %1105 }
 0x473   : > { %v1129_v9 = vmul.f32 %v4794_v12, %v1106_v7 }
 0x474   : > { %v1110_v13 = vpop.permute.xlu0 %1109 }
 0x475   : > { %v1131_v18 = vmul.f32 %v4799_v47, %v1110_v13  ;;  %1145 = vrot.lane.b32.xlu1 %v1129_v9, %s4464_s9 }
 0x476   : > { %v1108_v20 = vpop.permute.xlu1 %1107 }
 0x477   : > { %v1130_v32 = vmul.f32 %v4796_v41, %v1108_v20  ;;  %1149 = vrot.lane.b32.xlu0 %v1131_v18, %s4464_s9 }
 0x478   : > { %v1112_v21 = vpop.permute.xlu0 %1111 }
 0x479   : > { %v1132_v40 = vmul.f32 %v4801_v49, %v1112_v21  ;;  %1147 = vrot.lane.b32.xlu1 %v1130_v32, %s4464_s9 }
 0x47a   : > { %v1114_v37 = vpop.permute.xlu1 %1113 }
 0x47b   : > { %v1133_v23 = vmul.f32 %v4805_v54, %v1114_v37  ;;  %1151 = vrot.lane.b32.xlu0 %v1132_v40, %s4464_s9 }
 0x47c   : > { %v1116_v24 = vpop.permute.xlu0 %1115 }
 0x47d   : > { %v1134_v25 = vmul.f32 %v4809_v17, %v1116_v24  ;;  %1153 = vrot.lane.b32.xlu1 %v1133_v23, %s4464_s9 }
 0x47e   : > { %v1118_v26 = vpop.permute.xlu1 %1117 }
 0x47f   : > { %v1135_v27 = vmul.f32 %v4813_v62, %v1118_v26  ;;  %1155 = vrot.lane.b32.xlu0 %v1134_v25, %s4464_s9 }
 0x480   : > { %v1120_v28 = vpop.permute.xlu0 %1119 }
 0x481   : > { %v1136_v46 = vmul.f32 %v4817_v0, %v1120_v28  ;;  %1157 = vrot.lane.b32.xlu1 %v1135_v27, %s4464_s9 }
 0x483   : > { %1159 = vrot.lane.b32.xlu0 %v1136_v46, %s4464_s9 }
 0x4e7   : > { %v1146_v33 = vpop.permute.xlu1 %1145 }
 0x4e8   : > { %v4844_v35 = vadd.f32 %v1146_v33, %v1089_v31 }
 0x4e9   : > { %v1150_v48 = vpop.permute.xlu0 %1149 }
 0x4ea   : > { %4108 = vtanh.f32 %v4844_v35  ;;  %v4849_v52 = vadd.f32 %v1150_v48, %v1091_v36 }
 0x4eb   : > { %v1148_v44 = vpop.permute.xlu1 %1147 }
 0x4ec   : > { %4110 = vtanh.f32 %v4849_v52  ;;  %v4854_v50 = vadd.f32 %v1148_v44, %v1090_v39 }
 0x4ed   : > { %v1152_v53 = vpop.permute.xlu0 %1151 }
 0x4ee   : > { %4112 = vtanh.f32 %v4854_v50  ;;  %v4859_v45 = vadd.f32 %v1152_v53, %v1092_v38 }
 0x4ef   : > { %v1154_v56 = vpop.permute.xlu1 %1153 }
 0x4f0   : > { %4114 = vtanh.f32 %v4859_v45  ;;  %v4864_v30 = vadd.f32 %v1154_v56, %v1093_v15 }
 0x4f1   : > { %v1156_v58 = vpop.permute.xlu0 %1155 }
 0x4f2   : > { %4116 = vtanh.f32 %v4864_v30  ;;  %v4869_v43 = vadd.f32 %v1156_v58, %v1094_v57  ;;  %v4950_v57 = vld [vmem:[%s6067_s2 + $0x8] sm:$0xff]  ;;  %v4957_v58 = vld [vmem:[%s6067_s2] sm:$0xff] }
 0x4f3   : > { %v1158_v19 = vpop.permute.xlu1 %1157 }
 0x4f4   : > { %4118 = vtanh.f32 %v4869_v43  ;;  %v4874_v55 = vadd.f32 %v1158_v19, %v1095_v60  ;;  %v1265_v60 = vld [vmem:[#allocation2 + $0x2] sm:$0x1]  ;;  %v1266_v19 = vld [vmem:[#allocation2 + $0xa] sm:$0x1] }
 0x4f5   : > { %v1160_v1 = vpop.permute.xlu0 %1159 }
 0x4f6   : > { %4120 = vtanh.f32 %v4874_v55  ;;  %v4879_v51 = vadd.f32 %v1160_v1, %v1096_v63  ;;  %v1268_v63 = vld [vmem:[#allocation2 + $0x1a] sm:$0x1] }
 0x4f7   : > { %v4109_v2 = vpop.eup %4108 }
 0x4f8   : > { %4122 = vtanh.f32 %v4879_v51  ;;  %1193 = vrot.lane.b32.xlu1 %v4109_v2, %s4463_s21  ;;  %v1267_v2 = vld [vmem:[#allocation2 + $0x12] sm:$0x1] }
 0x4f9   : > { %v4111_v3 = vpop.eup %4110 }
 0x4fa   : > { %1197 = vrot.lane.b32.xlu0 %v4111_v3, %s4463_s21 }
 0x4fb   : > { %v4113_v59 = vpop.eup %4112 }
 0x4fc   : > { %1195 = vrot.lane.b32.xlu1 %v4113_v59, %s4463_s21 }
 0x4fd   : > { %v4115_v4 = vpop.eup %4114 }
 0x4fe   : > { %1199 = vrot.lane.b32.xlu0 %v4115_v4, %s4463_s21 }
 0x4ff   : > { %v4117_v61 = vpop.eup %4116 }
 0x500   : > { %1201 = vrot.lane.b32.xlu1 %v4117_v61, %s4463_s21 }
 0x501   : > { %v4119_v5 = vpop.eup %4118 }
 0x502   : > { %1203 = vrot.lane.b32.xlu0 %v4119_v5, %s4463_s21  ;;  %v1269_v5 = vld [vmem:[#allocation2 + $0x22] sm:$0x1] }
 0x503   : > { %v4121_v6 = vpop.eup %4120 }
 0x504   : > { %1205 = vrot.lane.b32.xlu1 %v4121_v6, %s4463_s21 }
 0x505   : > { %v4123_v7 = vpop.eup %4122 }
 0x506   : > { %1207 = vrot.lane.b32.xlu0 %v4123_v7, %s4463_s21 }
 0x56a   : > { %v1194_v9 = vpop.permute.xlu1 %1193 }
 0x56b   : > { %v4897_v40 = vmul.f32 %v4794_v12, %v1194_v9 }
 0x56c   : > { %v1198_v13 = vpop.permute.xlu0 %1197 }
 0x56d   : > { %v4891_v18 = vmul.f32 %v4799_v47, %v1198_v13 }
 0x56e   : > { %v1196_v20 = vpop.permute.xlu1 %1195 }
 0x56f   : > { %v4894_v32 = vmul.f32 %v4796_v41, %v1196_v20  ;;  %v1275_v24 = vrot.slane %v4891_v18, 6 }
 0x570   : > { %v1200_v21 = vpop.permute.xlu0 %1199 }
 0x571   : > { %v1273_v37 = vrot.slane %v4894_v32, 7  ;;  %v4901_v23 = vmul.f32 %v4801_v49, %v1200_v21  ;;  %v1270_v21 = vld [vmem:[#allocation2 + $0x2a] sm:$0x1] }
 0x572   : > { %v1202_v25 = vpop.permute.xlu1 %1201 }
 0x573   : > { %v1274_v47 = vsel %vm907_vm4, %v1273_v37, %v4897_v40  ;;  %v1277_v26 = vrot.slane %v4901_v23, 5  ;;  %v4908_v41 = vmul.f32 %v4805_v54, %v1202_v25  ;;  %v1271_v37 = vld [vmem:[#allocation2 + $0x32] sm:$0x1] }
 0x574   : > { %v1276_v27 = vsel %vm910_vm5, %v1275_v24, %v1274_v47  ;;  %v1204_v12 = vpop.permute.xlu0 %1203 }
 0x575   : > { %v1278_v28 = vsel %vm913_vm6, %v1277_v26, %v1276_v27  ;;  %v1279_v46 = vrot.slane %v4908_v41, 4  ;;  %v4914_v49 = vmul.f32 %v4809_v17, %v1204_v12  ;;  %v1272_v27 = vld [vmem:[#allocation2 + $0x3a] sm:$0x1] }
 0x576   : > { %v1206_v31 = vpop.permute.xlu1 %1205 }
 0x577   : > { %v1280_v33 = vsel %vm916_vm7, %v1279_v46, %v1278_v28  ;;  %v1281_v36 = vrot.slane %v4914_v49, 3  ;;  %v4919_v48 = vmul.f32 %v4813_v62, %v1206_v31  ;;  %v4934_v62 = vld [vmem:[%s6067_s2 + $0x18] sm:$0xff] }
 0x578   : > { %v1208_v54 = vpop.permute.xlu0 %1207 }
 0x579   : > { %v1283_v39 = vrot.slane %v4919_v48, 2  ;;  %v4923_v44 = vmul.f32 %v4817_v0, %v1208_v54  ;;  %v1282_v38 = vsel %vm919_vm8, %v1281_v36, %v1280_v33  ;;  %v4943_v0 = vld [vmem:[%s6067_s2 + $0x10] sm:$0xff] }
 0x57b   : > { %v1285_v53 = vrot.slane %v4923_v44, 1  ;;  %v1284_v17 = vsel %vm922_vm9, %v1283_v39, %v1282_v38 }
 0x57d   : > { %v1286_v15 = vsel %vm925_vm10, %v1285_v53, %v1284_v17 }
 0x57e   : > { %1287 = vrot.lane.b32.xlu1 %v1286_v15, %s4464_s9 }
 0x5f0   : > { %v1288_v56 = vpop.permute.xlu1 %1287 }
 0x5f1   : > { %3925 = vmatmul.mubr.msk.f32.vlgmr.msra.gmra.mxu0 %vm527_vm3, %v1288_v56 }
 0x5f2   : > { %3939 = vmatpush3.msra.mxu0 %v4934_v62  ;;  %3946 = vmatprep.mubr.msk.f32.mxu0 %vm4462_vm2, %v6072_v14 }
 0x5f3   : > { %3940 = vmatprep.subr.mxu0 %v6072_v14 }
 0x5f4   : > { %3941 = vmatpush3.msra.mxu0 %v4943_v0 }
 0x5f5   : > { %3942 = vmatprep.subr.mxu0 %v6072_v14 }
 0x5f6   : > { %3943 = vmatpush3.msra.mxu0 %v4950_v57 }
 0x5f7   : > { %3944 = vmatprep.subr.mxu0 %v6072_v14 }
 0x5f8   : > { %3945 = vmatpush3.msra.mxu0 %v4957_v58 }
 0x5f9   : > { %3960 = vmatprep.subr.mxu0 %v6072_v14 }
 0x6b1   : > { %v1357_v1 = vpop.f32.mrf.mxu0 }
 0x6b2   : > { %v1362_v3 = vrot.slane %v1357_v1, 1  ;;  %v1363_v59 = vrot.slane %v1357_v1, 2  ;;  %v1364_v4 = vrot.slane %v1357_v1, 3  ;;  %v1365_v61 = vrot.slane %v1357_v1, 4 }
 0x6b3   : > { %v1366_v6 = vrot.slane %v1357_v1, 5  ;;  %v1367_v7 = vrot.slane %v1357_v1, 6  ;;  %v1368_v9 = vrot.slane %v1357_v1, 7  ;;  %v1377_v13 = vadd.f32 %v1357_v1, %v1265_v60  ;;  %v3926_v20 = vpop.f32.mrf.mxu0 }
 0x6b4   : > { %v1378_v24 = vadd.f32 %v1362_v3, %v1266_v19  ;;  %v1379_v25 = vadd.f32 %v1363_v59, %v1267_v2  ;;  %v1380_v47 = vadd.f32 %v1364_v4, %v1268_v63  ;;  %v1381_v26 = vadd.f32 %v1365_v61, %v1269_v5 }
 0x6b5   : > { %v1382_v12 = vadd.f32 %v1366_v6, %v1270_v21  ;;  %v1383_v28 = vadd.f32 %v1367_v7, %v1271_v37  ;;  %v3721_v46 = vmul.f32 -1.442695, %v1377_v13  ;;  %v1384_v31 = vadd.f32 %v1368_v9, %v1272_v27 }
 0x6b6   : > { %v3722_v33 = vmul.f32 -1.442695, %v1378_v24  ;;  %v3723_v36 = vmul.f32 -1.442695, %v1379_v25  ;;  %v3724_v54 = vmul.f32 -1.442695, %v1380_v47 }
 0x6b7   : > { %4124 = vpow2.f32 %v3721_v46  ;;  %v3725_v39 = vmul.f32 -1.442695, %v1381_v26  ;;  %v3726_v38 = vmul.f32 -1.442695, %v1382_v12  ;;  %v3727_v53 = vmul.f32 -1.442695, %v1383_v28 }
 0x6b8   : > { %4126 = vpow2.f32 %v3722_v33  ;;  %v3728_v17 = vmul.f32 -1.442695, %v1384_v31 }
 0x6b9   : > { %4128 = vpow2.f32 %v3723_v36 }
 0x6ba   : > { %4130 = vpow2.f32 %v3724_v54 }
 0x6bb   : > { %4132 = vpow2.f32 %v3725_v39 }
 0x6bc   : > { %4134 = vpow2.f32 %v3726_v38 }
 0x6bd   : > { %4136 = vpow2.f32 %v3727_v53 }
 0x6be   : > { %4138 = vpow2.f32 %v3728_v17 }
 0x6c4   : > { %v4125_v15 = vpop.eup %4124 }
 0x6c5   : > { %v4127_v56 = vpop.eup %4126  ;;  %v1409_v60 = vadd.f32 1.0, %v4125_v15 }
 0x6c6   : > { %v4129_v19 = vpop.eup %4128  ;;  %v1410_v63 = vadd.f32 1.0, %v4127_v56 }
 0x6c7   : > { %v4131_v1 = vpop.eup %4130  ;;  %v1411_v2 = vadd.f32 1.0, %v4129_v19  ;;  %4140 = vrcp.f32 %v1409_v60 }
 0x6c8   : > { %v4133_v3 = vpop.eup %4132  ;;  %v1412_v59 = vadd.f32 1.0, %v4131_v1  ;;  %4142 = vrcp.f32 %v1410_v63 }
 0x6c9   : > { %v4135_v4 = vpop.eup %4134  ;;  %v1413_v61 = vadd.f32 1.0, %v4133_v3  ;;  %4144 = vrcp.f32 %v1411_v2 }
 0x6ca   : > { %v4137_v5 = vpop.eup %4136  ;;  %v1414_v6 = vadd.f32 1.0, %v4135_v4  ;;  %4146 = vrcp.f32 %v1412_v59 }
 0x6cb   : > { %v4139_v7 = vpop.eup %4138  ;;  %v1415_v9 = vadd.f32 1.0, %v4137_v5  ;;  %4148 = vrcp.f32 %v1413_v61 }
 0x6cc   : > { %v1416_v13 = vadd.f32 1.0, %v4139_v7  ;;  %4150 = vrcp.f32 %v1414_v6 }
 0x6cd   : > { %4152 = vrcp.f32 %v1415_v9 }
 0x6ce   : > { %4154 = vrcp.f32 %v1416_v13 }
 0x6d4   : > { %v4961_v20 = vpop.eup %4140 }
 0x6d5   : > { %v4963_v21 = vpop.eup %4142  ;;  %v1433_v37 = vmul.f32 2.0, %v4961_v20 }
 0x6d6   : > { %v4966_v24 = vpop.eup %4144  ;;  %v1434_v27 = vmul.f32 2.0, %v4963_v21 }
 0x6d7   : > { %v4968_v25 = vpop.eup %4146  ;;  %v3729_v47 = vadd.f32 -1.0, %v1433_v37  ;;  %v1435_v26 = vmul.f32 2.0, %v4966_v24 }
 0x6d8   : > { %v4972_v12 = vpop.eup %4148  ;;  %v1436_v46 = vmul.f32 2.0, %v4968_v25  ;;  %v3730_v33 = vadd.f32 -1.0, %v1434_v27 }
 0x6d9   : > { %1465 = vrot.lane.b32.xlu0 %v3729_v47, %s4463_s21  ;;  %v3731_v28 = vadd.f32 -1.0, %v1435_v26  ;;  %v4976_v31 = vpop.eup %4150  ;;  %v1437_v36 = vmul.f32 2.0, %v4972_v12 }
 0x6da   : > { %v4980_v54 = vpop.eup %4152  ;;  %v3732_v39 = vadd.f32 -1.0, %v1436_v46  ;;  %v1438_v38 = vmul.f32 2.0, %v4976_v31  ;;  %v1449_v46 = vmul.f32 %v4961_v20, %v4844_v35  ;;  %v1452_v35 = vmul.f32 %v4968_v25, %v4859_v45 }
 0x6db   : > { %1469 = vrot.lane.b32.xlu1 %v3731_v28, %s4463_s21  ;;  %v4984_v53 = vpop.eup %4154  ;;  %v3733_v17 = vadd.f32 -1.0, %v1437_v36  ;;  %v1439_v15 = vmul.f32 2.0, %v4980_v54 }
 0x6dc   : > { %v3734_v56 = vadd.f32 -1.0, %v1438_v38  ;;  %v1440_v60 = vmul.f32 2.0, %v4984_v53 }
 0x6dd   : > { %1467 = vrot.lane.b32.xlu0 %v3730_v33, %s4463_s21  ;;  %v3735_v19 = vadd.f32 -1.0, %v1439_v15  ;;  %v1450_v15 = vmul.f32 %v4963_v21, %v4854_v50 }
 0x6de   : > { %v3736_v63 = vadd.f32 -1.0, %v1440_v60 }
 0x6df   : > { %1471 = vrot.lane.b32.xlu1 %v3732_v39, %s4463_s21  ;;  %v1451_v39 = vmul.f32 %v4966_v24, %v4849_v52 }
 0x6e1   : > { %1473 = vrot.lane.b32.xlu0 %v3733_v17, %s4463_s21 }
 0x6e3   : > { %1475 = vrot.lane.b32.xlu1 %v3734_v56, %s4463_s21 }
 0x6e5   : > { %1477 = vrot.lane.b32.xlu0 %v3735_v19, %s4463_s21 }
 0x6e7   : > { %1479 = vrot.lane.b32.xlu1 %v3736_v63, %s4463_s21  ;;  %v1453_v63 = vmul.f32 %v4972_v12, %v4864_v30 }
 0x74b   : > { %v1466_v1 = vpop.permute.xlu0 %1465 }
 0x74c   : > { %v1489_v2 = vmul.f32 %v4961_v20, %v1466_v1 }
 0x74d   : > { %v1470_v3 = vpop.permute.xlu1 %1469 }
 0x74e   : > { %v1491_v59 = vmul.f32 %v4966_v24, %v1470_v3  ;;  %1505 = vrot.lane.b32.xlu0 %v1489_v2, %s4464_s9  ;;  %v1454_v2 = vmul.f32 %v4976_v31, %v4869_v43 }
 0x74f   : > { %v1468_v4 = vpop.permute.xlu0 %1467 }
 0x750   : > { %v1490_v61 = vmul.f32 %v4963_v21, %v1468_v4  ;;  %1509 = vrot.lane.b32.xlu1 %v1491_v59, %s4464_s9  ;;  %v1455_v59 = vmul.f32 %v4980_v54, %v4874_v55 }
 0x751   : > { %v1472_v5 = vpop.permute.xlu1 %1471 }
 0x752   : > { %v1492_v6 = vmul.f32 %v4968_v25, %v1472_v5  ;;  %1507 = vrot.lane.b32.xlu0 %v1490_v61, %s4464_s9  ;;  %v1456_v61 = vmul.f32 %v4984_v53, %v4879_v51 }
 0x753   : > { %v1474_v7 = vpop.permute.xlu0 %1473 }
 0x754   : > { %v1493_v9 = vmul.f32 %v4972_v12, %v1474_v7  ;;  %1511 = vrot.lane.b32.xlu1 %v1492_v6, %s4464_s9 }
 0x755   : > { %v1476_v13 = vpop.permute.xlu1 %1475 }
 0x756   : > { %v1494_v37 = vmul.f32 %v4976_v31, %v1476_v13  ;;  %1513 = vrot.lane.b32.xlu0 %v1493_v9, %s4464_s9 }
 0x757   : > { %v1478_v47 = vpop.permute.xlu0 %1477 }
 0x758   : > { %v1495_v26 = vmul.f32 %v4980_v54, %v1478_v47  ;;  %1515 = vrot.lane.b32.xlu1 %v1494_v37, %s4464_s9 }
 0x759   : > { %v1480_v27 = vpop.permute.xlu1 %1479 }
 0x75a   : > { %v1496_v28 = vmul.f32 %v4984_v53, %v1480_v27  ;;  %1517 = vrot.lane.b32.xlu0 %v1495_v26, %s4464_s9 }
 0x75c   : > { %1519 = vrot.lane.b32.xlu1 %v1496_v28, %s4464_s9 }
 0x7c0   : > { %v1506_v33 = vpop.permute.xlu0 %1505 }
 0x7c1   : > { %v5011_v36 = vadd.f32 %v1506_v33, %v1449_v46 }
 0x7c2   : > { %v1510_v38 = vpop.permute.xlu1 %1509 }
 0x7c3   : > { %4156 = vtanh.f32 %v5011_v36  ;;  %v5016_v17 = vadd.f32 %v1510_v38, %v1451_v39 }
 0x7c4   : > { %v1508_v56 = vpop.permute.xlu0 %1507 }
 0x7c5   : > { %4158 = vtanh.f32 %v5016_v17  ;;  %v5021_v60 = vadd.f32 %v1508_v56, %v1450_v15 }
 0x7c6   : > { %v1512_v19 = vpop.permute.xlu1 %1511 }
 0x7c7   : > { %4160 = vtanh.f32 %v5021_v60  ;;  %v5026_v52 = vadd.f32 %v1512_v19, %v1452_v35 }
 0x7c8   : > { %v1514_v1 = vpop.permute.xlu0 %1513 }
 0x7c9   : > { %4162 = vtanh.f32 %v5026_v52  ;;  %v5031_v50 = vadd.f32 %v1514_v1, %v1453_v63 }
 0x7ca   : > { %v1516_v3 = vpop.permute.xlu1 %1515 }
 0x7cb   : > { %4164 = vtanh.f32 %v5031_v50  ;;  %v5036_v45 = vadd.f32 %v1516_v3, %v1454_v2 }
 0x7cc   : > { %v1518_v4 = vpop.permute.xlu0 %1517 }
 0x7cd   : > { %4166 = vtanh.f32 %v5036_v45  ;;  %v5041_v30 = vadd.f32 %v1518_v4, %v1455_v59 }
 0x7ce   : > { %v1520_v5 = vpop.permute.xlu1 %1519 }
 0x7cf   : > { %4168 = vtanh.f32 %v5041_v30  ;;  %v5046_v43 = vadd.f32 %v1520_v5, %v1456_v61 }
 0x7d0   : > { %v4157_v6 = vpop.eup %4156 }
 0x7d1   : > { %4170 = vtanh.f32 %v5046_v43  ;;  %1553 = vrot.lane.b32.xlu0 %v4157_v6, %s4463_s21 }
 0x7d2   : > { %v4159_v7 = vpop.eup %4158 }
 0x7d3   : > { %1557 = vrot.lane.b32.xlu1 %v4159_v7, %s4463_s21 }
 0x7d4   : > { %v4161_v55 = vpop.eup %4160 }
 0x7d5   : > { %1555 = vrot.lane.b32.xlu0 %v4161_v55, %s4463_s21 }
 0x7d6   : > { %v4163_v9 = vpop.eup %4162 }
 0x7d7   : > { %1559 = vrot.lane.b32.xlu1 %v4163_v9, %s4463_s21 }
 0x7d8   : > { %v4165_v51 = vpop.eup %4164 }
 0x7d9   : > { %1561 = vrot.lane.b32.xlu0 %v4165_v51, %s4463_s21 }
 0x7da   : > { %v4167_v13 = vpop.eup %4166 }
 0x7db   : > { %1563 = vrot.lane.b32.xlu1 %v4167_v13, %s4463_s21 }
 0x7dc   : > { %v4169_v37 = vpop.eup %4168 }
 0x7dd   : > { %1565 = vrot.lane.b32.xlu0 %v4169_v37, %s4463_s21  ;;  %v1628_v37 = vld [vmem:[#allocation2 + $0x1b] sm:$0x1] }
 0x7de   : > { %v4171_v47 = vpop.eup %4170 }
 0x7df   : > { %1567 = vrot.lane.b32.xlu1 %v4171_v47, %s4463_s21 }
 0x843   : > { %v1554_v26 = vpop.permute.xlu0 %1553 }
 0x844   : > { %v5064_v38 = vmul.f32 %v4961_v20, %v1554_v26  ;;  %v1627_v26 = vld [vmem:[#allocation2 + $0x13] sm:$0x1] }
 0x845   : > { %v1558_v27 = vpop.permute.xlu1 %1557 }
 0x846   : > { %v5058_v28 = vmul.f32 %v4966_v24, %v1558_v27 }
 0x847   : > { %v1556_v46 = vpop.permute.xlu0 %1555 }
 0x848   : > { %v5061_v33 = vmul.f32 %v4963_v21, %v1556_v46  ;;  %v1635_v35 = vrot.slane %v5058_v28, 6 }
 0x849   : > { %v1560_v39 = vpop.permute.xlu1 %1559 }
 0x84a   : > { %v1633_v15 = vrot.slane %v5061_v33, 7  ;;  %v5068_v56 = vmul.f32 %v4968_v25, %v1560_v39 }
 0x84b   : > { %v1562_v19 = vpop.permute.xlu0 %1561 }
 0x84c   : > { %v1634_v24 = vsel %vm907_vm4, %v1633_v15, %v5064_v38  ;;  %v1637_v63 = vrot.slane %v5068_v56, 5  ;;  %v5075_v21 = vmul.f32 %v4972_v12, %v1562_v19 }
 0x84d   : > { %v1636_v1 = vsel %vm910_vm5, %v1635_v35, %v1634_v24  ;;  %v1564_v20 = vpop.permute.xlu1 %1563  ;;  %v1629_v35 = vld [vmem:[#allocation2 + $0x23] sm:$0x1] }
 0x84e   : > { %v1638_v2 = vsel %vm913_vm6, %v1637_v63, %v1636_v1  ;;  %v1639_v3 = vrot.slane %v5075_v21, 4  ;;  %v5081_v25 = vmul.f32 %v4976_v31, %v1564_v20 }
 0x84f   : > { %v1566_v59 = vpop.permute.xlu0 %1565 }
 0x850   : > { %6106 = vst [vmem:[#allocation5_spill] sm:$0xff] %v5081_v25  ;;  %v1640_v4 = vsel %vm916_vm7, %v1639_v3, %v1638_v2  ;;  %v1641_v61 = vrot.slane %v5081_v25, 3  ;;  %v5086_v5 = vmul.f32 %v4980_v54, %v1566_v59  ;;  %v1625_v54 = vld [vmem:[#allocation2 + $0x3] sm:$0x1]  ;;  %v1630_v2 = vld [vmem:[#allocation2 + $0x2b] sm:$0x1] }
 0x851   : > { %v1568_v12 = vpop.permute.xlu1 %1567  ;;  %v1631_v3 = vld [vmem:[#allocation2 + $0x33] sm:$0x1] }
 0x852   : > { %6107 = vst [vmem:[#allocation6_spill] sm:$0xff] %v5086_v5  ;;  %v1643_v6 = vrot.slane %v5086_v5, 2  ;;  %v5090_v7 = vmul.f32 %v4984_v53, %v1568_v12  ;;  %v1642_v55 = vsel %vm919_vm8, %v1641_v61, %v1640_v4  ;;  %v1626_v53 = vld [vmem:[#allocation2 + $0xb] sm:$0x1] }
 0x854   : > { %6108 = vst [vmem:[#allocation7_spill] sm:$0xff] %v5090_v7  ;;  %v1645_v9 = vrot.slane %v5090_v7, 1  ;;  %v1644_v31 = vsel %vm922_vm9, %v1643_v6, %v1642_v55  ;;  %v1632_v6 = vld [vmem:[#allocation2 + $0x3b] sm:$0x1] }
 0x856   : > { %v1646_v51 = vsel %vm925_vm10, %v1645_v9, %v1644_v31 }
 0x857   : > { %1647 = vrot.lane.b32.xlu0 %v1646_v51, %s4464_s9 }
 0x8c9   : > { %v1648_v13 = vpop.permute.xlu0 %1647 }
 0x8ca   : > { %3936 = vmatmul.mubr.msk.f32.vlgmr.msra.gmra.mxu1 %vm527_vm3, %v1648_v13 }
 0x8cb   : > { %3950 = vmatpush3.msra.mxu1 %v4934_v62  ;;  %3957 = vmatprep.mubr.msk.f32.mxu1 %vm4462_vm2, %v6072_v14 }
 0x8cc   : > { %3951 = vmatprep.subr.mxu1 %v6072_v14 }
 0x8cd   : > { %3952 = vmatpush3.msra.mxu1 %v4943_v0 }
 0x8ce   : > { %3953 = vmatprep.subr.mxu1 %v6072_v14 }
 0x8cf   : > { %3954 = vmatpush3.msra.mxu1 %v4950_v57 }
 0x8d0   : > { %3955 = vmatprep.subr.mxu1 %v6072_v14 }
 0x8d1   : > { %3956 = vmatpush3.msra.mxu1 %v4957_v58 }
 0x8d2   : > { %3971 = vmatprep.subr.mxu1 %v6072_v14 }
 0x98a   : > { %v1717_v47 = vpop.f32.mrf.mxu1 }
 0x98b   : > { %v1722_v27 = vrot.slane %v1717_v47, 1  ;;  %v1723_v46 = vrot.slane %v1717_v47, 2  ;;  %v1724_v39 = vrot.slane %v1717_v47, 3  ;;  %v1725_v15 = vrot.slane %v1717_v47, 4 }
 0x98c   : > { %v1726_v19 = vrot.slane %v1717_v47, 5  ;;  %v1727_v24 = vrot.slane %v1717_v47, 6  ;;  %v1728_v63 = vrot.slane %v1717_v47, 7  ;;  %v1737_v1 = vadd.f32 %v1717_v47, %v1625_v54  ;;  %v3937_v20 = vpop.f32.mrf.mxu1 }
 0x98d   : > { %v1738_v59 = vadd.f32 %v1722_v27, %v1626_v53  ;;  %v1739_v4 = vadd.f32 %v1723_v46, %v1627_v26  ;;  %v1740_v61 = vadd.f32 %v1724_v39, %v1628_v37  ;;  %v1741_v12 = vadd.f32 %v1725_v15, %v1629_v35 }
 0x98e   : > { %v1742_v55 = vadd.f32 %v1726_v19, %v1630_v2  ;;  %v1743_v9 = vadd.f32 %v1727_v24, %v1631_v3  ;;  %v3738_v31 = vmul.f32 -1.442695, %v1737_v1  ;;  %v1744_v51 = vadd.f32 %v1728_v63, %v1632_v6 }
 0x98f   : > { %v3739_v13 = vmul.f32 -1.442695, %v1738_v59  ;;  %v3740_v14 = vmul.f32 -1.442695, %v1739_v4  ;;  %v3741_v7 = vmul.f32 -1.442695, %v1740_v61 }
 0x990   : > { %4172 = vpow2.f32 %v3738_v31  ;;  %v3742_v5 = vmul.f32 -1.442695, %v1741_v12  ;;  %v3743_v25 = vmul.f32 -1.442695, %v1742_v55  ;;  %v3744_v54 = vmul.f32 -1.442695, %v1743_v9 }
 0x991   : > { %4174 = vpow2.f32 %v3739_v13  ;;  %v3745_v47 = vmul.f32 -1.442695, %v1744_v51 }
 0x992   : > { %4176 = vpow2.f32 %v3740_v14 }
 0x993   : > { %4178 = vpow2.f32 %v3741_v7 }
 0x994   : > { %4180 = vpow2.f32 %v3742_v5 }
 0x995   : > { %4182 = vpow2.f32 %v3743_v25 }
 0x996   : > { %4184 = vpow2.f32 %v3744_v54 }
 0x997   : > { %4186 = vpow2.f32 %v3745_v47 }
 0x99d   : > { %v4173_v53 = vpop.eup %4172 }
 0x99e   : > { %v4175_v37 = vpop.eup %4174  ;;  %v1769_v26 = vadd.f32 1.0, %v4173_v53 }
 0x99f   : > { %v4177_v27 = vpop.eup %4176  ;;  %v1770_v46 = vadd.f32 1.0, %v4175_v37 }
 0x9a0   : > { %v4179_v39 = vpop.eup %4178  ;;  %v1771_v15 = vadd.f32 1.0, %v4177_v27  ;;  %4188 = vrcp.f32 %v1769_v26 }
 0x9a1   : > { %v4181_v35 = vpop.eup %4180  ;;  %v1772_v19 = vadd.f32 1.0, %v4179_v39  ;;  %4190 = vrcp.f32 %v1770_v46 }
 0x9a2   : > { %v4183_v24 = vpop.eup %4182  ;;  %v1773_v14 = vadd.f32 1.0, %v4181_v35  ;;  %4192 = vrcp.f32 %v1771_v15 }
 0x9a3   : > { %v4185_v7 = vpop.eup %4184  ;;  %v1774_v63 = vadd.f32 1.0, %v4183_v24  ;;  %4194 = vrcp.f32 %v1772_v19 }
 0x9a4   : > { %v4187_v25 = vpop.eup %4186  ;;  %v1775_v5 = vadd.f32 1.0, %v4185_v7  ;;  %4196 = vrcp.f32 %v1773_v14 }
 0x9a5   : > { %v1776_v1 = vadd.f32 1.0, %v4187_v25  ;;  %4198 = vrcp.f32 %v1774_v63 }
 0x9a6   : > { %4200 = vrcp.f32 %v1775_v5 }
 0x9a7   : > { %4202 = vrcp.f32 %v1776_v1 }
 0x9ad   : > { %v5108_v20 = vpop.eup %4188 }
 0x9ae   : > { %v5110_v2 = vpop.eup %4190  ;;  %v1793_v3 = vmul.f32 2.0, %v5108_v20 }
 0x9af   : > { %v5113_v59 = vpop.eup %4192  ;;  %v1794_v6 = vmul.f32 2.0, %v5110_v2 }
 0x9b0   : > { %v5115_v4 = vpop.eup %4194  ;;  %v3746_v61 = vadd.f32 -1.0, %v1793_v3  ;;  %v1795_v12 = vmul.f32 2.0, %v5113_v59 }
 0x9b1   : > { %v5119_v55 = vpop.eup %4196  ;;  %v1796_v31 = vmul.f32 2.0, %v5115_v4  ;;  %v3747_v13 = vadd.f32 -1.0, %v1794_v6 }
 0x9b2   : > { %1825 = vrot.lane.b32.xlu1 %v3746_v61, %s4463_s21  ;;  %v3748_v9 = vadd.f32 -1.0, %v1795_v12  ;;  %v5123_v51 = vpop.eup %4198  ;;  %v1797_v54 = vmul.f32 2.0, %v5119_v55 }
 0x9b3   : > { %v5127_v47 = vpop.eup %4200  ;;  %v3749_v53 = vadd.f32 -1.0, %v1796_v31  ;;  %v1798_v37 = vmul.f32 2.0, %v5123_v51 }
 0x9b4   : > { %1829 = vrot.lane.b32.xlu0 %v3748_v9, %s4463_s21  ;;  %v5131_v26 = vpop.eup %4202  ;;  %v3750_v27 = vadd.f32 -1.0, %v1797_v54  ;;  %v1799_v46 = vmul.f32 2.0, %v5127_v47 }
 0x9b5   : > { %v3751_v39 = vadd.f32 -1.0, %v1798_v37  ;;  %v1800_v15 = vmul.f32 2.0, %v5131_v26  ;;  %v1809_v37 = vmul.f32 %v5108_v20, %v5011_v36  ;;  %v1812_v36 = vmul.f32 %v5115_v4, %v5026_v52 }
 0x9b6   : > { %1827 = vrot.lane.b32.xlu1 %v3747_v13, %s4463_s21  ;;  %v3752_v35 = vadd.f32 -1.0, %v1799_v46 }
 0x9b7   : > { %v3753_v19 = vadd.f32 -1.0, %v1800_v15 }
 0x9b8   : > { %1831 = vrot.lane.b32.xlu0 %v3749_v53, %s4463_s21 }
 0x9ba   : > { %1833 = vrot.lane.b32.xlu1 %v3750_v27, %s4463_s21 }
 0x9bc   : > { %1835 = vrot.lane.b32.xlu0 %v3751_v39, %s4463_s21  ;;  %v1811_v39 = vmul.f32 %v5113_v59, %v5016_v17 }
 0x9be   : > { %1837 = vrot.lane.b32.xlu1 %v3752_v35, %s4463_s21 }
 0x9c0   : > { %1839 = vrot.lane.b32.xlu0 %v3753_v19, %s4463_s21  ;;  %v1810_v19 = vmul.f32 %v5110_v2, %v5021_v60 }
 0xa24   : > { %v1826_v24 = vpop.permute.xlu1 %1825 }
 0xa25   : > { %v1849_v14 = vmul.f32 %v5108_v20, %v1826_v24 }
 0xa26   : > { %v1830_v7 = vpop.permute.xlu0 %1829 }
 0xa27   : > { %v1851_v63 = vmul.f32 %v5113_v59, %v1830_v7  ;;  %1865 = vrot.lane.b32.xlu1 %v1849_v14, %s4464_s9 }
 0xa28   : > { %v1828_v25 = vpop.permute.xlu1 %1827 }
 0xa29   : > { %v1850_v5 = vmul.f32 %v5110_v2, %v1828_v25  ;;  %1869 = vrot.lane.b32.xlu0 %v1851_v63, %s4464_s9  ;;  %v1813_v63 = vmul.f32 %v5119_v55, %v5031_v50 }
 0xa2a   : > { %v1832_v1 = vpop.permute.xlu0 %1831 }
 0xa2b   : > { %v1852_v3 = vmul.f32 %v5115_v4, %v1832_v1  ;;  %1867 = vrot.lane.b32.xlu1 %v1850_v5, %s4464_s9  ;;  %v1814_v5 = vmul.f32 %v5123_v51, %v5036_v45 }
 0xa2c   : > { %v1834_v61 = vpop.permute.xlu1 %1833 }
 0xa2d   : > { %v1853_v12 = vmul.f32 %v5119_v55, %v1834_v61  ;;  %1871 = vrot.lane.b32.xlu0 %v1852_v3, %s4464_s9  ;;  %v1815_v3 = vmul.f32 %v5127_v47, %v5041_v30 }
 0xa2e   : > { %v1836_v6 = vpop.permute.xlu0 %1835 }
 0xa2f   : > { %v1854_v9 = vmul.f32 %v5123_v51, %v1836_v6  ;;  %1873 = vrot.lane.b32.xlu1 %v1853_v12, %s4464_s9  ;;  %v1816_v12 = vmul.f32 %v5131_v26, %v5046_v43 }
 0xa30   : > { %v1838_v31 = vpop.permute.xlu1 %1837 }
 0xa31   : > { %v1855_v13 = vmul.f32 %v5127_v47, %v1838_v31  ;;  %1875 = vrot.lane.b32.xlu0 %v1854_v9, %s4464_s9 }
 0xa32   : > { %v1840_v54 = vpop.permute.xlu0 %1839 }
 0xa33   : > { %v1856_v53 = vmul.f32 %v5131_v26, %v1840_v54  ;;  %1877 = vrot.lane.b32.xlu1 %v1855_v13, %s4464_s9 }
 0xa35   : > { %1879 = vrot.lane.b32.xlu0 %v1856_v53, %s4464_s9 }
 0xa99   : > { %v1866_v27 = vpop.permute.xlu1 %1865 }
 0xa9a   : > { %v5158_v46 = vadd.f32 %v1866_v27, %v1809_v37 }
 0xa9b   : > { %v1870_v15 = vpop.permute.xlu0 %1869 }
 0xa9c   : > { %4204 = vtanh.f32 %v5158_v46  ;;  %v5163_v35 = vadd.f32 %v1870_v15, %v1811_v39 }
 0xa9d   : > { %v1868_v24 = vpop.permute.xlu1 %1867 }
 0xa9e   : > { %4206 = vtanh.f32 %v5163_v35  ;;  %v5168_v14 = vadd.f32 %v1868_v24, %v1810_v19 }
 0xa9f   : > { %v1872_v7 = vpop.permute.xlu0 %1871 }
 0xaa0   : > { %4208 = vtanh.f32 %v5168_v14  ;;  %v5173_v17 = vadd.f32 %v1872_v7, %v1812_v36 }
 0xaa1   : > { %v1874_v25 = vpop.permute.xlu1 %1873 }
 0xaa2   : > { %4210 = vtanh.f32 %v5173_v17  ;;  %v5178_v60 = vadd.f32 %v1874_v25, %v1813_v63 }
 0xaa3   : > { %v1876_v1 = vpop.permute.xlu0 %1875 }
 0xaa4   : > { %4212 = vtanh.f32 %v5178_v60  ;;  %v5183_v52 = vadd.f32 %v1876_v1, %v1814_v5 }
 0xaa5   : > { %v1878_v61 = vpop.permute.xlu1 %1877 }
 0xaa6   : > { %4214 = vtanh.f32 %v5183_v52  ;;  %v5188_v50 = vadd.f32 %v1878_v61, %v1815_v3 }
 0xaa7   : > { %v1880_v6 = vpop.permute.xlu0 %1879 }
 0xaa8   : > { %4216 = vtanh.f32 %v5188_v50  ;;  %v5193_v45 = vadd.f32 %v1880_v6, %v1816_v12 }
 0xaa9   : > { %v4205_v9 = vpop.eup %4204 }
 0xaaa   : > { %4218 = vtanh.f32 %v5193_v45  ;;  %1913 = vrot.lane.b32.xlu1 %v4205_v9, %s4463_s21 }
 0xaab   : > { %v4207_v31 = vpop.eup %4206 }
 0xaac   : > { %1917 = vrot.lane.b32.xlu0 %v4207_v31, %s4463_s21 }
 0xaad   : > { %v4209_v30 = vpop.eup %4208 }
 0xaae   : > { %1915 = vrot.lane.b32.xlu1 %v4209_v30, %s4463_s21 }
 0xaaf   : > { %v4211_v13 = vpop.eup %4210 }
 0xab0   : > { %1919 = vrot.lane.b32.xlu0 %v4211_v13, %s4463_s21 }
 0xab1   : > { %v4213_v43 = vpop.eup %4212 }
 0xab2   : > { %1921 = vrot.lane.b32.xlu1 %v4213_v43, %s4463_s21 }
 0xab3   : > { %v4215_v54 = vpop.eup %4214 }
 0xab4   : > { %1923 = vrot.lane.b32.xlu0 %v4215_v54, %s4463_s21 }
 0xab5   : > { %v4217_v53 = vpop.eup %4216 }
 0xab6   : > { %1925 = vrot.lane.b32.xlu1 %v4217_v53, %s4463_s21 }
 0xab7   : > { %v4219_v37 = vpop.eup %4218 }
 0xab8   : > { %1927 = vrot.lane.b32.xlu0 %v4219_v37, %s4463_s21 }
 0xb1c   : > { %v1914_v27 = vpop.permute.xlu1 %1913 }
 0xb1d   : > { %v5211_v7 = vmul.f32 %v5108_v20, %v1914_v27 }
 0xb1e   : > { %v1918_v39 = vpop.permute.xlu0 %1917 }
 0xb1f   : > { %v5205_v15 = vmul.f32 %v5113_v59, %v1918_v39 }
 0xb20   : > { %v1916_v19 = vpop.permute.xlu1 %1915 }
 0xb21   : > { %v5208_v24 = vmul.f32 %v5110_v2, %v1916_v19  ;;  %v1995_v5 = vrot.slane %v5205_v15, 6  ;;  %v1986_v19 = vld [vmem:[#allocation2 + $0xc] sm:$0x1] }
 0xb22   : > { %v1920_v36 = vpop.permute.xlu0 %1919 }
 0xb23   : > { %v1993_v63 = vrot.slane %v5208_v24, 7  ;;  %v5215_v25 = vmul.f32 %v5115_v4, %v1920_v36  ;;  %v1988_v36 = vld [vmem:[#allocation2 + $0x1c] sm:$0x1] }
 0xb24   : > { %v1922_v1 = vpop.permute.xlu1 %1921 }
 0xb25   : > { %6109 = vst [vmem:[#allocation8_spill] sm:$0xff] %v5215_v25  ;;  %v1994_v59 = vsel %vm907_vm4, %v1993_v63, %v5211_v7  ;;  %v1997_v3 = vrot.slane %v5215_v25, 5  ;;  %v5222_v2 = vmul.f32 %v5119_v55, %v1922_v1 }
 0xb26   : > { %v1996_v61 = vsel %vm910_vm5, %v1995_v5, %v1994_v59  ;;  %v1924_v20 = vpop.permute.xlu0 %1923 }
 0xb27   : > { %6110 = vst [vmem:[#allocation9_spill] sm:$0xff] %v5222_v2  ;;  %v1998_v12 = vsel %vm913_vm6, %v1997_v3, %v1996_v61  ;;  %v1999_v6 = vrot.slane %v5222_v2, 4  ;;  %v5228_v4 = vmul.f32 %v5123_v51, %v1924_v20  ;;  %v1989_v61 = vld [vmem:[#allocation2 + $0x24] sm:$0x1] }
 0xb28   : > { %v1926_v9 = vpop.permute.xlu1 %1925 }
 0xb29   : > { %6111 = vst [vmem:[#allocation10_spill] sm:$0xff] %v5228_v4  ;;  %v2000_v31 = vsel %vm916_vm7, %v1999_v6, %v1998_v12  ;;  %v2001_v30 = vrot.slane %v5228_v4, 3  ;;  %v5233_v13 = vmul.f32 %v5127_v47, %v1926_v9  ;;  %v6114_v47 = vmov 0.0  }
 0xb2a   : > { %v1928_v55 = vpop.permute.xlu0 %1927 }
 0xb2b   : > { %6112 = vst [vmem:[#allocation11_spill] sm:$0xff] %v5233_v13  ;;  %v2003_v43 = vrot.slane %v5233_v13, 2  ;;  %v5237_v54 = vmul.f32 %v5131_v26, %v1928_v55  ;;  %v2002_v53 = vsel %vm919_vm8, %v2001_v30, %v2000_v31  ;;  %v1985_v26 = vld [vmem:[#allocation2 + $0x4] sm:$0x1]  ;;  %v1991_v31 = vld [vmem:[#allocation2 + $0x34] sm:$0x1] }
 0xb2d   : > { %6113 = vst [vmem:[#allocation12_spill] sm:$0xff] %v5237_v54  ;;  %v2005_v37 = vrot.slane %v5237_v54, 1  ;;  %v2004_v51 = vsel %vm922_vm9, %v2003_v43, %v2002_v53  ;;  %v1992_v53 = vld [vmem:[#allocation2 + $0x3c] sm:$0x1] }
 0xb2f   : > { %v2006_v27 = vsel %vm925_vm10, %v2005_v37, %v2004_v51 }
 0xb30   : > { %2007 = vrot.lane.b32.xlu1 %v2006_v27, %s4464_s9 }
 0xba2   : > { %v2008_v39 = vpop.permute.xlu1 %2007 }
 0xba3   : > { %3947 = vmatmul.mubr.msk.f32.vlgmr.msra.gmra.mxu0 %vm527_vm3, %v2008_v39 }
 0xba4   : > { %3961 = vmatpush3.msra.mxu0 %v4934_v62  ;;  %3968 = vmatprep.mubr.msk.f32.mxu0 %vm4462_vm2, %v6114_v47  ;;  %v1987_v62 = vld [vmem:[#allocation2 + $0x14] sm:$0x1] }
 0xba5   : > { %3962 = vmatprep.subr.mxu0 %v6114_v47 }
 0xba6   : > { %3963 = vmatpush3.msra.mxu0 %v4943_v0 }
 0xba7   : > { %3964 = vmatprep.subr.mxu0 %v6114_v47 }
 0xba8   : > { %3965 = vmatpush3.msra.mxu0 %v4950_v57  ;;  %v1990_v57 = vld [vmem:[#allocation2 + $0x2c] sm:$0x1] }
 0xba9   : > { %3966 = vmatprep.subr.mxu0 %v6114_v47 }
 0xbaa   : > { %3967 = vmatpush3.msra.mxu0 %v4957_v58 }
 0xc63   : > { %v2077_v63 = vpop.f32.mrf.mxu0 }
 0xc64   : > { %v2082_v5 = vrot.slane %v2077_v63, 1  ;;  %v2083_v1 = vrot.slane %v2077_v63, 2  ;;  %v2084_v59 = vrot.slane %v2077_v63, 3  ;;  %v2085_v3 = vrot.slane %v2077_v63, 4 }
 0xc65   : > { %v2086_v20 = vrot.slane %v2077_v63, 5  ;;  %v2087_v0 = vrot.slane %v2077_v63, 6  ;;  %v2088_v12 = vrot.slane %v2077_v63, 7  ;;  %v2097_v6 = vadd.f32 %v2077_v63, %v1985_v26  ;;  %v3948_v9 = vpop.f32.mrf.mxu0 }
 0xc66   : > { %v2098_v30 = vadd.f32 %v2082_v5, %v1986_v19  ;;  %v2099_v55 = vadd.f32 %v2083_v1, %v1987_v62  ;;  %v2100_v58 = vadd.f32 %v2084_v59, %v1988_v36  ;;  %v2101_v43 = vadd.f32 %v2085_v3, %v1989_v61 }
 0xc67   : > { %v2102_v37 = vadd.f32 %v2086_v20, %v1990_v57  ;;  %v2103_v51 = vadd.f32 %v2087_v0, %v1991_v31  ;;  %v3755_v27 = vmul.f32 -1.442695, %v2097_v6  ;;  %v2104_v39 = vadd.f32 %v2088_v12, %v1992_v53 }
 0xc68   : > { %v3756_v54 = vmul.f32 -1.442695, %v2098_v30  ;;  %v3757_v13 = vmul.f32 -1.442695, %v2099_v55  ;;  %v3758_v4 = vmul.f32 -1.442695, %v2100_v58 }
 0xc69   : > { %4220 = vpow2.f32 %v3755_v27  ;;  %v3759_v2 = vmul.f32 -1.442695, %v2101_v43  ;;  %v3760_v25 = vmul.f32 -1.442695, %v2102_v37  ;;  %v3761_v26 = vmul.f32 -1.442695, %v2103_v51 }
 0xc6a   : > { %4222 = vpow2.f32 %v3756_v54  ;;  %v3762_v63 = vmul.f32 -1.442695, %v2104_v39 }
 0xc6b   : > { %4224 = vpow2.f32 %v3757_v13 }
 0xc6c   : > { %4226 = vpow2.f32 %v3758_v4 }
 0xc6d   : > { %4228 = vpow2.f32 %v3759_v2 }
 0xc6e   : > { %4230 = vpow2.f32 %v3760_v25 }
 0xc6f   : > { %4232 = vpow2.f32 %v3761_v26 }
 0xc70   : > { %4234 = vpow2.f32 %v3762_v63 }
 0xc76   : > { %v4221_v19 = vpop.eup %4220 }
 0xc77   : > { %v4223_v36 = vpop.eup %4222  ;;  %v2129_v62 = vadd.f32 1.0, %v4221_v19 }
 0xc78   : > { %v4225_v5 = vpop.eup %4224  ;;  %v2130_v1 = vadd.f32 1.0, %v4223_v36 }
 0xc79   : > { %v4227_v59 = vpop.eup %4226  ;;  %v2131_v3 = vadd.f32 1.0, %v4225_v5  ;;  %4236 = vrcp.f32 %v2129_v62 }
 0xc7a   : > { %v4229_v61 = vpop.eup %4228  ;;  %v2132_v20 = vadd.f32 1.0, %v4227_v59  ;;  %4238 = vrcp.f32 %v2130_v1 }
 0xc7b   : > { %v4231_v54 = vpop.eup %4230  ;;  %v2133_v13 = vadd.f32 1.0, %v4229_v61  ;;  %4240 = vrcp.f32 %v2131_v3 }
 0xc7c   : > { %v4233_v4 = vpop.eup %4232  ;;  %v2134_v0 = vadd.f32 1.0, %v4231_v54  ;;  %4242 = vrcp.f32 %v2132_v20 }
 0xc7d   : > { %v4235_v25 = vpop.eup %4234  ;;  %v2135_v2 = vadd.f32 1.0, %v4233_v4  ;;  %4244 = vrcp.f32 %v2133_v13 }
 0xc7e   : > { %v2136_v12 = vadd.f32 1.0, %v4235_v25  ;;  %4246 = vrcp.f32 %v2134_v0 }
 0xc7f   : > { %4248 = vrcp.f32 %v2135_v2 }
 0xc80   : > { %4250 = vrcp.f32 %v2136_v12 }
 0xc86   : > { %v5254_v6 = vpop.eup %4236 }
 0xc87   : > { %v5256_v9 = vpop.eup %4238  ;;  %v2153_v57 = vmul.f32 2.0, %v5254_v6 }
 0xc88   : > { %v5259_v31 = vpop.eup %4240  ;;  %v2154_v43 = vmul.f32 2.0, %v5256_v9 }
 0xc89   : > { %v5261_v30 = vpop.eup %4242  ;;  %v3763_v55 = vadd.f32 -1.0, %v2153_v57  ;;  %v2155_v58 = vmul.f32 2.0, %v5259_v31 }
 0xc8a   : > { %v5265_v53 = vpop.eup %4244  ;;  %v2156_v51 = vmul.f32 2.0, %v5261_v30  ;;  %v3764_v39 = vadd.f32 -1.0, %v2154_v43 }
 0xc8b   : > { %2185 = vrot.lane.b32.xlu0 %v3763_v55, %s4463_s21  ;;  %v3765_v37 = vadd.f32 -1.0, %v2155_v58  ;;  %v5269_v27 = vpop.eup %4246  ;;  %v2157_v26 = vmul.f32 2.0, %v5265_v53 }
 0xc8c   : > { %v5273_v63 = vpop.eup %4248  ;;  %v3766_v19 = vadd.f32 -1.0, %v2156_v51  ;;  %v2158_v36 = vmul.f32 2.0, %v5269_v27 }
 0xc8d   : > { %2189 = vrot.lane.b32.xlu1 %v3765_v37, %s4463_s21  ;;  %v5277_v62 = vpop.eup %4250  ;;  %v3767_v5 = vadd.f32 -1.0, %v2157_v26  ;;  %v2159_v1 = vmul.f32 2.0, %v5273_v63 }
 0xc8e   : > { %v3768_v59 = vadd.f32 -1.0, %v2158_v36  ;;  %v2160_v3 = vmul.f32 2.0, %v5277_v62  ;;  %v2169_v36 = vmul.f32 %v5254_v6, %v5158_v46  ;;  %v2172_v46 = vmul.f32 %v5261_v30, %v5173_v17 }
 0xc8f   : > { %2187 = vrot.lane.b32.xlu0 %v3764_v39, %s4463_s21  ;;  %v3769_v61 = vadd.f32 -1.0, %v2159_v1 }
 0xc90   : > { %v3770_v20 = vadd.f32 -1.0, %v2160_v3 }
 0xc91   : > { %2191 = vrot.lane.b32.xlu1 %v3766_v19, %s4463_s21 }
 0xc93   : > { %2193 = vrot.lane.b32.xlu0 %v3767_v5, %s4463_s21 }
 0xc95   : > { %2195 = vrot.lane.b32.xlu1 %v3768_v59, %s4463_s21  ;;  %v2171_v59 = vmul.f32 %v5259_v31, %v5163_v35 }
 0xc97   : > { %2197 = vrot.lane.b32.xlu0 %v3769_v61, %s4463_s21 }
 0xc99   : > { %2199 = vrot.lane.b32.xlu1 %v3770_v20, %s4463_s21  ;;  %v2170_v20 = vmul.f32 %v5256_v9, %v5168_v14 }
 0xcfd   : > { %v2186_v54 = vpop.permute.xlu0 %2185 }
 0xcfe   : > { %v2209_v13 = vmul.f32 %v5254_v6, %v2186_v54 }
 0xcff   : > { %v2190_v4 = vpop.permute.xlu1 %2189 }
 0xd00   : > { %v2211_v0 = vmul.f32 %v5259_v31, %v2190_v4  ;;  %2225 = vrot.lane.b32.xlu0 %v2209_v13, %s4464_s9 }
 0xd01   : > { %v2188_v25 = vpop.permute.xlu0 %2187 }
 0xd02   : > { %v2210_v2 = vmul.f32 %v5256_v9, %v2188_v25  ;;  %2229 = vrot.lane.b32.xlu1 %v2211_v0, %s4464_s9  ;;  %v2173_v0 = vmul.f32 %v5265_v53, %v5178_v60 }
 0xd03   : > { %v2192_v12 = vpop.permute.xlu1 %2191 }
 0xd04   : > { %v2212_v57 = vmul.f32 %v5261_v30, %v2192_v12  ;;  %2227 = vrot.lane.b32.xlu0 %v2210_v2, %s4464_s9  ;;  %v2174_v2 = vmul.f32 %v5269_v27, %v5183_v52 }
 0xd05   : > { %v2194_v55 = vpop.permute.xlu0 %2193 }
 0xd06   : > { %v2213_v58 = vmul.f32 %v5265_v53, %v2194_v55  ;;  %2231 = vrot.lane.b32.xlu1 %v2212_v57, %s4464_s9  ;;  %v2175_v57 = vmul.f32 %v5273_v63, %v5188_v50 }
 0xd07   : > { %v2196_v43 = vpop.permute.xlu1 %2195 }
 0xd08   : > { %v2214_v37 = vmul.f32 %v5269_v27, %v2196_v43  ;;  %2233 = vrot.lane.b32.xlu0 %v2213_v58, %s4464_s9  ;;  %v2176_v58 = vmul.f32 %v5277_v62, %v5193_v45 }
 0xd09   : > { %v2198_v51 = vpop.permute.xlu0 %2197 }
 0xd0a   : > { %v2215_v39 = vmul.f32 %v5273_v63, %v2198_v51  ;;  %2235 = vrot.lane.b32.xlu1 %v2214_v37, %s4464_s9 }
 0xd0b   : > { %v2200_v26 = vpop.permute.xlu1 %2199 }
 0xd0c   : > { %v2216_v19 = vmul.f32 %v5277_v62, %v2200_v26  ;;  %2237 = vrot.lane.b32.xlu0 %v2215_v39, %s4464_s9 }
 0xd0e   : > { %2239 = vrot.lane.b32.xlu1 %v2216_v19, %s4464_s9 }
 0xd72   : > { %v2226_v5 = vpop.permute.xlu0 %2225 }
 0xd73   : > { %v5304_v1 = vadd.f32 %v2226_v5, %v2169_v36 }
 0xd74   : > { %v2230_v3 = vpop.permute.xlu1 %2229 }
 0xd75   : > { %4252 = vtanh.f32 %v5304_v1  ;;  %v5309_v61 = vadd.f32 %v2230_v3, %v2171_v59 }
 0xd76   : > { %v2228_v54 = vpop.permute.xlu0 %2227 }
 0xd77   : > { %4254 = vtanh.f32 %v5309_v61  ;;  %v5314_v13 = vadd.f32 %v2228_v54, %v2170_v20 }
 0xd78   : > { %v2232_v4 = vpop.permute.xlu1 %2231 }
 0xd79   : > { %4256 = vtanh.f32 %v5314_v13  ;;  %v5319_v35 = vadd.f32 %v2232_v4, %v2172_v46 }
 0xd7a   : > { %v2234_v25 = vpop.permute.xlu0 %2233 }
 0xd7b   : > { %4258 = vtanh.f32 %v5319_v35  ;;  %v5324_v14 = vadd.f32 %v2234_v25, %v2173_v0 }
 0xd7c   : > { %v2236_v12 = vpop.permute.xlu1 %2235 }
 0xd7d   : > { %4260 = vtanh.f32 %v5324_v14  ;;  %v5329_v17 = vadd.f32 %v2236_v12, %v2174_v2 }
 0xd7e   : > { %v2238_v55 = vpop.permute.xlu0 %2237 }
 0xd7f   : > { %4262 = vtanh.f32 %v5329_v17  ;;  %v5334_v60 = vadd.f32 %v2238_v55, %v2175_v57 }
 0xd80   : > { %v2240_v43 = vpop.permute.xlu1 %2239 }
 0xd81   : > { %4264 = vtanh.f32 %v5334_v60  ;;  %v5339_v52 = vadd.f32 %v2240_v43, %v2176_v58 }
 0xd82   : > { %v4253_v37 = vpop.eup %4252 }
 0xd83   : > { %4266 = vtanh.f32 %v5339_v52  ;;  %2273 = vrot.lane.b32.xlu0 %v4253_v37, %s4463_s21 }
 0xd84   : > { %v4255_v51 = vpop.eup %4254 }
 0xd85   : > { %2277 = vrot.lane.b32.xlu1 %v4255_v51, %s4463_s21 }
 0xd86   : > { %v4257_v50 = vpop.eup %4256 }
 0xd87   : > { %2275 = vrot.lane.b32.xlu0 %v4257_v50, %s4463_s21 }
 0xd88   : > { %v4259_v39 = vpop.eup %4258 }
 0xd89   : > { %2279 = vrot.lane.b32.xlu1 %v4259_v39, %s4463_s21 }
 0xd8a   : > { %v4261_v45 = vpop.eup %4260 }
 0xd8b   : > { %2281 = vrot.lane.b32.xlu0 %v4261_v45, %s4463_s21 }
 0xd8c   : > { %v4263_v26 = vpop.eup %4262 }
 0xd8d   : > { %2283 = vrot.lane.b32.xlu1 %v4263_v26, %s4463_s21 }
 0xd8e   : > { %v4265_v19 = vpop.eup %4264 }
 0xd8f   : > { %2285 = vrot.lane.b32.xlu0 %v4265_v19, %s4463_s21 }
 0xd90   : > { %v4267_v36 = vpop.eup %4266 }
 0xd91   : > { %2287 = vrot.lane.b32.xlu1 %v4267_v36, %s4463_s21 }
 0xdf5   : > { %v2274_v5 = vpop.permute.xlu0 %2273 }
 0xdf6   : > { %v5357_v4 = vmul.f32 %v5254_v6, %v2274_v5 }
 0xdf7   : > { %v2278_v59 = vpop.permute.xlu1 %2277 }
 0xdf8   : > { %v5351_v3 = vmul.f32 %v5259_v31, %v2278_v59 }
 0xdf9   : > { %v2276_v20 = vpop.permute.xlu0 %2275 }
 0xdfa   : > { %6115 = vst [vmem:[#allocation13_spill] sm:$0xff] %v5351_v3  ;;  %v5354_v54 = vmul.f32 %v5256_v9, %v2276_v20  ;;  %v2355_v2 = vrot.slane %v5351_v3, 6  ;;  %v4418_v20 = vld [vmem:[%s6067_s2 + $0x8] sm:$0xff] }
 0xdfb   : > { %v2280_v46 = vpop.permute.xlu1 %2279 }
 0xdfc   : > { %6116 = vst [vmem:[#allocation14_spill] sm:$0xff] %v5354_v54  ;;  %v2353_v0 = vrot.slane %v5354_v54, 7  ;;  %v5361_v25 = vmul.f32 %v5261_v30, %v2280_v46  ;;  %v4419_v46 = vld [vmem:[%s6067_s2] sm:$0xff] }
 0xdfd   : > { %v2282_v12 = vpop.permute.xlu0 %2281 }
 0xdfe   : > { %6117 = vst [vmem:[#allocation15_spill] sm:$0xff] %v5361_v25  ;;  %v2354_v31 = vsel %vm907_vm4, %v2353_v0, %v5357_v4  ;;  %v2357_v57 = vrot.slane %v5361_v25, 5  ;;  %v5368_v9 = vmul.f32 %v5265_v53, %v2282_v12  ;;  %v2345_v0 = vld [vmem:[#allocation2 + $0x5] sm:$0x1]  ;;  %v2347_v12 = vld [vmem:[#allocation2 + $0x15] sm:$0x1] }
 0xdff   : > { %v2356_v55 = vsel %vm910_vm5, %v2355_v2, %v2354_v31  ;;  %v2284_v6 = vpop.permute.xlu1 %2283  ;;  %v2346_v2 = vld [vmem:[#allocation2 + $0xd] sm:$0x1] }
 0xe00   : > { %6118 = vst [vmem:[#allocation16_spill] sm:$0xff] %v5368_v9  ;;  %v2358_v58 = vsel %vm913_vm6, %v2357_v57, %v2356_v55  ;;  %v2359_v43 = vrot.slane %v5368_v9, 4  ;;  %v5374_v30 = vmul.f32 %v5269_v27, %v2284_v6  ;;  %v2348_v57 = vld [vmem:[#allocation2 + $0x1d] sm:$0x1] }
 0xe01   : > { %v2286_v37 = vpop.permute.xlu0 %2285 }
 0xe02   : > { %6119 = vst [vmem:[#allocation17_spill] sm:$0xff] %v5374_v30  ;;  %v2360_v51 = vsel %vm916_vm7, %v2359_v43, %v2358_v58  ;;  %v2361_v50 = vrot.slane %v5374_v30, 3  ;;  %v5379_v39 = vmul.f32 %v5273_v63, %v2286_v37  ;;  %v4416_v63 = vld [vmem:[%s6067_s2 + $0x18] sm:$0xff]  ;;  %v2349_v37 = vld [vmem:[#allocation2 + $0x25] sm:$0x1] }
 0xe03   : > { %v2288_v53 = vpop.permute.xlu1 %2287 }
 0xe04   : > { %6120 = vst [vmem:[#allocation18_spill] sm:$0xff] %v5379_v39  ;;  %v2363_v45 = vrot.slane %v5379_v39, 2  ;;  %v5383_v26 = vmul.f32 %v5277_v62, %v2288_v53  ;;  %v2362_v19 = vsel %vm919_vm8, %v2361_v50, %v2360_v51  ;;  %v4417_v62 = vld [vmem:[%s6067_s2 + $0x10] sm:$0xff] }
 0xe06   : > { %6121 = vst [vmem:[#allocation19_spill] sm:$0xff] %v5383_v26  ;;  %v2365_v36 = vrot.slane %v5383_v26, 1  ;;  %v2364_v27 = vsel %vm922_vm9, %v2363_v45, %v2362_v19  ;;  %v2350_v19 = vld [vmem:[#allocation2 + $0x2d] sm:$0x1] }
 0xe08   : > { %v2366_v5 = vsel %vm925_vm10, %v2365_v36, %v2364_v27  ;;  %v2351_v36 = vld [vmem:[#allocation2 + $0x35] sm:$0x1] }
 0xe09   : > { %2367 = vrot.lane.b32.xlu0 %v2366_v5, %s4464_s9 }
 0xe7b   : > { %v2368_v59 = vpop.permute.xlu0 %2367 }
 0xe7c   : > { %3958 = vmatmul.mubr.msk.f32.vlgmr.msra.gmra.mxu1 %vm527_vm3, %v2368_v59 }
 0xe7d   : > { %3972 = vmatpush3.msra.mxu1 %v4416_v63  ;;  %3979 = vmatprep.mubr.msk.f32.mxu1 %vm4462_vm2, %v6114_v47 }
 0xe7e   : > { %3973 = vmatprep.subr.mxu1 %v6114_v47 }
 0xe7f   : > { %3974 = vmatpush3.msra.mxu1 %v4417_v62  ;;  %v2352_v62 = vld [vmem:[#allocation2 + $0x3d] sm:$0x1] }
 0xe80   : > { %3975 = vmatprep.subr.mxu1 %v6114_v47 }
 0xe81   : > { %3976 = vmatpush3.msra.mxu1 %v4418_v20 }
 0xe82   : > { %3977 = vmatprep.subr.mxu1 %v6114_v47 }
 0xe83   : > { %3978 = vmatpush3.msra.mxu1 %v4419_v46 }
 0xf3c   : > { %v2437_v31 = vpop.f32.mrf.mxu1 }
 0xf3d   : > { %v2442_v55 = vrot.slane %v2437_v31, 1  ;;  %v2443_v6 = vrot.slane %v2437_v31, 2  ;;  %v2444_v58 = vrot.slane %v2437_v31, 3  ;;  %v2445_v43 = vrot.slane %v2437_v31, 4 }
 0xf3e   : > { %v2446_v51 = vrot.slane %v2437_v31, 5  ;;  %v2447_v50 = vrot.slane %v2437_v31, 6  ;;  %v2448_v53 = vrot.slane %v2437_v31, 7  ;;  %v2457_v45 = vadd.f32 %v2437_v31, %v2345_v0  ;;  %v3959_v47 = vpop.f32.mrf.mxu1 }
 0xf3f   : > { %v2458_v27 = vadd.f32 %v2442_v55, %v2346_v2  ;;  %v2459_v5 = vadd.f32 %v2443_v6, %v2347_v12  ;;  %v2460_v59 = vadd.f32 %v2444_v58, %v2348_v57  ;;  %v2461_v63 = vadd.f32 %v2445_v43, %v2349_v37 }
 0xf40   : > { %v2462_v20 = vadd.f32 %v2446_v51, %v2350_v19  ;;  %v2463_v46 = vadd.f32 %v2447_v50, %v2351_v36  ;;  %v3772_v39 = vmul.f32 -1.442695, %v2457_v45  ;;  %v2464_v26 = vadd.f32 %v2448_v53, %v2352_v62 }
 0xf41   : > { %v3773_v9 = vmul.f32 -1.442695, %v2458_v27  ;;  %v3774_v30 = vmul.f32 -1.442695, %v2459_v5  ;;  %v3775_v3 = vmul.f32 -1.442695, %v2460_v59 }
 0xf42   : > { %4268 = vpow2.f32 %v3772_v39  ;;  %v3776_v25 = vmul.f32 -1.442695, %v2461_v63  ;;  %v3777_v54 = vmul.f32 -1.442695, %v2462_v20  ;;  %v3778_v0 = vmul.f32 -1.442695, %v2463_v46 }
 0xf43   : > { %4270 = vpow2.f32 %v3773_v9  ;;  %v3779_v31 = vmul.f32 -1.442695, %v2464_v26 }
 0xf44   : > { %4272 = vpow2.f32 %v3774_v30 }
 0xf45   : > { %4274 = vpow2.f32 %v3775_v3 }
 0xf46   : > { %4276 = vpow2.f32 %v3776_v25 }
 0xf47   : > { %4278 = vpow2.f32 %v3777_v54 }
 0xf48   : > { %4280 = vpow2.f32 %v3778_v0 }
 0xf49   : > { %4282 = vpow2.f32 %v3779_v31 }
 0xf4f   : > { %v4269_v2 = vpop.eup %4268 }
 0xf50   : > { %v4271_v12 = vpop.eup %4270  ;;  %v2489_v57 = vadd.f32 1.0, %v4269_v2 }
 0xf51   : > { %v4273_v55 = vpop.eup %4272  ;;  %v2490_v6 = vadd.f32 1.0, %v4271_v12 }
 0xf52   : > { %v4275_v58 = vpop.eup %4274  ;;  %v2491_v43 = vadd.f32 1.0, %v4273_v55  ;;  %4284 = vrcp.f32 %v2489_v57 }
 0xf53   : > { %v4277_v39 = vpop.eup %4276  ;;  %v2492_v37 = vadd.f32 1.0, %v4275_v58  ;;  %4286 = vrcp.f32 %v2490_v6 }
 0xf54   : > { %v4279_v9 = vpop.eup %4278  ;;  %v2493_v30 = vadd.f32 1.0, %v4277_v39  ;;  %4288 = vrcp.f32 %v2491_v43 }
 0xf55   : > { %v4281_v3 = vpop.eup %4280  ;;  %v2494_v26 = vadd.f32 1.0, %v4279_v9  ;;  %4290 = vrcp.f32 %v2492_v37 }
 0xf56   : > { %v4283_v54 = vpop.eup %4282  ;;  %v2495_v25 = vadd.f32 1.0, %v4281_v3  ;;  %4292 = vrcp.f32 %v2493_v30 }
 0xf57   : > { %v2496_v51 = vadd.f32 1.0, %v4283_v54  ;;  %4294 = vrcp.f32 %v2494_v26 }
 0xf58   : > { %4296 = vrcp.f32 %v2495_v25 }
 0xf59   : > { %4298 = vrcp.f32 %v2496_v51 }
 0xf5f   : > { %v5408_v50 = vpop.eup %4284 }
 0xf60   : > { %v5410_v53 = vpop.eup %4286  ;;  %v2513_v45 = vmul.f32 2.0, %v5408_v50 }
 0xf61   : > { %v5413_v47 = vpop.eup %4288  ;;  %v2514_v5 = vmul.f32 2.0, %v5410_v53 }
 0xf62   : > { %v5415_v19 = vpop.eup %4290  ;;  %v3780_v36 = vadd.f32 -1.0, %v2513_v45  ;;  %v2515_v27 = vmul.f32 2.0, %v5413_v47 }
 0xf63   : > { %v5419_v59 = vpop.eup %4292  ;;  %v2516_v62 = vmul.f32 2.0, %v5415_v19  ;;  %v3781_v46 = vadd.f32 -1.0, %v2514_v5 }
 0xf64   : > { %2545 = vrot.lane.b32.xlu1 %v3780_v36, %s4463_s21  ;;  %v3782_v63 = vadd.f32 -1.0, %v2515_v27  ;;  %v5423_v20 = vpop.eup %4294  ;;  %v2517_v0 = vmul.f32 2.0, %v5419_v59 }
 0xf65   : > { %v5427_v31 = vpop.eup %4296  ;;  %v3783_v2 = vadd.f32 -1.0, %v2516_v62  ;;  %v2518_v12 = vmul.f32 2.0, %v5423_v20 }
 0xf66   : > { %2549 = vrot.lane.b32.xlu0 %v3782_v63, %s4463_s21  ;;  %v5431_v57 = vpop.eup %4298  ;;  %v3784_v55 = vadd.f32 -1.0, %v2517_v0  ;;  %v2519_v6 = vmul.f32 2.0, %v5427_v31 }
 0xf67   : > { %v3785_v58 = vadd.f32 -1.0, %v2518_v12  ;;  %v2520_v43 = vmul.f32 2.0, %v5431_v57  ;;  %v2529_v12 = vmul.f32 %v5408_v50, %v5304_v1  ;;  %v2532_v1 = vmul.f32 %v5415_v19, %v5319_v35 }
 0xf68   : > { %2547 = vrot.lane.b32.xlu1 %v3781_v46, %s4463_s21  ;;  %v3786_v39 = vadd.f32 -1.0, %v2519_v6 }
 0xf69   : > { %v3787_v37 = vadd.f32 -1.0, %v2520_v43 }
 0xf6a   : > { %2551 = vrot.lane.b32.xlu0 %v3783_v2, %s4463_s21 }
 0xf6c   : > { %2553 = vrot.lane.b32.xlu1 %v3784_v55, %s4463_s21 }
 0xf6e   : > { %2555 = vrot.lane.b32.xlu0 %v3785_v58, %s4463_s21  ;;  %v2531_v58 = vmul.f32 %v5413_v47, %v5309_v61 }
 0xf70   : > { %2557 = vrot.lane.b32.xlu1 %v3786_v39, %s4463_s21 }
 0xf72   : > { %2559 = vrot.lane.b32.xlu0 %v3787_v37, %s4463_s21  ;;  %v2530_v37 = vmul.f32 %v5410_v53, %v5314_v13 }
 0xfd6   : > { %v2546_v9 = vpop.permute.xlu1 %2545 }
 0xfd7   : > { %v2569_v30 = vmul.f32 %v5408_v50, %v2546_v9 }
 0xfd8   : > { %v2550_v3 = vpop.permute.xlu0 %2549 }
 0xfd9   : > { %v2571_v26 = vmul.f32 %v5413_v47, %v2550_v3  ;;  %2585 = vrot.lane.b32.xlu1 %v2569_v30, %s4464_s9 }
 0xfda   : > { %v2548_v54 = vpop.permute.xlu1 %2547 }
 0xfdb   : > { %v2570_v25 = vmul.f32 %v5410_v53, %v2548_v54  ;;  %2589 = vrot.lane.b32.xlu0 %v2571_v26, %s4464_s9  ;;  %v2533_v26 = vmul.f32 %v5419_v59, %v5324_v14 }
 0xfdc   : > { %v2552_v51 = vpop.permute.xlu0 %2551 }
 0xfdd   : > { %v2572_v45 = vmul.f32 %v5415_v19, %v2552_v51  ;;  %2587 = vrot.lane.b32.xlu1 %v2570_v25, %s4464_s9  ;;  %v2534_v25 = vmul.f32 %v5423_v20, %v5329_v17 }
 0xfde   : > { %v2554_v36 = vpop.permute.xlu1 %2553 }
 0xfdf   : > { %v2573_v27 = vmul.f32 %v5419_v59, %v2554_v36  ;;  %2591 = vrot.lane.b32.xlu0 %v2572_v45, %s4464_s9  ;;  %v2535_v45 = vmul.f32 %v5427_v31, %v5334_v60 }
 0xfe0   : > { %v2556_v5 = vpop.permute.xlu0 %2555 }
 0xfe1   : > { %v2574_v63 = vmul.f32 %v5423_v20, %v2556_v5  ;;  %2593 = vrot.lane.b32.xlu1 %v2573_v27, %s4464_s9  ;;  %v2536_v27 = vmul.f32 %v5431_v57, %v5339_v52 }
 0xfe2   : > { %v2558_v62 = vpop.permute.xlu1 %2557 }
 0xfe3   : > { %v2575_v46 = vmul.f32 %v5427_v31, %v2558_v62  ;;  %2595 = vrot.lane.b32.xlu0 %v2574_v63, %s4464_s9 }
 0xfe4   : > { %v2560_v0 = vpop.permute.xlu0 %2559 }
 0xfe5   : > { %v2576_v2 = vmul.f32 %v5431_v57, %v2560_v0  ;;  %2597 = vrot.lane.b32.xlu1 %v2575_v46, %s4464_s9 }
 0xfe7   : > { %2599 = vrot.lane.b32.xlu0 %v2576_v2, %s4464_s9 }
0x104b   : > { %v2586_v55 = vpop.permute.xlu1 %2585 }
0x104c   : > { %v5458_v6 = vadd.f32 %v2586_v55, %v2529_v12 }
0x104d   : > { %v2590_v43 = vpop.permute.xlu0 %2589 }
0x104e   : > { %4300 = vtanh.f32 %v5458_v6  ;;  %v5463_v39 = vadd.f32 %v2590_v43, %v2531_v58 }
0x104f   : > { %v2588_v9 = vpop.permute.xlu1 %2587 }
0x1050   : > { %4302 = vtanh.f32 %v5463_v39  ;;  %v5468_v30 = vadd.f32 %v2588_v9, %v2530_v37 }
0x1051   : > { %v2592_v3 = vpop.permute.xlu0 %2591 }
0x1052   : > { %4304 = vtanh.f32 %v5468_v30  ;;  %v5473_v61 = vadd.f32 %v2592_v3, %v2532_v1 }
0x1053   : > { %v2594_v54 = vpop.permute.xlu1 %2593 }
0x1054   : > { %4306 = vtanh.f32 %v5473_v61  ;;  %v5478_v13 = vadd.f32 %v2594_v54, %v2533_v26 }
0x1055   : > { %v2596_v51 = vpop.permute.xlu0 %2595 }
0x1056   : > { %4308 = vtanh.f32 %v5478_v13  ;;  %v5483_v35 = vadd.f32 %v2596_v51, %v2534_v25 }
0x1057   : > { %v2598_v36 = vpop.permute.xlu1 %2597 }
0x1058   : > { %4310 = vtanh.f32 %v5483_v35  ;;  %v5488_v14 = vadd.f32 %v2598_v36, %v2535_v45 }
0x1059   : > { %v2600_v5 = vpop.permute.xlu0 %2599 }
0x105a   : > { %4312 = vtanh.f32 %v5488_v14  ;;  %v5493_v17 = vadd.f32 %v2600_v5, %v2536_v27 }
0x105b   : > { %v4301_v63 = vpop.eup %4300 }
0x105c   : > { %4314 = vtanh.f32 %v5493_v17  ;;  %2633 = vrot.lane.b32.xlu1 %v4301_v63, %s4463_s21 }
0x105d   : > { %v4303_v62 = vpop.eup %4302 }
0x105e   : > { %2637 = vrot.lane.b32.xlu0 %v4303_v62, %s4463_s21 }
0x105f   : > { %v4305_v60 = vpop.eup %4304 }
0x1060   : > { %2635 = vrot.lane.b32.xlu1 %v4305_v60, %s4463_s21 }
0x1061   : > { %v4307_v46 = vpop.eup %4306 }
0x1062   : > { %2639 = vrot.lane.b32.xlu0 %v4307_v46, %s4463_s21 }
0x1063   : > { %v4309_v52 = vpop.eup %4308 }
0x1064   : > { %2641 = vrot.lane.b32.xlu1 %v4309_v52, %s4463_s21 }
0x1065   : > { %v4311_v0 = vpop.eup %4310 }
0x1066   : > { %2643 = vrot.lane.b32.xlu0 %v4311_v0, %s4463_s21 }
0x1067   : > { %v4313_v2 = vpop.eup %4312 }
0x1068   : > { %2645 = vrot.lane.b32.xlu1 %v4313_v2, %s4463_s21 }
0x1069   : > { %v4315_v12 = vpop.eup %4314 }
0x106a   : > { %2647 = vrot.lane.b32.xlu0 %v4315_v12, %s4463_s21 }
0x10ce   : > { %v2634_v55 = vpop.permute.xlu1 %2633 }
0x10cf   : > { %v5511_v3 = vmul.f32 %v5408_v50, %v2634_v55 }
0x10d0   : > { %v2638_v58 = vpop.permute.xlu0 %2637 }
0x10d1   : > { %v5505_v43 = vmul.f32 %v5413_v47, %v2638_v58  ;;  %6124 = vst [vmem:[#allocation22_spill] sm:$0xff] %v5511_v3 }
0x10d2   : > { %v2636_v37 = vpop.permute.xlu1 %2635 }
0x10d3   : > { %6122 = vst [vmem:[#allocation20_spill] sm:$0xff] %v5505_v43  ;;  %v5508_v9 = vmul.f32 %v5410_v53, %v2636_v37  ;;  %v2715_v25 = vrot.slane %v5505_v43, 6  ;;  %v2706_v37 = vld [vmem:[#allocation2 + $0xe] sm:$0x1] }
0x10d4   : > { %v2640_v1 = vpop.permute.xlu0 %2639 }
0x10d5   : > { %6123 = vst [vmem:[#allocation21_spill] sm:$0xff] %v5508_v9  ;;  %v2713_v26 = vrot.slane %v5508_v9, 7  ;;  %v5515_v54 = vmul.f32 %v5415_v19, %v2640_v1  ;;  %v2707_v1 = vld [vmem:[#allocation2 + $0x16] sm:$0x1] }
0x10d6   : > { %v2642_v51 = vpop.permute.xlu1 %2641 }
0x10d7   : > { %6125 = vst [vmem:[#allocation23_spill] sm:$0xff] %v5515_v54  ;;  %v2714_v47 = vsel %vm907_vm4, %v2713_v26, %v5511_v3  ;;  %v2717_v45 = vrot.slane %v5515_v54, 5  ;;  %v5522_v53 = vmul.f32 %v5419_v59, %v2642_v51 }
0x10d8   : > { %v2716_v36 = vsel %vm910_vm5, %v2715_v25, %v2714_v47  ;;  %v2644_v50 = vpop.permute.xlu0 %2643  ;;  %v2708_v25 = vld [vmem:[#allocation2 + $0x1e] sm:$0x1] }
0x10d9   : > { %6126 = vst [vmem:[#allocation24_spill] sm:$0xff] %v5522_v53  ;;  %v2718_v27 = vsel %vm913_vm6, %v2717_v45, %v2716_v36  ;;  %v2719_v5 = vrot.slane %v5522_v53, 4  ;;  %v5528_v19 = vmul.f32 %v5423_v20, %v2644_v50  ;;  %v2709_v36 = vld [vmem:[#allocation2 + $0x26] sm:$0x1] }
0x10da   : > { %v2646_v63 = vpop.permute.xlu1 %2645 }
0x10db   : > { %6127 = vst [vmem:[#allocation25_spill] sm:$0xff] %v5528_v19  ;;  %v2720_v62 = vsel %vm916_vm7, %v2719_v5, %v2718_v27  ;;  %v2721_v60 = vrot.slane %v5528_v19, 3  ;;  %v5533_v46 = vmul.f32 %v5427_v31, %v2646_v63  ;;  %v2705_v31 = vld [vmem:[#allocation2 + $0x6] sm:$0x1] }
0x10dc   : > { %v2648_v59 = vpop.permute.xlu0 %2647 }
0x10dd   : > { %6128 = vst [vmem:[#allocation26_spill] sm:$0xff] %v5533_v46  ;;  %v2723_v52 = vrot.slane %v5533_v46, 2  ;;  %v5537_v0 = vmul.f32 %v5431_v57, %v2648_v59  ;;  %v2722_v2 = vsel %vm919_vm8, %v2721_v60, %v2720_v62  ;;  %v2710_v60 = vld [vmem:[#allocation2 + $0x2e] sm:$0x1]  ;;  %v2711_v59 = vld [vmem:[#allocation2 + $0x36] sm:$0x1] }
0x10df   : > { %6129 = vst [vmem:[#allocation27_spill] sm:$0xff] %v5537_v0  ;;  %v2725_v12 = vrot.slane %v5537_v0, 1  ;;  %v2724_v20 = vsel %vm922_vm9, %v2723_v52, %v2722_v2 }
0x10e1   : > { %v2726_v55 = vsel %vm925_vm10, %v2725_v12, %v2724_v20 }
0x10e2   : > { %2727 = vrot.lane.b32.xlu1 %v2726_v55, %s4464_s9  ;;  %v2712_v55 = vld [vmem:[#allocation2 + $0x3e] sm:$0x1] }
0x1154   : > { %v2728_v58 = vpop.permute.xlu1 %2727 }
0x1155   : > { %3969 = vmatmul.mubr.msk.f32.vlgmr.msra.gmra.mxu0 %vm527_vm3, %v2728_v58 }
0x1215   : > { %v2797_v26 = vpop.f32.mrf.mxu0 }
0x1216   : > { %v2802_v57 = vrot.slane %v2797_v26, 1  ;;  %v2803_v51 = vrot.slane %v2797_v26, 2  ;;  %v2804_v47 = vrot.slane %v2797_v26, 3  ;;  %v2805_v45 = vrot.slane %v2797_v26, 4 }
0x1217   : > { %v2806_v50 = vrot.slane %v2797_v26, 5  ;;  %v2807_v27 = vrot.slane %v2797_v26, 6  ;;  %v2808_v5 = vrot.slane %v2797_v26, 7  ;;  %v2817_v63 = vadd.f32 %v2797_v26, %v2705_v31  ;;  %v3970_v62 = vpop.f32.mrf.mxu0 }
0x1218   : > { %v2818_v52 = vadd.f32 %v2802_v57, %v2706_v37  ;;  %v2819_v2 = vadd.f32 %v2803_v51, %v2707_v1  ;;  %v2820_v12 = vadd.f32 %v2804_v47, %v2708_v25  ;;  %v2821_v20 = vadd.f32 %v2805_v45, %v2709_v36 }
0x1219   : > { %v2822_v58 = vadd.f32 %v2806_v50, %v2710_v60  ;;  %v2823_v46 = vadd.f32 %v2807_v27, %v2711_v59  ;;  %v3789_v0 = vmul.f32 -1.442695, %v2817_v63  ;;  %v2824_v53 = vadd.f32 %v2808_v5, %v2712_v55 }
0x121a   : > { %v3790_v19 = vmul.f32 -1.442695, %v2818_v52  ;;  %v3791_v43 = vmul.f32 -1.442695, %v2819_v2  ;;  %v3792_v54 = vmul.f32 -1.442695, %v2820_v12 }
0x121b   : > { %4316 = vpow2.f32 %v3789_v0  ;;  %v3793_v3 = vmul.f32 -1.442695, %v2821_v20  ;;  %v3794_v9 = vmul.f32 -1.442695, %v2822_v58  ;;  %v3795_v31 = vmul.f32 -1.442695, %v2823_v46 }
0x121c   : > { %4318 = vpow2.f32 %v3790_v19  ;;  %v3796_v26 = vmul.f32 -1.442695, %v2824_v53 }
0x121d   : > { %4320 = vpow2.f32 %v3791_v43 }
0x121e   : > { %4322 = vpow2.f32 %v3792_v54 }
0x121f   : > { %4324 = vpow2.f32 %v3793_v3 }
0x1220   : > { %4326 = vpow2.f32 %v3794_v9 }
0x1221   : > { %4328 = vpow2.f32 %v3795_v31 }
0x1222   : > { %4330 = vpow2.f32 %v3796_v26 }
0x1228   : > { %v4317_v37 = vpop.eup %4316 }
0x1229   : > { %v4319_v1 = vpop.eup %4318  ;;  %v2849_v25 = vadd.f32 1.0, %v4317_v37 }
0x122a   : > { %v4321_v57 = vpop.eup %4320  ;;  %v2850_v51 = vadd.f32 1.0, %v4319_v1 }
0x122b   : > { %v4323_v47 = vpop.eup %4322  ;;  %v2851_v45 = vadd.f32 1.0, %v4321_v57  ;;  %4332 = vrcp.f32 %v2849_v25 }
0x122c   : > { %v4325_v0 = vpop.eup %4324  ;;  %v2852_v36 = vadd.f32 1.0, %v4323_v47  ;;  %4334 = vrcp.f32 %v2850_v51 }
0x122d   : > { %v4327_v19 = vpop.eup %4326  ;;  %v2853_v43 = vadd.f32 1.0, %v4325_v0  ;;  %4336 = vrcp.f32 %v2851_v45 }
0x122e   : > { %v4329_v54 = vpop.eup %4328  ;;  %v2854_v53 = vadd.f32 1.0, %v4327_v19  ;;  %4338 = vrcp.f32 %v2852_v36 }
0x122f   : > { %v4331_v9 = vpop.eup %4330  ;;  %v2855_v3 = vadd.f32 1.0, %v4329_v54  ;;  %4340 = vrcp.f32 %v2853_v43 }
0x1230   : > { %v2856_v46 = vadd.f32 1.0, %v4331_v9  ;;  %4342 = vrcp.f32 %v2854_v53 }
0x1231   : > { %4344 = vrcp.f32 %v2855_v3 }
0x1232   : > { %4346 = vrcp.f32 %v2856_v46 }
0x1238   : > { %v5545_v50 = vpop.eup %4332 }
0x1239   : > { %v5547_v27 = vpop.eup %4334  ;;  %v2873_v5 = vmul.f32 2.0, %v5545_v50 }
0x123a   : > { %v5550_v63 = vpop.eup %4336  ;;  %v2874_v52 = vmul.f32 2.0, %v5547_v27 }
0x123b   : > { %v5552_v62 = vpop.eup %4338  ;;  %v3797_v60 = vadd.f32 -1.0, %v2873_v5  ;;  %v2875_v59 = vmul.f32 2.0, %v5550_v63 }
0x123c   : > { %v5556_v2 = vpop.eup %4340  ;;  %v2876_v20 = vmul.f32 2.0, %v5552_v62  ;;  %v3798_v58 = vadd.f32 -1.0, %v2874_v52 }
0x123d   : > { %2905 = vrot.lane.b32.xlu0 %v3797_v60, %s4463_s21  ;;  %v3799_v12 = vadd.f32 -1.0, %v2875_v59  ;;  %v5560_v55 = vpop.eup %4342  ;;  %v2877_v31 = vmul.f32 2.0, %v5556_v2 }
0x123e   : > { %v5564_v26 = vpop.eup %4344  ;;  %v3800_v37 = vadd.f32 -1.0, %v2876_v20  ;;  %v2878_v1 = vmul.f32 2.0, %v5560_v55 }
0x123f   : > { %2909 = vrot.lane.b32.xlu1 %v3799_v12, %s4463_s21  ;;  %v5568_v25 = vpop.eup %4346  ;;  %v3801_v57 = vadd.f32 -1.0, %v2877_v31  ;;  %v2879_v51 = vmul.f32 2.0, %v5564_v26 }
0x1240   : > { %v3802_v47 = vadd.f32 -1.0, %v2878_v1  ;;  %v2880_v45 = vmul.f32 2.0, %v5568_v25  ;;  %v2889_v1 = vmul.f32 %v5545_v50, %v5458_v6  ;;  %v2892_v6 = vmul.f32 %v5552_v62, %v5473_v61 }
0x1241   : > { %2907 = vrot.lane.b32.xlu0 %v3798_v58, %s4463_s21  ;;  %v3803_v0 = vadd.f32 -1.0, %v2879_v51 }
0x1242   : > { %v3804_v36 = vadd.f32 -1.0, %v2880_v45 }
0x1243   : > { %2911 = vrot.lane.b32.xlu1 %v3800_v37, %s4463_s21 }
0x1245   : > { %2913 = vrot.lane.b32.xlu0 %v3801_v57, %s4463_s21 }
0x1247   : > { %2915 = vrot.lane.b32.xlu1 %v3802_v47, %s4463_s21  ;;  %v2891_v47 = vmul.f32 %v5550_v63, %v5463_v39 }
0x1249   : > { %2917 = vrot.lane.b32.xlu0 %v3803_v0, %s4463_s21 }
0x124b   : > { %2919 = vrot.lane.b32.xlu1 %v3804_v36, %s4463_s21  ;;  %v2890_v36 = vmul.f32 %v5547_v27, %v5468_v30 }
0x12af   : > { %v2906_v19 = vpop.permute.xlu0 %2905 }
0x12b0   : > { %v2929_v43 = vmul.f32 %v5545_v50, %v2906_v19 }
0x12b1   : > { %v2910_v54 = vpop.permute.xlu1 %2909 }
0x12b2   : > { %v2931_v53 = vmul.f32 %v5550_v63, %v2910_v54  ;;  %2945 = vrot.lane.b32.xlu0 %v2929_v43, %s4464_s9 }
0x12b3   : > { %v2908_v9 = vpop.permute.xlu0 %2907 }
0x12b4   : > { %v2930_v3 = vmul.f32 %v5547_v27, %v2908_v9  ;;  %2949 = vrot.lane.b32.xlu1 %v2931_v53, %s4464_s9  ;;  %v2893_v53 = vmul.f32 %v5556_v2, %v5478_v13 }
0x12b5   : > { %v2912_v46 = vpop.permute.xlu1 %2911 }
0x12b6   : > { %v2932_v5 = vmul.f32 %v5552_v62, %v2912_v46  ;;  %2947 = vrot.lane.b32.xlu0 %v2930_v3, %s4464_s9  ;;  %v2894_v3 = vmul.f32 %v5560_v55, %v5483_v35 }
0x12b7   : > { %v2914_v60 = vpop.permute.xlu0 %2913 }
0x12b8   : > { %v2933_v59 = vmul.f32 %v5556_v2, %v2914_v60  ;;  %2951 = vrot.lane.b32.xlu1 %v2932_v5, %s4464_s9  ;;  %v2895_v5 = vmul.f32 %v5564_v26, %v5488_v14 }
0x12b9   : > { %v2916_v52 = vpop.permute.xlu1 %2915 }
0x12ba   : > { %v2934_v12 = vmul.f32 %v5560_v55, %v2916_v52  ;;  %2953 = vrot.lane.b32.xlu0 %v2933_v59, %s4464_s9  ;;  %v2896_v59 = vmul.f32 %v5568_v25, %v5493_v17 }
0x12bb   : > { %v2918_v20 = vpop.permute.xlu0 %2917 }
0x12bc   : > { %v2935_v58 = vmul.f32 %v5564_v26, %v2918_v20  ;;  %2955 = vrot.lane.b32.xlu1 %v2934_v12, %s4464_s9 }
0x12bd   : > { %v2920_v31 = vpop.permute.xlu1 %2919 }
0x12be   : > { %v2936_v37 = vmul.f32 %v5568_v25, %v2920_v31  ;;  %2957 = vrot.lane.b32.xlu0 %v2935_v58, %s4464_s9 }
0x12c0   : > { %2959 = vrot.lane.b32.xlu1 %v2936_v37, %s4464_s9 }
0x1324   : > { %v2946_v57 = vpop.permute.xlu0 %2945 }
0x1325   : > { %v5595_v51 = vadd.f32 %v2946_v57, %v2889_v1 }
0x1326   : > { %v2950_v45 = vpop.permute.xlu1 %2949 }
0x1327   : > { %4348 = vtanh.f32 %v5595_v51  ;;  %v5600_v0 = vadd.f32 %v2950_v45, %v2891_v47 }
0x1328   : > { %v2948_v19 = vpop.permute.xlu0 %2947 }
0x1329   : > { %4350 = vtanh.f32 %v5600_v0  ;;  %v5605_v43 = vadd.f32 %v2948_v19, %v2890_v36 }
0x132a   : > { %v2952_v54 = vpop.permute.xlu1 %2951 }
0x132b   : > { %4352 = vtanh.f32 %v5605_v43  ;;  %v5610_v39 = vadd.f32 %v2952_v54, %v2892_v6 }
0x132c   : > { %v2954_v9 = vpop.permute.xlu0 %2953 }
0x132d   : > { %4354 = vtanh.f32 %v5610_v39  ;;  %v5615_v30 = vadd.f32 %v2954_v9, %v2893_v53 }
0x132e   : > { %v2956_v46 = vpop.permute.xlu1 %2955 }
0x132f   : > { %4356 = vtanh.f32 %v5615_v30  ;;  %v5620_v61 = vadd.f32 %v2956_v46, %v2894_v3 }
0x1330   : > { %v2958_v60 = vpop.permute.xlu0 %2957 }
0x1331   : > { %4358 = vtanh.f32 %v5620_v61  ;;  %v5625_v13 = vadd.f32 %v2958_v60, %v2895_v5 }
0x1332   : > { %v2960_v52 = vpop.permute.xlu1 %2959 }
0x1333   : > { %4360 = vtanh.f32 %v5625_v13  ;;  %v5630_v35 = vadd.f32 %v2960_v52, %v2896_v59 }
0x1334   : > { %v4349_v12 = vpop.eup %4348 }
0x1335   : > { %4362 = vtanh.f32 %v5630_v35  ;;  %2993 = vrot.lane.b32.xlu0 %v4349_v12, %s4463_s21 }
0x1336   : > { %v4351_v20 = vpop.eup %4350 }
0x1337   : > { %2997 = vrot.lane.b32.xlu1 %v4351_v20, %s4463_s21 }
0x1338   : > { %v4353_v14 = vpop.eup %4352 }
0x1339   : > { %2995 = vrot.lane.b32.xlu0 %v4353_v14, %s4463_s21 }
0x133a   : > { %v4355_v58 = vpop.eup %4354 }
0x133b   : > { %2999 = vrot.lane.b32.xlu1 %v4355_v58, %s4463_s21 }
0x133c   : > { %v4357_v17 = vpop.eup %4356 }
0x133d   : > { %3001 = vrot.lane.b32.xlu0 %v4357_v17, %s4463_s21 }
0x133e   : > { %v4359_v31 = vpop.eup %4358 }
0x133f   : > { %3003 = vrot.lane.b32.xlu1 %v4359_v31, %s4463_s21 }
0x1340   : > { %v4361_v37 = vpop.eup %4360 }
0x1341   : > { %3005 = vrot.lane.b32.xlu0 %v4361_v37, %s4463_s21 }
0x1342   : > { %v4363_v1 = vpop.eup %4362 }
0x1343   : > { %3007 = vrot.lane.b32.xlu1 %v4363_v1, %s4463_s21 }
0x13a7   : > { %v2994_v57 = vpop.permute.xlu0 %2993 }
0x13a8   : > { %v5648_v54 = vmul.f32 %v5545_v50, %v2994_v57 }
0x13a9   : > { %v2998_v47 = vpop.permute.xlu1 %2997 }
0x13aa   : > { %v5642_v45 = vmul.f32 %v5550_v63, %v2998_v47  ;;  %6132 = vst [vmem:[#allocation30_spill] sm:$0xff] %v5648_v54 }
0x13ab   : > { %v2996_v36 = vpop.permute.xlu0 %2995 }
0x13ac   : > { %6130 = vst [vmem:[#allocation28_spill] sm:$0xff] %v5642_v45  ;;  %v5645_v19 = vmul.f32 %v5547_v27, %v2996_v36  ;;  %v3075_v3 = vrot.slane %v5642_v45, 6  ;;  %v3066_v36 = vld [vmem:[#allocation2 + $0xf] sm:$0x1] }
0x13ad   : > { %v3000_v6 = vpop.permute.xlu1 %2999 }
0x13ae   : > { %6131 = vst [vmem:[#allocation29_spill] sm:$0xff] %v5645_v19  ;;  %v3073_v53 = vrot.slane %v5645_v19, 7  ;;  %v5652_v9 = vmul.f32 %v5552_v62, %v3000_v6  ;;  %v3067_v6 = vld [vmem:[#allocation2 + $0x17] sm:$0x1] }
0x13af   : > { %v3002_v46 = vpop.permute.xlu0 %3001 }
0x13b0   : > { %6133 = vst [vmem:[#allocation31_spill] sm:$0xff] %v5652_v9  ;;  %v3074_v63 = vsel %vm907_vm4, %v3073_v53, %v5648_v54  ;;  %v3077_v5 = vrot.slane %v5652_v9, 5  ;;  %v5659_v27 = vmul.f32 %v5556_v2, %v3002_v46 }
0x13b1   : > { %v3076_v60 = vsel %vm910_vm5, %v3075_v3, %v3074_v63  ;;  %v3004_v50 = vpop.permute.xlu1 %3003  ;;  %v3068_v3 = vld [vmem:[#allocation2 + $0x1f] sm:$0x1] }
0x13b2   : > { %6134 = vst [vmem:[#allocation32_spill] sm:$0xff] %v5659_v27  ;;  %v3078_v59 = vsel %vm913_vm6, %v3077_v5, %v3076_v60  ;;  %v3079_v52 = vrot.slane %v5659_v27, 4  ;;  %v5665_v62 = vmul.f32 %v5560_v55, %v3004_v50  ;;  %v3069_v60 = vld [vmem:[#allocation2 + $0x27] sm:$0x1] }
0x13b3   : > { %v3006_v12 = vpop.permute.xlu0 %3005 }
0x13b4   : > { %6135 = vst [vmem:[#allocation33_spill] sm:$0xff] %v5665_v62  ;;  %v3080_v20 = vsel %vm916_vm7, %v3079_v52, %v3078_v59  ;;  %v3081_v14 = vrot.slane %v5665_v62, 3  ;;  %v5670_v58 = vmul.f32 %v5564_v26, %v3006_v12  ;;  %v3065_v26 = vld [vmem:[#allocation2 + $0x7] sm:$0x1] }
0x13b5   : > { %v3008_v2 = vpop.permute.xlu1 %3007 }
0x13b6   : > { %6136 = vst [vmem:[#allocation34_spill] sm:$0xff] %v5670_v58  ;;  %v3082_v17 = vsel %vm919_vm8, %v3081_v14, %v3080_v20  ;;  %v3083_v31 = vrot.slane %v5670_v58, 2  ;;  %v5675_v37 = vmul.f32 %v5568_v25, %v3008_v2  ;;  %v3070_v14 = vld [vmem:[#allocation2 + $0x2f] sm:$0x1]  ;;  %v3071_v2 = vld [vmem:[#allocation2 + $0x37] sm:$0x1] }
0x13b8   : > { %6137 = vst [vmem:[#allocation35_spill] sm:$0xff] %v5675_v37  ;;  %v3085_v1 = vrot.slane %v5675_v37, 1  ;;  %v3084_v55 = vsel %vm922_vm9, %v3083_v31, %v3082_v17 }
0x13ba   : > { %v3086_v57 = vsel %vm925_vm10, %v3085_v1, %v3084_v55 }
0x13bb   : > { %3087 = vrot.lane.b32.xlu0 %v3086_v57, %s4464_s9  ;;  %v3072_v57 = vld [vmem:[#allocation2 + $0x3f] sm:$0x1] }
0x142d   : > { %v3088_v47 = vpop.permute.xlu0 %3087 }
0x142e   : > { %3980 = vmatmul.mubr.msk.f32.vlgmr.msra.gmra.mxu1 %vm527_vm3, %v3088_v47 }
0x14ee   : > { %v3157_v53 = vpop.f32.mrf.mxu1 }
0x14ef   : > { %v3162_v46 = vrot.slane %v3157_v53, 1  ;;  %v3163_v63 = vrot.slane %v3157_v53, 2  ;;  %v3164_v25 = vrot.slane %v3157_v53, 3  ;;  %v3165_v5 = vrot.slane %v3157_v53, 4 }
0x14f0   : > { %v3166_v50 = vrot.slane %v3157_v53, 5  ;;  %v3167_v59 = vrot.slane %v3157_v53, 6  ;;  %v3168_v52 = vrot.slane %v3157_v53, 7  ;;  %v3177_v12 = vadd.f32 %v3157_v53, %v3065_v26  ;;  %v3981_v20 = vpop.f32.mrf.mxu1 }
0x14f1   : > { %v3178_v17 = vadd.f32 %v3162_v46, %v3066_v36  ;;  %v3179_v31 = vadd.f32 %v3163_v63, %v3067_v6  ;;  %v3180_v1 = vadd.f32 %v3164_v25, %v3068_v3  ;;  %v3181_v55 = vadd.f32 %v3165_v5, %v3069_v60 }
0x14f2   : > { %v3182_v47 = vadd.f32 %v3166_v50, %v3070_v14  ;;  %v3183_v58 = vadd.f32 %v3167_v59, %v3071_v2  ;;  %v3806_v37 = vmul.f32 -1.442695, %v3177_v12  ;;  %v3184_v27 = vadd.f32 %v3168_v52, %v3072_v57 }
0x14f3   : > { %v3807_v62 = vmul.f32 -1.442695, %v3178_v17  ;;  %v3808_v45 = vmul.f32 -1.442695, %v3179_v31  ;;  %v3809_v9 = vmul.f32 -1.442695, %v3180_v1 }
0x14f4   : > { %4364 = vpow2.f32 %v3806_v37  ;;  %v3810_v54 = vmul.f32 -1.442695, %v3181_v55  ;;  %v3811_v19 = vmul.f32 -1.442695, %v3182_v47  ;;  %v3812_v26 = vmul.f32 -1.442695, %v3183_v58 }
0x14f5   : > { %4366 = vpow2.f32 %v3807_v62  ;;  %v3813_v53 = vmul.f32 -1.442695, %v3184_v27 }
0x14f6   : > { %4368 = vpow2.f32 %v3808_v45 }
0x14f7   : > { %4370 = vpow2.f32 %v3809_v9 }
0x14f8   : > { %4372 = vpow2.f32 %v3810_v54 }
0x14f9   : > { %4374 = vpow2.f32 %v3811_v19 }
0x14fa   : > { %4376 = vpow2.f32 %v3812_v26 }
0x14fb   : > { %4378 = vpow2.f32 %v3813_v53 }
0x1501   : > { %v4365_v36 = vpop.eup %4364 }
0x1502   : > { %v4367_v6 = vpop.eup %4366  ;;  %v3209_v3 = vadd.f32 1.0, %v4365_v36 }
0x1503   : > { %v4369_v46 = vpop.eup %4368  ;;  %v3210_v63 = vadd.f32 1.0, %v4367_v6 }
0x1504   : > { %v4371_v25 = vpop.eup %4370  ;;  %v3211_v5 = vadd.f32 1.0, %v4369_v46  ;;  %4380 = vrcp.f32 %v3209_v3 }
0x1505   : > { %v4373_v37 = vpop.eup %4372  ;;  %v3212_v60 = vadd.f32 1.0, %v4371_v25  ;;  %4382 = vrcp.f32 %v3210_v63 }
0x1506   : > { %v4375_v62 = vpop.eup %4374  ;;  %v3213_v45 = vadd.f32 1.0, %v4373_v37  ;;  %4384 = vrcp.f32 %v3211_v5 }
0x1507   : > { %v4377_v9 = vpop.eup %4376  ;;  %v3214_v27 = vadd.f32 1.0, %v4375_v62  ;;  %4386 = vrcp.f32 %v3212_v60 }
0x1508   : > { %v4379_v19 = vpop.eup %4378  ;;  %v3215_v54 = vadd.f32 1.0, %v4377_v9  ;;  %4388 = vrcp.f32 %v3213_v45 }
0x1509   : > { %v3216_v58 = vadd.f32 1.0, %v4379_v19  ;;  %4390 = vrcp.f32 %v3214_v27 }
0x150a   : > { %4392 = vrcp.f32 %v3215_v54 }
0x150b   : > { %4394 = vrcp.f32 %v3216_v58 }
0x1511   : > { %v5682_v50 = vpop.eup %4380 }
0x1512   : > { %v5684_v59 = vpop.eup %4382  ;;  %v3233_v52 = vmul.f32 2.0, %v5682_v50 }
0x1513   : > { %v5687_v12 = vpop.eup %4384  ;;  %v3234_v17 = vmul.f32 2.0, %v5684_v59 }
0x1514   : > { %v5689_v20 = vpop.eup %4386  ;;  %v3814_v14 = vadd.f32 -1.0, %v3233_v52  ;;  %v3235_v2 = vmul.f32 2.0, %v5687_v12 }
0x1515   : > { %v5693_v31 = vpop.eup %4388  ;;  %v3236_v55 = vmul.f32 2.0, %v5689_v20  ;;  %v3815_v47 = vadd.f32 -1.0, %v3234_v17 }
0x1516   : > { %3265 = vrot.lane.b32.xlu1 %v3814_v14, %s4463_s21  ;;  %v3816_v1 = vadd.f32 -1.0, %v3235_v2  ;;  %v5697_v57 = vpop.eup %4390  ;;  %v3237_v26 = vmul.f32 2.0, %v5693_v31 }
0x1517   : > { %v5701_v53 = vpop.eup %4392  ;;  %v3817_v36 = vadd.f32 -1.0, %v3236_v55  ;;  %v3238_v6 = vmul.f32 2.0, %v5697_v57 }
0x1518   : > { %3269 = vrot.lane.b32.xlu0 %v3816_v1, %s4463_s21  ;;  %v5705_v3 = vpop.eup %4394  ;;  %v3818_v46 = vadd.f32 -1.0, %v3237_v26  ;;  %v3239_v63 = vmul.f32 2.0, %v5701_v53 }
0x1519   : > { %v3819_v25 = vadd.f32 -1.0, %v3238_v6  ;;  %v3240_v5 = vmul.f32 2.0, %v5705_v3  ;;  %v3253_v6 = vmul.f32 %v5693_v31, %v5615_v30 }
0x151a   : > { %3267 = vrot.lane.b32.xlu1 %v3815_v47, %s4463_s21  ;;  %v3820_v37 = vadd.f32 -1.0, %v3239_v63  ;;  %v3254_v63 = vmul.f32 %v5697_v57, %v5620_v61  ;;  %v3256_v61 = vmul.f32 %v5705_v3, %v5630_v35 }
0x151b   : > { %v3821_v60 = vadd.f32 -1.0, %v3240_v5 }
0x151c   : > { %3271 = vrot.lane.b32.xlu0 %v3817_v36, %s4463_s21 }
0x151e   : > { %3273 = vrot.lane.b32.xlu1 %v3818_v46, %s4463_s21 }
0x1520   : > { %3275 = vrot.lane.b32.xlu0 %v3819_v25, %s4463_s21 }
0x1522   : > { %3277 = vrot.lane.b32.xlu1 %v3820_v37, %s4463_s21 }
0x1524   : > { %3279 = vrot.lane.b32.xlu0 %v3821_v60, %s4463_s21  ;;  %v3255_v60 = vmul.f32 %v5701_v53, %v5625_v13 }
0x1526   : > { %865 = vrot.lane.b32.xlu1 %v4747_v10, %s4464_s9 }
0x1528   : > { %867 = vrot.lane.b32.xlu0 %v4744_v8, %s4464_s9 }
0x152a   : > { %869 = vrot.lane.b32.xlu1 %v4750_v11, %s4464_s9 }
0x152c   : > { %871 = vrot.lane.b32.xlu0 %v4754_v16, %s4464_s9 }
0x1588   : > { %v3266_v62 = vpop.permute.xlu1 %3265 }
0x1589   : > { %v3289_v45 = vmul.f32 %v5682_v50, %v3266_v62 }
0x158a   : > { %v3270_v9 = vpop.permute.xlu0 %3269 }
0x158b   : > { %v3291_v27 = vmul.f32 %v5687_v12, %v3270_v9  ;;  %3305 = vrot.lane.b32.xlu1 %v3289_v45, %s4464_s9 }
0x158c   : > { %v3268_v19 = vpop.permute.xlu1 %3267 }
0x158d   : > { %v3290_v10 = vmul.f32 %v5684_v59, %v3268_v19  ;;  %3309 = vrot.lane.b32.xlu0 %v3291_v27, %s4464_s9 }
0x158e   : > { %v3272_v8 = vpop.permute.xlu0 %3271 }
0x158f   : > { %v3292_v54 = vmul.f32 %v5689_v20, %v3272_v8  ;;  %3307 = vrot.lane.b32.xlu1 %v3290_v10, %s4464_s9 }
0x1590   : > { %v3274_v11 = vpop.permute.xlu1 %3273 }
0x1591   : > { %v3293_v16 = vmul.f32 %v5693_v31, %v3274_v11  ;;  %3311 = vrot.lane.b32.xlu0 %v3292_v54, %s4464_s9 }
0x1592   : > { %v3276_v58 = vpop.permute.xlu0 %3275 }
0x1593   : > { %v3294_v52 = vmul.f32 %v5697_v57, %v3276_v58  ;;  %3313 = vrot.lane.b32.xlu1 %v3293_v16, %s4464_s9 }
0x1594   : > { %v3278_v14 = vpop.permute.xlu1 %3277 }
0x1595   : > { %v3295_v2 = vmul.f32 %v5701_v53, %v3278_v14  ;;  %3315 = vrot.lane.b32.xlu0 %v3294_v52, %s4464_s9 }
0x1596   : > { %v3280_v17 = vpop.permute.xlu0 %3279 }
0x1597   : > { %v3296_v1 = vmul.f32 %v5705_v3, %v3280_v17  ;;  %3317 = vrot.lane.b32.xlu1 %v3295_v2, %s4464_s9 }
0x1598   : > { %v866_v55 = vpop.permute.xlu1 %865 }
0x1599   : > { %890 = vst.msk [vmem:[%s4554_s18] sm:$0x1] %vm889_vm11, %v866_v55  ;;  %3319 = vrot.lane.b32.xlu0 %v3296_v1, %s4464_s9 }
0x159a   : > { %v868_v47 = vpop.permute.xlu0 %867 }
0x159b   : > { %891 = vst.msk [vmem:[%s4554_s18 + $0x8] sm:$0x1] %vm889_vm11, %v868_v47  ;;  %873 = vrot.lane.b32.xlu1 %v4764_v22, %s4464_s9  ;;  %v6139_v22 = vld [vmem:[#allocation6_spill] sm:$0xff] }
0x159c   : > { %v870_v26 = vpop.permute.xlu1 %869 }
0x159d   : > { %892 = vst.msk [vmem:[%s4554_s18 + $0x10] sm:$0x1] %vm889_vm11, %v870_v26  ;;  %875 = vrot.lane.b32.xlu0 %v4760_v34, %s4464_s9  ;;  %v6138_v34 = vld [vmem:[#allocation5_spill] sm:$0xff] }
0x159e   : > { %v872_v36 = vpop.permute.xlu0 %871 }
0x159f   : > { %893 = vst.msk [vmem:[%s4554_s18 + $0x18] sm:$0x1] %vm889_vm11, %v872_v36  ;;  %877 = vrot.lane.b32.xlu1 %v4775_v29, %s4464_s9  ;;  %v6141_v29 = vld [vmem:[#allocation8_spill] sm:$0xff] }
0x15a1   : > { %879 = vrot.lane.b32.xlu0 %v4771_v42, %s4464_s9  ;;  %v6140_v42 = vld [vmem:[#allocation7_spill] sm:$0xff] }
0x15a3   : > { %1233 = vrot.lane.b32.xlu1 %v4897_v40, %s4464_s9  ;;  %v6144_v40 = vld [vmem:[#allocation11_spill] sm:$0xff] }
0x15a5   : > { %1235 = vrot.lane.b32.xlu0 %v4894_v32, %s4464_s9  ;;  %v6143_v32 = vld [vmem:[#allocation10_spill] sm:$0xff] }
0x15a7   : > { %1237 = vrot.lane.b32.xlu1 %v4891_v18, %s4464_s9  ;;  %v6142_v18 = vld [vmem:[#allocation9_spill] sm:$0xff] }
0x15a9   : > { %1239 = vrot.lane.b32.xlu0 %v4901_v23, %s4464_s9  ;;  %v6145_v23 = vld [vmem:[#allocation12_spill] sm:$0xff] }
0x15ab   : > { %1241 = vrot.lane.b32.xlu1 %v4908_v41, %s4464_s9  ;;  %v6146_v41 = vld [vmem:[#allocation14_spill] sm:$0xff] }
0x15ad   : > { %1243 = vrot.lane.b32.xlu0 %v4914_v49, %s4464_s9  ;;  %v3249_v49 = vmul.f32 %v5682_v50, %v5595_v51 }
0x15af   : > { %1245 = vrot.lane.b32.xlu1 %v4919_v48, %s4464_s9 }
0x15b1   : > { %1247 = vrot.lane.b32.xlu0 %v4923_v44, %s4464_s9 }
0x15b3   : > { %1593 = vrot.lane.b32.xlu1 %v5064_v38, %s4464_s9 }
0x15b5   : > { %1595 = vrot.lane.b32.xlu0 %v5061_v33, %s4464_s9 }
0x15b7   : > { %1597 = vrot.lane.b32.xlu1 %v5058_v28, %s4464_s9  ;;  %v3251_v28 = vmul.f32 %v5687_v12, %v5600_v0 }
0x15b9   : > { %1599 = vrot.lane.b32.xlu0 %v5068_v56, %s4464_s9  ;;  %v3250_v56 = vmul.f32 %v5684_v59, %v5605_v43 }
0x15bb   : > { %1601 = vrot.lane.b32.xlu1 %v5075_v21, %s4464_s9 }
0x15bd   : > { %1603 = vrot.lane.b32.xlu0 %v6138_v34, %s4464_s9 }
0x15bf   : > { %1605 = vrot.lane.b32.xlu1 %v6139_v22, %s4464_s9 }
0x15c1   : > { %1607 = vrot.lane.b32.xlu0 %v6140_v42, %s4464_s9 }
0x15c3   : > { %1953 = vrot.lane.b32.xlu1 %v5211_v7, %s4464_s9 }
0x15c5   : > { %1955 = vrot.lane.b32.xlu0 %v5208_v24, %s4464_s9  ;;  %v3252_v24 = vmul.f32 %v5689_v20, %v5610_v39 }
0x15c7   : > { %1957 = vrot.lane.b32.xlu1 %v5205_v15, %s4464_s9 }
0x15c9   : > { %1959 = vrot.lane.b32.xlu0 %v6141_v29, %s4464_s9 }
0x15cb   : > { %1961 = vrot.lane.b32.xlu1 %v6142_v18, %s4464_s9 }
0x15cd   : > { %1963 = vrot.lane.b32.xlu0 %v6143_v32, %s4464_s9 }
0x15cf   : > { %1965 = vrot.lane.b32.xlu1 %v6144_v40, %s4464_s9 }
0x15d1   : > { %1967 = vrot.lane.b32.xlu0 %v6145_v23, %s4464_s9 }
0x15d3   : > { %2313 = vrot.lane.b32.xlu1 %v5357_v4, %s4464_s9 }
0x15d5   : > { %2315 = vrot.lane.b32.xlu0 %v6146_v41, %s4464_s9  ;;  %v6147_v41 = vld [vmem:[#allocation15_spill] sm:$0xff] }
0x15fd   : > { %v3306_v48 = vpop.permute.xlu1 %3305 }
0x15fe   : > { %v3329_v44 = vadd.f32 %v3306_v48, %v3249_v49  ;;  %v6148_v48 = vld [vmem:[#allocation13_spill] sm:$0xff] }
0x15ff   : > { %v3310_v33 = vpop.permute.xlu0 %3309 }
0x1600   : > { %4396 = vtanh.f32 %v3329_v44  ;;  %v3331_v38 = vadd.f32 %v3310_v33, %v3251_v28  ;;  %v6149_v28 = vld [vmem:[#allocation17_spill] sm:$0xff] }
0x1601   : > { %v3308_v21 = vpop.permute.xlu1 %3307 }
0x1602   : > { %4398 = vtanh.f32 %v3331_v38  ;;  %v3330_v15 = vadd.f32 %v3308_v21, %v3250_v56  ;;  %v3453_v0 = vrot.slane %v3331_v38, 6  ;;  %v6150_v38 = vld [vmem:[#allocation16_spill] sm:$0xff]  ;;  %v6151_v21 = vld [vmem:[#allocation19_spill] sm:$0xff] }
0x1603   : > { %v3312_v7 = vpop.permute.xlu0 %3311 }
0x1604   : > { %4400 = vtanh.f32 %v3330_v15  ;;  %v3451_v4 = vrot.slane %v3330_v15, 7  ;;  %v3332_v51 = vadd.f32 %v3312_v7, %v3252_v24  ;;  %v6152_v24 = vld [vmem:[#allocation18_spill] sm:$0xff] }
0x1605   : > { %v3314_v46 = vpop.permute.xlu1 %3313 }
0x1606   : > { %v3452_v43 = vsel %vm907_vm4, %v3451_v4, %v3329_v44  ;;  %4402 = vtanh.f32 %v3332_v51  ;;  %v3455_v25 = vrot.slane %v3332_v51, 5  ;;  %v3333_v5 = vadd.f32 %v3314_v46, %v3253_v6  ;;  %v6153_v4 = vld [vmem:[#allocation21_spill] sm:$0xff]  ;;  %v6154_v6 = vld [vmem:[#allocation22_spill] sm:$0xff]  ;;  %v6155_v46 = vld [vmem:[#allocation23_spill] sm:$0xff] }
0x1607   : > { %v3454_v37 = vsel %vm910_vm5, %v3453_v0, %v3452_v43  ;;  %v3316_v39 = vpop.permute.xlu0 %3315  ;;  %v6156_v43 = vld [vmem:[#allocation20_spill] sm:$0xff] }
0x1608   : > { %v3456_v62 = vsel %vm913_vm6, %v3455_v25, %v3454_v37  ;;  %4404 = vtanh.f32 %v3333_v5  ;;  %v3457_v30 = vrot.slane %v3333_v5, 4  ;;  %v3334_v45 = vadd.f32 %v3316_v39, %v3254_v63  ;;  %v6157_v5 = vld [vmem:[#allocation25_spill] sm:$0xff]  ;;  %v6158_v39 = vld [vmem:[#allocation24_spill] sm:$0xff] }
0x1609   : > { %v3318_v9 = vpop.permute.xlu1 %3317 }
0x160a   : > { %v3458_v27 = vsel %vm916_vm7, %v3457_v30, %v3456_v62  ;;  %4406 = vtanh.f32 %v3334_v45  ;;  %v3459_v19 = vrot.slane %v3334_v45, 3  ;;  %v3335_v10 = vadd.f32 %v3318_v9, %v3255_v60  ;;  %v6159_v62 = vld [vmem:[#allocation27_spill] sm:$0xff]  ;;  %v6160_v45 = vld [vmem:[#allocation26_spill] sm:$0xff] }
0x160b   : > { %v3320_v8 = vpop.permute.xlu0 %3319 }
0x160c   : > { %v3460_v54 = vsel %vm919_vm8, %v3459_v19, %v3458_v27  ;;  %4408 = vtanh.f32 %v3335_v10  ;;  %v3461_v13 = vrot.slane %v3335_v10, 2  ;;  %v3336_v11 = vadd.f32 %v3320_v8, %v3256_v61  ;;  %v6161_v61 = vld [vmem:[#allocation29_spill] sm:$0xff]  ;;  %v6162_v19 = vld [vmem:[#allocation30_spill] sm:$0xff]  ;;  %v6163_v8 = vld [vmem:[#allocation31_spill] sm:$0xff] }
0x160d   : > { %v4397_v16 = vpop.eup %4396  ;;  %v874_v58 = vpop.permute.xlu1 %873 }
0x160e   : > { %4410 = vtanh.f32 %v3336_v11  ;;  %v3463_v52 = vrot.slane %v3336_v11, 1  ;;  %894 = vst.msk [vmem:[%s4554_s18 + $0x20] sm:$0x1] %vm889_vm11, %v874_v58  ;;  %3353 = vrot.lane.b32.xlu0 %v4397_v16, %s4463_s21  ;;  %v3462_v35 = vsel %vm922_vm9, %v3461_v13, %v3460_v54  ;;  %v6164_v13 = vld [vmem:[#allocation28_spill] sm:$0xff]  ;;  %v6165_v16 = vld [vmem:[#allocation33_spill] sm:$0xff] }
0x160f   : > { %v4399_v14 = vpop.eup %4398  ;;  %v876_v2 = vpop.permute.xlu0 %875 }
0x1610   : > { %895 = vst.msk [vmem:[%s4554_s18 + $0x28] sm:$0x1] %vm889_vm11, %v876_v2  ;;  %3357 = vrot.lane.b32.xlu1 %v4399_v14, %s4463_s21  ;;  %v5835_v17 = vsel %vm925_vm10, %v3463_v52, %v3462_v35  ;;  %v6166_v52 = vld [vmem:[#allocation32_spill] sm:$0xff]  ;;  %v6167_v14 = vld [vmem:[#allocation35_spill] sm:$0xff] }
0x1611   : > { %v4401_v1 = vpop.eup %4400  ;;  %v878_v55 = vpop.permute.xlu1 %877 }
0x1612   : > { %896 = vst.msk [vmem:[%s4554_s18 + $0x30] sm:$0x1] %vm889_vm11, %v878_v55  ;;  %3355 = vrot.lane.b32.xlu0 %v4401_v1, %s4463_s21  ;;  %v6168_v1 = vld [vmem:[#allocation34_spill] sm:$0xff] }
0x1613   : > { %v4403_v47 = vpop.eup %4402  ;;  %v880_v26 = vpop.permute.xlu0 %879 }
0x1614   : > { %897 = vst.msk [vmem:[%s4554_s18 + $0x38] sm:$0x1] %vm889_vm11, %v880_v26  ;;  %3359 = vrot.lane.b32.xlu1 %v4403_v47, %s4463_s21 }
0x1615   : > { %v4405_v36 = vpop.eup %4404  ;;  %v1234_v34 = vpop.permute.xlu1 %1233 }
0x1616   : > { %1257 = vst.msk [vmem:[%s4554_s18 + $0x1] sm:$0x1] %vm889_vm11, %v1234_v34  ;;  %3361 = vrot.lane.b32.xlu0 %v4405_v36, %s4463_s21 }
0x1617   : > { %v4407_v22 = vpop.eup %4406  ;;  %v1236_v42 = vpop.permute.xlu0 %1235 }
0x1618   : > { %1258 = vst.msk [vmem:[%s4554_s18 + $0x9] sm:$0x1] %vm889_vm11, %v1236_v42  ;;  %3363 = vrot.lane.b32.xlu1 %v4407_v22, %s4463_s21 }
0x1619   : > { %v4409_v29 = vpop.eup %4408  ;;  %v1238_v18 = vpop.permute.xlu1 %1237 }
0x161a   : > { %1259 = vst.msk [vmem:[%s4554_s18 + $0x11] sm:$0x1] %vm889_vm11, %v1238_v18  ;;  %3365 = vrot.lane.b32.xlu0 %v4409_v29, %s4463_s21 }
0x161b   : > { %v4411_v32 = vpop.eup %4410  ;;  %v1240_v40 = vpop.permute.xlu0 %1239 }
0x161c   : > { %1260 = vst.msk [vmem:[%s4554_s18 + $0x19] sm:$0x1] %vm889_vm11, %v1240_v40  ;;  %3367 = vrot.lane.b32.xlu1 %v4411_v32, %s4463_s21  ;;  %s4465_s21 = smov 96  }
0x161d   : > { %v1242_v23 = vpop.permute.xlu1 %1241 }
0x161e   : > { %1261 = vst.msk [vmem:[%s4554_s18 + $0x21] sm:$0x1] %vm889_vm11, %v1242_v23  ;;  %2319 = vrot.lane.b32.xlu0 %v6147_v41, %s4464_s9 }
0x161f   : > { %v1244_v49 = vpop.permute.xlu0 %1243 }
0x1620   : > { %1262 = vst.msk [vmem:[%s4554_s18 + $0x29] sm:$0x1] %vm889_vm11, %v1244_v49  ;;  %2317 = vrot.lane.b32.xlu1 %v6148_v48, %s4464_s9 }
0x1621   : > { %v1246_v44 = vpop.permute.xlu1 %1245 }
0x1622   : > { %1263 = vst.msk [vmem:[%s4554_s18 + $0x31] sm:$0x1] %vm889_vm11, %v1246_v44  ;;  %2323 = vrot.lane.b32.xlu0 %v6149_v28, %s4464_s9 }
0x1623   : > { %v1248_v33 = vpop.permute.xlu0 %1247 }
0x1624   : > { %1264 = vst.msk [vmem:[%s4554_s18 + $0x39] sm:$0x1] %vm889_vm11, %v1248_v33  ;;  %2321 = vrot.lane.b32.xlu1 %v6150_v38, %s4464_s9 }
0x1625   : > { %v1594_v56 = vpop.permute.xlu1 %1593 }
0x1626   : > { %1617 = vst.msk [vmem:[%s4554_s18 + $0x2] sm:$0x1] %vm889_vm11, %v1594_v56  ;;  %2327 = vrot.lane.b32.xlu0 %v6151_v21, %s4464_s9 }
0x1627   : > { %v1596_v15 = vpop.permute.xlu0 %1595 }
0x1628   : > { %1618 = vst.msk [vmem:[%s4554_s18 + $0xa] sm:$0x1] %vm889_vm11, %v1596_v15  ;;  %2325 = vrot.lane.b32.xlu1 %v6152_v24, %s4464_s9 }
0x1629   : > { %v1598_v7 = vpop.permute.xlu1 %1597 }
0x162a   : > { %1619 = vst.msk [vmem:[%s4554_s18 + $0x12] sm:$0x1] %vm889_vm11, %v1598_v7  ;;  %2675 = vrot.lane.b32.xlu0 %v6153_v4, %s4464_s9 }
0x162b   : > { %v1600_v51 = vpop.permute.xlu0 %1599 }
0x162c   : > { %1620 = vst.msk [vmem:[%s4554_s18 + $0x1a] sm:$0x1] %vm889_vm11, %v1600_v51  ;;  %2673 = vrot.lane.b32.xlu1 %v6154_v6, %s4464_s9 }
0x162d   : > { %v1602_v0 = vpop.permute.xlu1 %1601 }
0x162e   : > { %1621 = vst.msk [vmem:[%s4554_s18 + $0x22] sm:$0x1] %vm889_vm11, %v1602_v0  ;;  %2679 = vrot.lane.b32.xlu0 %v6155_v46, %s4464_s9 }
0x162f   : > { %v1604_v63 = vpop.permute.xlu0 %1603 }
0x1630   : > { %1622 = vst.msk [vmem:[%s4554_s18 + $0x2a] sm:$0x1] %vm889_vm11, %v1604_v63  ;;  %2677 = vrot.lane.b32.xlu1 %v6156_v43, %s4464_s9 }
0x1631   : > { %v1606_v25 = vpop.permute.xlu1 %1605 }
0x1632   : > { %1623 = vst.msk [vmem:[%s4554_s18 + $0x32] sm:$0x1] %vm889_vm11, %v1606_v25  ;;  %2683 = vrot.lane.b32.xlu0 %v6157_v5, %s4464_s9 }
0x1633   : > { %v1608_v37 = vpop.permute.xlu0 %1607 }
0x1634   : > { %1624 = vst.msk [vmem:[%s4554_s18 + $0x3a] sm:$0x1] %vm889_vm11, %v1608_v37  ;;  %2681 = vrot.lane.b32.xlu1 %v6158_v39, %s4464_s9 }
0x1635   : > { %v1954_v60 = vpop.permute.xlu1 %1953 }
0x1636   : > { %1977 = vst.msk [vmem:[%s4554_s18 + $0x3] sm:$0x1] %vm889_vm11, %v1954_v60  ;;  %2687 = vrot.lane.b32.xlu0 %v6159_v62, %s4464_s9 }
0x1637   : > { %v1956_v30 = vpop.permute.xlu0 %1955 }
0x1638   : > { %1978 = vst.msk [vmem:[%s4554_s18 + $0xb] sm:$0x1] %vm889_vm11, %v1956_v30  ;;  %2685 = vrot.lane.b32.xlu1 %v6160_v45, %s4464_s9 }
0x1639   : > { %v1958_v9 = vpop.permute.xlu1 %1957 }
0x163a   : > { %1979 = vst.msk [vmem:[%s4554_s18 + $0x13] sm:$0x1] %vm889_vm11, %v1958_v9  ;;  %3035 = vrot.lane.b32.xlu0 %v6161_v61, %s4464_s9 }
0x163b   : > { %v1960_v27 = vpop.permute.xlu0 %1959 }
0x163c   : > { %1980 = vst.msk [vmem:[%s4554_s18 + $0x1b] sm:$0x1] %vm889_vm11, %v1960_v27  ;;  %3033 = vrot.lane.b32.xlu1 %v6162_v19, %s4464_s9 }
0x163d   : > { %v1962_v10 = vpop.permute.xlu1 %1961 }
0x163e   : > { %1981 = vst.msk [vmem:[%s4554_s18 + $0x23] sm:$0x1] %vm889_vm11, %v1962_v10  ;;  %3039 = vrot.lane.b32.xlu0 %v6163_v8, %s4464_s9 }
0x163f   : > { %v1964_v54 = vpop.permute.xlu0 %1963 }
0x1640   : > { %1982 = vst.msk [vmem:[%s4554_s18 + $0x2b] sm:$0x1] %vm889_vm11, %v1964_v54  ;;  %3037 = vrot.lane.b32.xlu1 %v6164_v13, %s4464_s9 }
0x1641   : > { %v1966_v11 = vpop.permute.xlu1 %1965 }
0x1642   : > { %1983 = vst.msk [vmem:[%s4554_s18 + $0x33] sm:$0x1] %vm889_vm11, %v1966_v11  ;;  %3043 = vrot.lane.b32.xlu0 %v6165_v16, %s4464_s9 }
0x1643   : > { %v1968_v58 = vpop.permute.xlu0 %1967 }
0x1644   : > { %1984 = vst.msk [vmem:[%s4554_s18 + $0x3b] sm:$0x1] %vm889_vm11, %v1968_v58  ;;  %3041 = vrot.lane.b32.xlu1 %v6166_v52, %s4464_s9 }
0x1645   : > { %v2314_v35 = vpop.permute.xlu1 %2313 }
0x1646   : > { %2337 = vst.msk [vmem:[%s4554_s18 + $0x4] sm:$0x1] %vm889_vm11, %v2314_v35  ;;  %3047 = vrot.lane.b32.xlu0 %v6167_v14, %s4464_s9 }
0x1647   : > { %v2316_v2 = vpop.permute.xlu0 %2315 }
0x1648   : > { %2338 = vst.msk [vmem:[%s4554_s18 + $0xc] sm:$0x1] %vm889_vm11, %v2316_v2  ;;  %3045 = vrot.lane.b32.xlu1 %v6168_v1, %s4464_s9 }
0x1680   : > { %v3354_v55 = vpop.permute.xlu0 %3353 }
0x1681   : > { %v3377_v47 = vmul.f32 %v5682_v50, %v3354_v55 }
0x1682   : > { %v3358_v26 = vpop.permute.xlu1 %3357 }
0x1683   : > { %3393 = vrot.lane.b32.xlu1 %v3377_v47, %s4464_s9  ;;  %v3379_v36 = vmul.f32 %v5687_v12, %v3358_v26 }
0x1684   : > { %v3356_v34 = vpop.permute.xlu0 %3355 }
0x1685   : > { %v3378_v22 = vmul.f32 %v5684_v59, %v3356_v34  ;;  %v3427_v32 = vrot.slane %v3379_v36, 6 }
0x1686   : > { %v3360_v42 = vpop.permute.xlu1 %3359 }
0x1687   : > { %v3425_v29 = vrot.slane %v3378_v22, 7  ;;  %v3380_v18 = vmul.f32 %v5689_v20, %v3360_v42  ;;  %3395 = vrot.lane.b32.xlu0 %v3378_v22, %s4464_s9  ;;  %3397 = vrot.lane.b32.xlu1 %v3379_v36, %s4464_s9 }
0x1688   : > { %v3362_v40 = vpop.permute.xlu0 %3361 }
0x1689   : > { %v3426_v50 = vsel %vm907_vm4, %v3425_v29, %v3377_v47  ;;  %v3429_v23 = vrot.slane %v3380_v18, 5  ;;  %v3381_v41 = vmul.f32 %v5693_v31, %v3362_v40 }
0x168a   : > { %v3428_v12 = vsel %vm910_vm5, %v3427_v32, %v3426_v50  ;;  %v3364_v49 = vpop.permute.xlu1 %3363 }
0x168b   : > { %v3430_v59 = vsel %vm913_vm6, %v3429_v23, %v3428_v12  ;;  %v3431_v48 = vrot.slane %v3381_v41, 4  ;;  %v3382_v20 = vmul.f32 %v5697_v57, %v3364_v49  ;;  %3401 = vrot.lane.b32.xlu1 %v3381_v41, %s4464_s9  ;;  %3399 = vrot.lane.b32.xlu0 %v3380_v18, %s4464_s9 }
0x168c   : > { %v3366_v44 = vpop.permute.xlu0 %3365 }
0x168d   : > { %v3432_v28 = vsel %vm916_vm7, %v3431_v48, %v3430_v59  ;;  %v3433_v33 = vrot.slane %v3382_v20, 3  ;;  %v3383_v31 = vmul.f32 %v5701_v53, %v3366_v44 }
0x168e   : > { %v3368_v38 = vpop.permute.xlu1 %3367 }
0x168f   : > { %v3434_v56 = vsel %vm919_vm8, %v3433_v33, %v3432_v28  ;;  %v3435_v21 = vrot.slane %v3383_v31, 2  ;;  %v3384_v15 = vmul.f32 %v5705_v3, %v3368_v38  ;;  %3405 = vrot.lane.b32.xlu1 %v3383_v31, %s4464_s9  ;;  %3403 = vrot.lane.b32.xlu0 %v3382_v20, %s4464_s9 }
0x1690   : > { %v2320_v57 = vpop.permute.xlu0 %2319 }
0x1691   : > { %v3437_v24 = vrot.slane %v3384_v15, 1  ;;  %2340 = vst.msk [vmem:[%s4554_s18 + $0x1c] sm:$0x1] %vm889_vm11, %v2320_v57  ;;  %v3436_v53 = vsel %vm922_vm9, %v3435_v21, %v3434_v56 }
0x1692   : > { %v2318_v7 = vpop.permute.xlu1 %2317 }
0x1693   : > { %2339 = vst.msk [vmem:[%s4554_s18 + $0x14] sm:$0x1] %vm889_vm11, %v2318_v7  ;;  %3407 = vrot.lane.b32.xlu0 %v3384_v15, %s4464_s9  ;;  %v3438_v3 = vsel %vm925_vm10, %v3437_v24, %v3436_v53 }
0x1694   : > { %v2324_v4 = vpop.permute.xlu0 %2323  ;;  %3439 = vrot.lane.b32.xlu1 %v3438_v3, %s4464_s9 }
0x1695   : > { %2342 = vst.msk [vmem:[%s4554_s18 + $0x2c] sm:$0x1] %vm889_vm11, %v2324_v4 }
0x1696   : > { %v2322_v51 = vpop.permute.xlu1 %2321 }
0x1697   : > { %2341 = vst.msk [vmem:[%s4554_s18 + $0x24] sm:$0x1] %vm889_vm11, %v2322_v51  ;;  %3465 = vrot.lane.b32.xlu0 %v5835_v17, %s4465_s21 }
0x1698   : > { %v2328_v6 = vpop.permute.xlu0 %2327 }
0x1699   : > { %2344 = vst.msk [vmem:[%s4554_s18 + $0x3c] sm:$0x1] %vm889_vm11, %v2328_v6 }
0x169a   : > { %v2326_v0 = vpop.permute.xlu1 %2325 }
0x169b   : > { %2343 = vst.msk [vmem:[%s4554_s18 + $0x34] sm:$0x1] %vm889_vm11, %v2326_v0 }
0x169c   : > { %v2676_v46 = vpop.permute.xlu0 %2675 }
0x169d   : > { %2698 = vst.msk [vmem:[%s4554_s18 + $0xd] sm:$0x1] %vm889_vm11, %v2676_v46 }
0x169e   : > { %v2674_v63 = vpop.permute.xlu1 %2673 }
0x169f   : > { %2697 = vst.msk [vmem:[%s4554_s18 + $0x5] sm:$0x1] %vm889_vm11, %v2674_v63 }
0x16a0   : > { %v2680_v43 = vpop.permute.xlu0 %2679 }
0x16a1   : > { %2700 = vst.msk [vmem:[%s4554_s18 + $0x1d] sm:$0x1] %vm889_vm11, %v2680_v43 }
0x16a2   : > { %v2678_v17 = vpop.permute.xlu1 %2677 }
0x16a3   : > { %2699 = vst.msk [vmem:[%s4554_s18 + $0x15] sm:$0x1] %vm889_vm11, %v2678_v17 }
0x16a4   : > { %v2684_v25 = vpop.permute.xlu0 %2683 }
0x16a5   : > { %2702 = vst.msk [vmem:[%s4554_s18 + $0x2d] sm:$0x1] %vm889_vm11, %v2684_v25 }
0x16a6   : > { %v2682_v5 = vpop.permute.xlu1 %2681 }
0x16a7   : > { %2701 = vst.msk [vmem:[%s4554_s18 + $0x25] sm:$0x1] %vm889_vm11, %v2682_v5 }
0x16a8   : > { %v2688_v37 = vpop.permute.xlu0 %2687 }
0x16a9   : > { %2704 = vst.msk [vmem:[%s4554_s18 + $0x3d] sm:$0x1] %vm889_vm11, %v2688_v37 }
0x16aa   : > { %v2686_v39 = vpop.permute.xlu1 %2685 }
0x16ab   : > { %2703 = vst.msk [vmem:[%s4554_s18 + $0x35] sm:$0x1] %vm889_vm11, %v2686_v39 }
0x16ac   : > { %v3036_v60 = vpop.permute.xlu0 %3035 }
0x16ad   : > { %3058 = vst.msk [vmem:[%s4554_s18 + $0xe] sm:$0x1] %vm889_vm11, %v3036_v60 }
0x16ae   : > { %v3034_v62 = vpop.permute.xlu1 %3033 }
0x16af   : > { %3057 = vst.msk [vmem:[%s4554_s18 + $0x6] sm:$0x1] %vm889_vm11, %v3034_v62 }
0x16b0   : > { %v3040_v30 = vpop.permute.xlu0 %3039 }
0x16b1   : > { %3060 = vst.msk [vmem:[%s4554_s18 + $0x1e] sm:$0x1] %vm889_vm11, %v3040_v30 }
0x16b2   : > { %v3038_v45 = vpop.permute.xlu1 %3037 }
0x16b3   : > { %3059 = vst.msk [vmem:[%s4554_s18 + $0x16] sm:$0x1] %vm889_vm11, %v3038_v45 }
0x16b4   : > { %v3044_v9 = vpop.permute.xlu0 %3043 }
0x16b5   : > { %3062 = vst.msk [vmem:[%s4554_s18 + $0x2e] sm:$0x1] %vm889_vm11, %v3044_v9 }
0x16b6   : > { %v3042_v61 = vpop.permute.xlu1 %3041 }
0x16b7   : > { %3061 = vst.msk [vmem:[%s4554_s18 + $0x26] sm:$0x1] %vm889_vm11, %v3042_v61 }
0x16b8   : > { %v3048_v27 = vpop.permute.xlu0 %3047 }
0x16b9   : > { %3064 = vst.msk [vmem:[%s4554_s18 + $0x3e] sm:$0x1] %vm889_vm11, %v3048_v27 }
0x16ba   : > { %v3046_v19 = vpop.permute.xlu1 %3045 }
0x16bb   : > { %3063 = vst.msk [vmem:[%s4554_s18 + $0x36] sm:$0x1] %vm889_vm11, %v3046_v19 }
0x16f5   : > { %v3394_v10 = vpop.permute.xlu1 %3393 }
0x16f6   : > { %3417 = vst.msk [vmem:[%s4554_s18 + $0x7] sm:$0x1] %vm889_vm11, %v3394_v10 }
0x16f9   : > { %v3396_v8 = vpop.permute.xlu0 %3395  ;;  %v3398_v54 = vpop.permute.xlu1 %3397 }
0x16fa   : > { %3418 = vst.msk [vmem:[%s4554_s18 + $0xf] sm:$0x1] %vm889_vm11, %v3396_v8  ;;  %3419 = vst.msk [vmem:[%s4554_s18 + $0x17] sm:$0x1] %vm889_vm11, %v3398_v54 }
0x16fd   : > { %v3400_v13 = vpop.permute.xlu0 %3399  ;;  %v3402_v11 = vpop.permute.xlu1 %3401  ;;  %v3531_v2 = vld [vmem:[%s4554_s18] sm:$0xff] (%p4536_p6) }
0x16fe   : > { %3420 = vst.msk [vmem:[%s4554_s18 + $0x1f] sm:$0x1] %vm889_vm11, %v3400_v13  ;;  %3421 = vst.msk [vmem:[%s4554_s18 + $0x27] sm:$0x1] %vm889_vm11, %v3402_v11 }
0x16ff   : > { %3532 = vst [vmem:[%s3488_s20] sm:$0xff] (%p4536_p6), %v3531_v2 }
0x1701   : > { %v3404_v16 = vpop.permute.xlu0 %3403  ;;  %v3406_v58 = vpop.permute.xlu1 %3405  ;;  %v3533_v1 = vld [vmem:[%s4554_s18 + $0x8] sm:$0xff] (%p4536_p6)  ;;  %v3535_v55 = vld [vmem:[%s4554_s18 + $0x10] sm:$0xff] (%p4536_p6) }
0x1702   : > { %3422 = vst.msk [vmem:[%s4554_s18 + $0x2f] sm:$0x1] %vm889_vm11, %v3404_v16  ;;  %3423 = vst.msk [vmem:[%s4554_s18 + $0x37] sm:$0x1] %vm889_vm11, %v3406_v58 }
0x1703   : > { %3534 = vst [vmem:[%s3488_s20 + $0x10] sm:$0xff] (%p4536_p6), %v3533_v1  ;;  %3536 = vst [vmem:[%s3488_s20 + $0x20] sm:$0xff] (%p4536_p6), %v3535_v55 }
0x1705   : > { %v3408_v52 = vpop.permute.xlu0 %3407  ;;  %v3537_v47 = vld [vmem:[%s4554_s18 + $0x18] sm:$0xff] (%p4536_p6)  ;;  %v3539_v26 = vld [vmem:[%s4554_s18 + $0x20] sm:$0xff] (%p4536_p6) }
0x1706   : > { %3424 = vst.msk [vmem:[%s4554_s18 + $0x3f] sm:$0x1] %vm889_vm11, %v3408_v52  ;;  %v3440_v35 = vpop.permute.xlu1 %3439  ;;  %3483 = sbr.rel (!%p4536_p6) target bundleno = 5903 (0x170f), region = 82  ;;  %3538 = vst [vmem:[%s3488_s20 + $0x30] sm:$0xff] (%p4536_p6), %v3537_v47 }
0x1707   : > { %3442 = vst.msk [vmem:[%s6070_s5] sm:$0xff] %vm527_vm3, %v3440_v35  ;;  %3540 = vst [vmem:[%s3488_s20 + $0x40] sm:$0xff] (%p4536_p6), %v3539_v26 }
0x1709   : > { %v3466_v14 = vpop.permute.xlu0 %3465  ;;  %v3541_v36 = vld [vmem:[%s4554_s18 + $0x28] sm:$0xff] (%p4536_p6)  ;;  %v3543_v34 = vld [vmem:[%s4554_s18 + $0x30] sm:$0xff] (%p4536_p6) }
0x170a   : > { %3468 = vst.msk [vmem:[%s6071_s6] sm:$0xff] %vm527_vm3, %v3466_v14  ;;  %3542 = vst [vmem:[%s3488_s20 + $0x50] sm:$0xff] (%p4536_p6), %v3541_v36 }
0x170b   : > { %3544 = vst [vmem:[%s3488_s20 + $0x60] sm:$0xff] %v3543_v34 }
0x170d   : > { %v3545_v22 = vld [vmem:[%s4554_s18 + $0x38] sm:$0xff] }
0x170e   : > { %3546 = vst [vmem:[%s3488_s20 + $0x70] sm:$0xff] %v3545_v22 }
0x170f PF: > { %s17_s25 = sadd.s32 1, %s4458_s25   ;;  %s6169_s21 = smov %s4446_s22 }
0x1710   : > { %p14_p12 = scmp.ge.s32.totalorder %s17_s25, 4   ;;  %s6170_s22 = smov %s4541_s7 }
0x1711   : > { %s6171_s23 = smov %s4454_s24  ;;  %s6172_s24 = smov %s6174_s26 }
0x1712   :  { %16 = sbr.rel (!%p14_p12) target bundleno = 3 (0x3), region = 175 }

</bundles_post_ra>
